<compile_context>
chip_gen: v7x
topology: tpu7x:2x2x1
jax: 0.10.0
libtpu: 0.0.40
codegen_flags: <defaults>
</compile_context>

<pallas_src>
import functools

import jax
import jax.numpy as jnp
import numpy as np
from jax import lax
from jax.experimental import pallas as pl
from jax.experimental.pallas import tpu as pltpu


def _round_up(x, m):
    return (x + m - 1) // m * m


def _sigmoid_via_tanh(x):
    # sigmoid(x) == 0.5 * (1 + tanh(0.5 * x)); a single EUP op instead of exp + recip.
    return 0.5 * (jnp.tanh(0.5 * x) + 1.0)


def lstm_fc_kernel(emb_ref, w_ih_ref, w_hh_ref, b_ref, w_fc_ref, b_fc_ref,
                   out_ref, h_scr, c_scr, xw_scr, *, seq_len, n_chunks):
    """One grid step = one time CHUNK of the LSTM recurrence.

    emb_ref : (Tc, Bp, Ep)    bf16 chunk of embedded tokens
    w_ih_ref: (Ep, 4*Hp)      bf16 lane-padded W_ih (transposed, gate-blocked)
    w_hh_ref: (Hp, 4*Hp)      bf16 lane-padded W_hh (transposed, gate-blocked)
    b_ref   : (1, 4*Hp)       f32 fused bias (b_ih + b_hh), gate-blocked padding
    w_fc_ref: (Hp, Op)        bf16 lane-padded FC weight (transposed)
    b_fc_ref: (1, Op)         f32
    out_ref : (Bp, Op)        f32 fc(h_T)
    h_scr, c_scr : (Bp, Hp)   f32 VMEM-resident LSTM state across chunks
    xw_scr  : (Tc, Bp, 4*Hp)  f32 chunk-level input projection (x @ W_ih + b)
    """
    chunk = pl.program_id(0)

    Tc, Bp, Ep = emb_ref.shape
    Hp = h_scr.shape[-1]
    G = 4 * Hp

    @pl.when(chunk == 0)
    def _():
        h_scr[...] = jnp.zeros_like(h_scr)
        c_scr[...] = jnp.zeros_like(c_scr)

    # ---- Chunk-level input projection: one MXU-efficient matmul (M = Tc*Bp) ----------
    x_flat = emb_ref[...].reshape(Tc * Bp, Ep)                            # bf16
    xw = jnp.dot(x_flat, w_ih_ref[...], preferred_element_type=jnp.float32)
    xw_scr[...] = (xw + b_ref[...]).reshape(Tc, Bp, G)

    w_hh = w_hh_ref[...]                                                  # hoisted, bf16

    def step(t, carry):
        h, c = carry                                                      # (Bp, Hp) f32
        hw = jnp.dot(h.astype(jnp.bfloat16), w_hh,
                     preferred_element_type=jnp.float32)                  # (Bp, 4Hp)
        gates = xw_scr[t] + hw
        # Hp is a multiple of 128 -> every gate slice is lane-aligned (no XLU shuffles).
        i_g = _sigmoid_via_tanh(gates[:, 0 * Hp:1 * Hp])
        f_g = _sigmoid_via_tanh(gates[:, 1 * Hp:2 * Hp])
        g_g = jnp.tanh(gates[:, 2 * Hp:3 * Hp])
        o_g = _sigmoid_via_tanh(gates[:, 3 * Hp:4 * Hp])
        c_new = f_g * c + i_g * g_g
        h_new = o_g * jnp.tanh(c_new)
        return h_new, c_new

    carry0 = (h_scr[...], c_scr[...])
    unroll = True if Tc <= 32 else 8
    # Steps actually present in the final (possibly zero-padded) chunk -- static.
    tail_steps = seq_len - (n_chunks - 1) * Tc

    if n_chunks > 1:
        @pl.when(chunk < n_chunks - 1)
        def _():
            h_fin, c_fin = lax.fori_loop(0, Tc, step, carry0, unroll=unroll)
            h_scr[...] = h_fin
            c_scr[...] = c_fin

    @pl.when(chunk == n_chunks - 1)
    def _():
        h_fin, c_fin = lax.fori_loop(0, tail_steps, step, carry0, unroll=unroll)
        h_scr[...] = h_fin
        c_scr[...] = c_fin
        out_ref[...] = (jnp.dot(h_fin.astype(jnp.bfloat16), w_fc_ref[...],
                                preferred_element_type=jnp.float32)
                        + b_fc_ref[...]).astype(out_ref.dtype)


def _pad_gate_blocks(w, H, Hp):
    """(rows, 4H) -> (rows, 4Hp): zero-pad each of the 4 gate blocks to Hp lanes."""
    rows = w.shape[0]
    w4 = w.reshape(rows, 4, H)
    w4 = jnp.pad(w4, ((0, 0), (0, 0), (0, Hp - H)))
    return w4.reshape(rows, 4 * Hp)


def _choose_time_chunk(T, Bp, Ep, Hp, *, max_time_chunk=128,
                       chunk_budget_bytes=40 * 2**20):
    """Largest Tc <= max_time_chunk whose emb double-buffer + xw scratch fit the budget."""
    Tc = min(T, max_time_chunk)

    def chunk_bytes(tc):
        emb_dbuf = 2 * tc * Bp * Ep * 2        # bf16 chunk, double-buffered
        xw = tc * Bp * 4 * Hp * 4              # f32 input-projection scratch
        return emb_dbuf + xw

    while Tc > 8 and chunk_bytes(Tc) > chunk_budget_bytes:
        Tc = max(8, Tc // 2)
    return Tc


def rnn_forward(text, params, *, max_time_chunk=128):
    """text: (T, B) int32 token ids.  Returns (B, output_dim) float32 logits."""
    emb_table = params["embedding"]           # (V, E)
    w_ih = params["w_ih"]                     # (E, 4H)   (PyTorch W_ih transposed)
    w_hh = params["w_hh"]                     # (H, 4H)   (PyTorch W_hh transposed)
    b = params["b"]                           # (1, 4H)   (= b_ih + b_hh)
    w_fc = params["w_fc"]                     # (H, O)
    b_fc = params["b_fc"]                     # (1, O)

    T, B = text.shape
    E = emb_table.shape[1]
    H = w_hh.shape[0]
    O = w_fc.shape[1]

    # Lane / sublane aligned sizes.
    Bp = _round_up(B, 8)
    Ep = _round_up(E, 128)
    Hp = _round_up(H, 128)
    Op = _round_up(O, 128)

    Tc = _choose_time_chunk(T, Bp, Ep, Hp, max_time_chunk=max_time_chunk)
    T_pad = _round_up(T, Tc)
    n_chunks = T_pad // Tc

    # --- Parameter packing (one-time wrapper work); matmul operands in bf16 -----------
    w_ih_p = jnp.zeros((Ep, 4 * Hp), jnp.float32).at[:E].set(
        _pad_gate_blocks(w_ih, H, Hp)).astype(jnp.bfloat16)
    w_hh_p = jnp.zeros((Hp, 4 * Hp), jnp.float32).at[:H].set(
        _pad_gate_blocks(w_hh, H, Hp)).astype(jnp.bfloat16)
    b_p = _pad_gate_blocks(b, H, Hp)                                     # (1, 4Hp) f32
    w_fc_p = jnp.zeros((Hp, Op), jnp.float32).at[:H, :O].set(w_fc).astype(jnp.bfloat16)
    b_fc_p = jnp.zeros((1, Op), jnp.float32).at[:, :O].set(b_fc)

    # --- Embedding lookup + activation padding (streamed to the kernel as bf16) -------
    emb_table_p = jnp.pad(emb_table, ((0, 0), (0, Ep - E)))              # (V, Ep)
    embedded = emb_table_p[text].astype(jnp.bfloat16)                    # (T, B, Ep)
    embedded = jnp.pad(embedded, ((0, T_pad - T), (0, Bp - B), (0, 0)))

    # Explicit scoped-VMEM limit (v5e's default is only 16 MiB); capped at 64 MiB so the
    # same number is also valid on v7x.
    vmem_needed = (2 * Tc * Bp * Ep * 2                  # emb chunk, double-buffered
                   + Tc * Bp * 4 * Hp * 4                # xw scratch
                   + (Ep + Hp) * 4 * Hp * 2              # gate weights (bf16)
                   + Hp * Op * 2 + 4 * Hp * 4 + Op * 4   # fc weight + biases
                   + 2 * Bp * Hp * 4 + 2 * Bp * Op * 4)  # h/c state + out
    vmem_limit = int(min(max(2 * vmem_needed, 32 * 2**20), 64 * 2**20))

    kernel = functools.partial(lstm_fc_kernel, seq_len=T, n_chunks=n_chunks)
    out_shape = jax.ShapeDtypeStruct((Bp, Op), jnp.float32)
    compiler_params = pltpu.CompilerParams(
        dimension_semantics=("arbitrary",),        # time chunks are sequential
        vmem_limit_bytes=vmem_limit)
    scratch_shapes = [
        pltpu.VMEM((Bp, Hp), jnp.float32),         # hidden state
        pltpu.VMEM((Bp, Hp), jnp.float32),         # cell state
        pltpu.VMEM((Tc, Bp, 4 * Hp), jnp.float32),  # chunk input projection
    ]

    def build_call(single_buffer_weights):
        if single_buffer_weights:
            # Grid-invariant operands: no point double-buffering them (VMEM saving,
            # matters most on v7x's 64 MiB).
            def wspec(shape):
                return pl.BlockSpec(shape, lambda c: (0,) * len(shape),
                                    pipeline_mode=pl.Buffered(1))
        else:
            def wspec(shape):
                return pl.BlockSpec(shape, lambda c: (0,) * len(shape))

        grid_spec = pltpu.PrefetchScalarGridSpec(
            num_scalar_prefetch=0,
            grid=(n_chunks,),
            in_specs=[
                pl.BlockSpec((Tc, Bp, Ep), lambda c: (c, 0, 0)),   # time chunk
                wspec((Ep, 4 * Hp)),
                wspec((Hp, 4 * Hp)),
                wspec((1, 4 * Hp)),
                wspec((Hp, Op)),
                wspec((1, Op)),
            ],
            out_specs=pl.BlockSpec((Bp, Op), lambda c: (0, 0)),
            scratch_shapes=scratch_shapes,
        )
        return pl.pallas_call(kernel, out_shape=out_shape, grid_spec=grid_spec,
                              compiler_params=compiler_params)

    args = (embedded, w_ih_p, w_hh_p, b_p, w_fc_p, b_fc_p)
    try:
        out_pad = build_call(True)(*args)
    except Exception:
        # Fallback if this JAX build rejects pipeline_mode=pl.Buffered(1).
        out_pad = build_call(False)(*args)

    return out_pad[:B, :O]


def rnn_forward_ref(text, params, *, match_kernel_dtypes=False):
    """Pure-JAX reference.  With match_kernel_dtypes=True it mirrors the kernel's
    bf16 matmul operands and tanh-based sigmoid so the comparison is tight."""
    if match_kernel_dtypes:
        cast = lambda x: x.astype(jnp.bfloat16)
        sigmoid = _sigmoid_via_tanh
    else:
        cast = lambda x: x
        sigmoid = jax.nn.sigmoid

    emb = params["embedding"][text]           # (T, B, E)
    H = params["w_hh"].shape[0]
    B = text.shape[1]
    w_ih = cast(params["w_ih"])
    w_hh = cast(params["w_hh"])
    w_fc = cast(params["w_fc"])

    def step(carry, x_t):
        h, c = carry
        gates = (jnp.dot(cast(x_t), w_ih, preferred_element_type=jnp.float32)
                 + params["b"]
                 + jnp.dot(cast(h), w_hh, preferred_element_type=jnp.float32))
        i = sigmoid(gates[:, 0 * H:1 * H])
        f = sigmoid(gates[:, 1 * H:2 * H])
        g = jnp.tanh(gates[:, 2 * H:3 * H])
        o = sigmoid(gates[:, 3 * H:4 * H])
        c = f * c + i * g
        h = o * jnp.tanh(c)
        return (h, c), None

    h0 = jnp.zeros((B, H), jnp.float32)
    c0 = jnp.zeros((B, H), jnp.float32)
    (hT, _), _ = lax.scan(step, (h0, c0), emb)
    return (jnp.dot(cast(hT), w_fc, preferred_element_type=jnp.float32)
            + params["b_fc"])


if __name__ == "__main__":
    # Small synthetic config consistent with the module's forward:
    INPUT_DIM = 50     # vocab size
    EMBED_DIM = 32
    HIDDEN_DIM = 32
    OUTPUT_DIM = 4
    SEQ_LEN = 8
    BATCH = 2

    key = jax.random.PRNGKey(0)
    k_emb, k_ih, k_hh, k_bi, k_bh, k_fc, k_bfc, k_txt = jax.random.split(key, 8)

    scale = 0.1
    params = {
        "embedding": scale * jax.random.normal(k_emb, (INPUT_DIM, EMBED_DIM), jnp.float32),
        # Stored transposed relative to PyTorch (4H, E)/(4H, H):
        "w_ih": scale * jax.random.normal(k_ih, (EMBED_DIM, 4 * HIDDEN_DIM), jnp.float32),
        "w_hh": scale * jax.random.normal(k_hh, (HIDDEN_DIM, 4 * HIDDEN_DIM), jnp.float32),
        # b = b_ih + b_hh, kept 2D for TPU-friendly layout:
        "b": (scale * jax.random.normal(k_bi, (1, 4 * HIDDEN_DIM), jnp.float32)
              + scale * jax.random.normal(k_bh, (1, 4 * HIDDEN_DIM), jnp.float32)),
        "w_fc": scale * jax.random.normal(k_fc, (HIDDEN_DIM, OUTPUT_DIM), jnp.float32),
        "b_fc": scale * jax.random.normal(k_bfc, (1, OUTPUT_DIM), jnp.float32),
    }

    text = jax.random.randint(k_txt, (SEQ_LEN, BATCH), 0, INPUT_DIM, jnp.int32)

    out = jax.block_until_ready(rnn_forward(text, params))
    assert out.shape == (BATCH, OUTPUT_DIM), out.shape

    # Tight check against a reference mirroring the kernel's bf16 / tanh-sigmoid math.
    ref_matched = jax.block_until_ready(
        rnn_forward_ref(text, params, match_kernel_dtypes=True))
    np.testing.assert_allclose(np.asarray(out), np.asarray(ref_matched),
                               rtol=5e-4, atol=5e-4)

    # Sanity check against the exact f32 forward (bf16 MXU operands => small drift).
    ref_exact = jax.block_until_ready(rnn_forward_ref(text, params))
    np.testing.assert_allclose(np.asarray(out), np.asarray(ref_exact),
                               rtol=2e-2, atol=2e-2)

    print("KERNEL_OK")
</pallas_src>

<mosaic_0001>
module attributes {stable_mosaic.version = 11 : i64} {
  func.func @lstm_fc_kernel(%arg0: i32, %arg1: memref<8x8x128xbf16, #tpu.memory_space<vmem>>, %arg2: memref<128x512xbf16, #tpu.memory_space<vmem>>, %arg3: memref<128x512xbf16, #tpu.memory_space<vmem>>, %arg4: memref<1x512xf32, #tpu.memory_space<vmem>>, %arg5: memref<128x128xbf16, #tpu.memory_space<vmem>>, %arg6: memref<1x128xf32, #tpu.memory_space<vmem>>, %arg7: memref<8x128xf32, #tpu.memory_space<vmem>>, %arg8: memref<8x128xf32, #tpu.memory_space<vmem>>, %arg9: memref<8x128xf32, #tpu.memory_space<vmem>>, %arg10: memref<8x8x512xf32, #tpu.memory_space<vmem>>) attributes {dimension_semantics = [#tpu.dimension_semantics<arbitrary>], iteration_bounds = array<i64: 1>, scalar_prefetch = 0 : i64, scratch_operands = 3 : i64, tpu.core_type = #tpu.core_type<tc>, window_params = [{transform_indices = @transform_0, window_bounds = array<i64: 8, 8, 128>}, {pipeline_mode = #tpu.pipeline_mode<synchronous>, transform_indices = @transform_1, window_bounds = array<i64: 128, 512>}, {pipeline_mode = #tpu.pipeline_mode<synchronous>, transform_indices = @transform_2, window_bounds = array<i64: 128, 512>}, {pipeline_mode = #tpu.pipeline_mode<synchronous>, transform_indices = @transform_3, window_bounds = array<i64: 1, 512>}, {pipeline_mode = #tpu.pipeline_mode<synchronous>, transform_indices = @transform_4, window_bounds = array<i64: 128, 128>}, {pipeline_mode = #tpu.pipeline_mode<synchronous>, transform_indices = @transform_5, window_bounds = array<i64: 1, 128>}, {pipeline_mode = #tpu.pipeline_mode<synchronous>, transform_indices = @transform_6, window_bounds = array<i64: 8, 128>}]} {
    %c0_i32 = arith.constant 0 : i32
    %0 = arith.cmpi eq, %arg0, %c0_i32 : i32
    %1 = arith.extui %0 : i1 to i32
    %c0_i32_0 = arith.constant 0 : i32
    %2 = arith.cmpi ne, %1, %c0_i32_0 : i32
    scf.if %2 {
      %cst_18 = arith.constant 0.000000e+00 : f32
      %18 = vector.broadcast %cst_18 : f32 to vector<8x128xf32>
      %c0_19 = arith.constant 0 : index
      %c0_20 = arith.constant 0 : index
      %19 = vector.load %arg8[%c0_19, %c0_20] : memref<8x128xf32, #tpu.memory_space<vmem>>, vector<8x128xf32>
      tpu.vector_store %arg8[%c0_19, %c0_20], %18 {strides = array<i32>} : memref<8x128xf32, #tpu.memory_space<vmem>>, vector<8x128xf32>,
      %cst_21 = arith.constant 0.000000e+00 : f32
      %20 = vector.broadcast %cst_21 : f32 to vector<8x128xf32>
      %c0_22 = arith.constant 0 : index
      %c0_23 = arith.constant 0 : index
      %21 = vector.load %arg9[%c0_22, %c0_23] : memref<8x128xf32, #tpu.memory_space<vmem>>, vector<8x128xf32>
      tpu.vector_store %arg9[%c0_22, %c0_23], %20 {strides = array<i32>} : memref<8x128xf32, #tpu.memory_space<vmem>>, vector<8x128xf32>,
    } else {
    }
    %c0 = arith.constant 0 : index
    %c0_1 = arith.constant 0 : index
    %c0_2 = arith.constant 0 : index
    %3 = vector.load %arg1[%c0, %c0_1, %c0_2] : memref<8x8x128xbf16, #tpu.memory_space<vmem>>, vector<8x8x128xbf16>
    %4 = vector.shape_cast %3 : vector<8x8x128xbf16> to vector<64x128xbf16>
    %c0_3 = arith.constant 0 : index
    %c0_4 = arith.constant 0 : index
    %5 = vector.load %arg2[%c0_3, %c0_4] : memref<128x512xbf16, #tpu.memory_space<vmem>>, vector<128x512xbf16>
    %cst = arith.constant dense<0.000000e+00> : vector<64x512xf32>
    %6 = tpu.matmul %4, %5, %cst {dimension_numbers = #tpu.dot_dimension_numbers<[1], [0], [0], [1], [0, 0, 1, 1], [], []>} : vector<64x128xbf16>, vector<128x512xbf16>, vector<64x512xf32> -> vector<64x512xf32>
    %c0_5 = arith.constant 0 : index
    %c0_6 = arith.constant 0 : index
    %7 = vector.load %arg4[%c0_5, %c0_6] : memref<1x512xf32, #tpu.memory_space<vmem>>, vector<1x512xf32>
    %8 = vector.broadcast %7 : vector<1x512xf32> to vector<64x512xf32>
    %9 = arith.addf %6, %8 : vector<64x512xf32>
    %10 = vector.shape_cast %9 : vector<64x512xf32> to vector<8x8x512xf32>
    %c0_7 = arith.constant 0 : index
    %c0_8 = arith.constant 0 : index
    %c0_9 = arith.constant 0 : index
    %11 = vector.load %arg10[%c0_7, %c0_8, %c0_9] : memref<8x8x512xf32, #tpu.memory_space<vmem>>, vector<8x8x512xf32>
    tpu.vector_store %arg10[%c0_7, %c0_8, %c0_9], %10 {strides = array<i32>} : memref<8x8x512xf32, #tpu.memory_space<vmem>>, vector<8x8x512xf32>,
    %c0_10 = arith.constant 0 : index
    %c0_11 = arith.constant 0 : index
    %12 = vector.load %arg3[%c0_10, %c0_11] : memref<128x512xbf16, #tpu.memory_space<vmem>>, vector<128x512xbf16>
    %c0_12 = arith.constant 0 : index
    %c0_13 = arith.constant 0 : index
    %13 = vector.load %arg8[%c0_12, %c0_13] : memref<8x128xf32, #tpu.memory_space<vmem>>, vector<8x128xf32>
    %c0_14 = arith.constant 0 : index
    %c0_15 = arith.constant 0 : index
    %14 = vector.load %arg9[%c0_14, %c0_15] : memref<8x128xf32, #tpu.memory_space<vmem>>, vector<8x128xf32>
    %c0_i32_16 = arith.constant 0 : i32
    %15 = arith.cmpi eq, %arg0, %c0_i32_16 : i32
    %16 = arith.extui %15 : i1 to i32
    %c0_i32_17 = arith.constant 0 : i32
    %17 = arith.cmpi ne, %16, %c0_i32_17 : i32
    scf.if %17 {
      %c0_i32_18 = arith.constant 0 : i32
      %18 = arith.truncf %13 : vector<8x128xf32> to vector<8x128xbf16>
      %cst_19 = arith.constant dense<0.000000e+00> : vector<8x512xf32>
      %19 = tpu.matmul %18, %12, %cst_19 {dimension_numbers = #tpu.dot_dimension_numbers<[1], [0], [0], [1], [0, 0, 1, 1], [], []>} : vector<8x128xbf16>, vector<128x512xbf16>, vector<8x512xf32> -> vector<8x512xf32>
      %20 = arith.index_cast %c0_i32_18 : i32 to index
      %c0_20 = arith.constant 0 : index
      %c0_21 = arith.constant 0 : index
      %21 = vector.load %arg10[%20, %c0_20, %c0_21] : memref<8x8x512xf32, #tpu.memory_space<vmem>>, vector<1x8x512xf32>
      %22 = vector.shape_cast %21 : vector<1x8x512xf32> to vector<8x512xf32>
      %23 = arith.addf %22, %19 : vector<8x512xf32>
      %24 = vector.extract_strided_slice %23 {offsets = [0, 0], sizes = [8, 128], strides = [1, 1]} : vector<8x512xf32> to vector<8x128xf32>
      %cst_22 = arith.constant 5.000000e-01 : f32
      %25 = vector.broadcast %cst_22 : f32 to vector<8x128xf32>
      %26 = arith.mulf %25, %24 : vector<8x128xf32>
      %27 = math.tanh %26 : vector<8x128xf32>
      %cst_23 = arith.constant 1.000000e+00 : f32
      %28 = vector.broadcast %cst_23 : f32 to vector<8x128xf32>
      %29 = arith.addf %27, %28 : vector<8x128xf32>
      %cst_24 = arith.constant 5.000000e-01 : f32
      %30 = vector.broadcast %cst_24 : f32 to vector<8x128xf32>
      %31 = arith.mulf %30, %29 : vector<8x128xf32>
      %32 = vector.extract_strided_slice %23 {offsets = [0, 128], sizes = [8, 128], strides = [1, 1]} : vector<8x512xf32> to vector<8x128xf32>
      %cst_25 = arith.constant 5.000000e-01 : f32
      %33 = vector.broadcast %cst_25 : f32 to vector<8x128xf32>
      %34 = arith.mulf %33, %32 : vector<8x128xf32>
      %35 = math.tanh %34 : vector<8x128xf32>
      %cst_26 = arith.constant 1.000000e+00 : f32
      %36 = vector.broadcast %cst_26 : f32 to vector<8x128xf32>
      %37 = arith.addf %35, %36 : vector<8x128xf32>
      %cst_27 = arith.constant 5.000000e-01 : f32
      %38 = vector.broadcast %cst_27 : f32 to vector<8x128xf32>
      %39 = arith.mulf %38, %37 : vector<8x128xf32>
      %40 = vector.extract_strided_slice %23 {offsets = [0, 256], sizes = [8, 128], strides = [1, 1]} : vector<8x512xf32> to vector<8x128xf32>
      %41 = math.tanh %40 : vector<8x128xf32>
      %42 = vector.extract_strided_slice %23 {offsets = [0, 384], sizes = [8, 128], strides = [1, 1]} : vector<8x512xf32> to vector<8x128xf32>
      %cst_28 = arith.constant 5.000000e-01 : f32
      %43 = vector.broadcast %cst_28 : f32 to vector<8x128xf32>
      %44 = arith.mulf %43, %42 : vector<8x128xf32>
      %45 = math.tanh %44 : vector<8x128xf32>
      %cst_29 = arith.constant 1.000000e+00 : f32
      %46 = vector.broadcast %cst_29 : f32 to vector<8x128xf32>
      %47 = arith.addf %45, %46 : vector<8x128xf32>
      %cst_30 = arith.constant 5.000000e-01 : f32
      %48 = vector.broadcast %cst_30 : f32 to vector<8x128xf32>
      %49 = arith.mulf %48, %47 : vector<8x128xf32>
      %50 = arith.mulf %39, %14 : vector<8x128xf32>
      %51 = arith.mulf %31, %41 : vector<8x128xf32>
      %52 = arith.addf %50, %51 : vector<8x128xf32>
      %53 = math.tanh %52 : vector<8x128xf32>
      %54 = arith.mulf %49, %53 : vector<8x128xf32>
      %c1_i32 = arith.constant 1 : i32
      %55 = arith.truncf %54 : vector<8x128xf32> to vector<8x128xbf16>
      %cst_31 = arith.constant dense<0.000000e+00> : vector<8x512xf32>
      %56 = tpu.matmul %55, %12, %cst_31 {dimension_numbers = #tpu.dot_dimension_numbers<[1], [0], [0], [1], [0, 0, 1, 1], [], []>} : vector<8x128xbf16>, vector<128x512xbf16>, vector<8x512xf32> -> vector<8x512xf32>
      %57 = arith.index_cast %c1_i32 : i32 to index
      %c0_32 = arith.constant 0 : index
      %c0_33 = arith.constant 0 : index
      %58 = vector.load %arg10[%57, %c0_32, %c0_33] : memref<8x8x512xf32, #tpu.memory_space<vmem>>, vector<1x8x512xf32>
      %59 = vector.shape_cast %58 : vector<1x8x512xf32> to vector<8x512xf32>
      %60 = arith.addf %59, %56 : vector<8x512xf32>
      %61 = vector.extract_strided_slice %60 {offsets = [0, 0], sizes = [8, 128], strides = [1, 1]} : vector<8x512xf32> to vector<8x128xf32>
      %cst_34 = arith.constant 5.000000e-01 : f32
      %62 = vector.broadcast %cst_34 : f32 to vector<8x128xf32>
      %63 = arith.mulf %62, %61 : vector<8x128xf32>
      %64 = math.tanh %63 : vector<8x128xf32>
      %cst_35 = arith.constant 1.000000e+00 : f32
      %65 = vector.broadcast %cst_35 : f32 to vector<8x128xf32>
      %66 = arith.addf %64, %65 : vector<8x128xf32>
      %cst_36 = arith.constant 5.000000e-01 : f32
      %67 = vector.broadcast %cst_36 : f32 to vector<8x128xf32>
      %68 = arith.mulf %67, %66 : vector<8x128xf32>
      %69 = vector.extract_strided_slice %60 {offsets = [0, 128], sizes = [8, 128], strides = [1, 1]} : vector<8x512xf32> to vector<8x128xf32>
      %cst_37 = arith.constant 5.000000e-01 : f32
      %70 = vector.broadcast %cst_37 : f32 to vector<8x128xf32>
      %71 = arith.mulf %70, %69 : vector<8x128xf32>
      %72 = math.tanh %71 : vector<8x128xf32>
      %cst_38 = arith.constant 1.000000e+00 : f32
      %73 = vector.broadcast %cst_38 : f32 to vector<8x128xf32>
      %74 = arith.addf %72, %73 : vector<8x128xf32>
      %cst_39 = arith.constant 5.000000e-01 : f32
      %75 = vector.broadcast %cst_39 : f32 to vector<8x128xf32>
      %76 = arith.mulf %75, %74 : vector<8x128xf32>
      %77 = vector.extract_strided_slice %60 {offsets = [0, 256], sizes = [8, 128], strides = [1, 1]} : vector<8x512xf32> to vector<8x128xf32>
      %78 = math.tanh %77 : vector<8x128xf32>
      %79 = vector.extract_strided_slice %60 {offsets = [0, 384], sizes = [8, 128], strides = [1, 1]} : vector<8x512xf32> to vector<8x128xf32>
      %cst_40 = arith.constant 5.000000e-01 : f32
      %80 = vector.broadcast %cst_40 : f32 to vector<8x128xf32>
      %81 = arith.mulf %80, %79 : vector<8x128xf32>
      %82 = math.tanh %81 : vector<8x128xf32>
      %cst_41 = arith.constant 1.000000e+00 : f32
      %83 = vector.broadcast %cst_41 : f32 to vector<8x128xf32>
      %84 = arith.addf %82, %83 : vector<8x128xf32>
      %cst_42 = arith.constant 5.000000e-01 : f32
      %85 = vector.broadcast %cst_42 : f32 to vector<8x128xf32>
      %86 = arith.mulf %85, %84 : vector<8x128xf32>
      %87 = arith.mulf %76, %52 : vector<8x128xf32>
      %88 = arith.mulf %68, %78 : vector<8x128xf32>
      %89 = arith.addf %87, %88 : vector<8x128xf32>
      %90 = math.tanh %89 : vector<8x128xf32>
      %91 = arith.mulf %86, %90 : vector<8x128xf32>
      %c2_i32 = arith.constant 2 : i32
      %92 = arith.truncf %91 : vector<8x128xf32> to vector<8x128xbf16>
      %cst_43 = arith.constant dense<0.000000e+00> : vector<8x512xf32>
      %93 = tpu.matmul %92, %12, %cst_43 {dimension_numbers = #tpu.dot_dimension_numbers<[1], [0], [0], [1], [0, 0, 1, 1], [], []>} : vector<8x128xbf16>, vector<128x512xbf16>, vector<8x512xf32> -> vector<8x512xf32>
      %94 = arith.index_cast %c2_i32 : i32 to index
      %c0_44 = arith.constant 0 : index
      %c0_45 = arith.constant 0 : index
      %95 = vector.load %arg10[%94, %c0_44, %c0_45] : memref<8x8x512xf32, #tpu.memory_space<vmem>>, vector<1x8x512xf32>
      %96 = vector.shape_cast %95 : vector<1x8x512xf32> to vector<8x512xf32>
      %97 = arith.addf %96, %93 : vector<8x512xf32>
      %98 = vector.extract_strided_slice %97 {offsets = [0, 0], sizes = [8, 128], strides = [1, 1]} : vector<8x512xf32> to vector<8x128xf32>
      %cst_46 = arith.constant 5.000000e-01 : f32
      %99 = vector.broadcast %cst_46 : f32 to vector<8x128xf32>
      %100 = arith.mulf %99, %98 : vector<8x128xf32>
      %101 = math.tanh %100 : vector<8x128xf32>
      %cst_47 = arith.constant 1.000000e+00 : f32
      %102 = vector.broadcast %cst_47 : f32 to vector<8x128xf32>
      %103 = arith.addf %101, %102 : vector<8x128xf32>
      %cst_48 = arith.constant 5.000000e-01 : f32
      %104 = vector.broadcast %cst_48 : f32 to vector<8x128xf32>
      %105 = arith.mulf %104, %103 : vector<8x128xf32>
      %106 = vector.extract_strided_slice %97 {offsets = [0, 128], sizes = [8, 128], strides = [1, 1]} : vector<8x512xf32> to vector<8x128xf32>
      %cst_49 = arith.constant 5.000000e-01 : f32
      %107 = vector.broadcast %cst_49 : f32 to vector<8x128xf32>
      %108 = arith.mulf %107, %106 : vector<8x128xf32>
      %109 = math.tanh %108 : vector<8x128xf32>
      %cst_50 = arith.constant 1.000000e+00 : f32
      %110 = vector.broadcast %cst_50 : f32 to vector<8x128xf32>
      %111 = arith.addf %109, %110 : vector<8x128xf32>
      %cst_51 = arith.constant 5.000000e-01 : f32
      %112 = vector.broadcast %cst_51 : f32 to vector<8x128xf32>
      %113 = arith.mulf %112, %111 : vector<8x128xf32>
      %114 = vector.extract_strided_slice %97 {offsets = [0, 256], sizes = [8, 128], strides = [1, 1]} : vector<8x512xf32> to vector<8x128xf32>
      %115 = math.tanh %114 : vector<8x128xf32>
      %116 = vector.extract_strided_slice %97 {offsets = [0, 384], sizes = [8, 128], strides = [1, 1]} : vector<8x512xf32> to vector<8x128xf32>
      %cst_52 = arith.constant 5.000000e-01 : f32
      %117 = vector.broadcast %cst_52 : f32 to vector<8x128xf32>
      %118 = arith.mulf %117, %116 : vector<8x128xf32>
      %119 = math.tanh %118 : vector<8x128xf32>
      %cst_53 = arith.constant 1.000000e+00 : f32
      %120 = vector.broadcast %cst_53 : f32 to vector<8x128xf32>
      %121 = arith.addf %119, %120 : vector<8x128xf32>
      %cst_54 = arith.constant 5.000000e-01 : f32
      %122 = vector.broadcast %cst_54 : f32 to vector<8x128xf32>
      %123 = arith.mulf %122, %121 : vector<8x128xf32>
      %124 = arith.mulf %113, %89 : vector<8x128xf32>
      %125 = arith.mulf %105, %115 : vector<8x128xf32>
      %126 = arith.addf %124, %125 : vector<8x128xf32>
      %127 = math.tanh %126 : vector<8x128xf32>
      %128 = arith.mulf %123, %127 : vector<8x128xf32>
      %c3_i32 = arith.constant 3 : i32
      %129 = arith.truncf %128 : vector<8x128xf32> to vector<8x128xbf16>
      %cst_55 = arith.constant dense<0.000000e+00> : vector<8x512xf32>
      %130 = tpu.matmul %129, %12, %cst_55 {dimension_numbers = #tpu.dot_dimension_numbers<[1], [0], [0], [1], [0, 0, 1, 1], [], []>} : vector<8x128xbf16>, vector<128x512xbf16>, vector<8x512xf32> -> vector<8x512xf32>
      %131 = arith.index_cast %c3_i32 : i32 to index
      %c0_56 = arith.constant 0 : index
      %c0_57 = arith.constant 0 : index
      %132 = vector.load %arg10[%131, %c0_56, %c0_57] : memref<8x8x512xf32, #tpu.memory_space<vmem>>, vector<1x8x512xf32>
      %133 = vector.shape_cast %132 : vector<1x8x512xf32> to vector<8x512xf32>
      %134 = arith.addf %133, %130 : vector<8x512xf32>
      %135 = vector.extract_strided_slice %134 {offsets = [0, 0], sizes = [8, 128], strides = [1, 1]} : vector<8x512xf32> to vector<8x128xf32>
      %cst_58 = arith.constant 5.000000e-01 : f32
      %136 = vector.broadcast %cst_58 : f32 to vector<8x128xf32>
      %137 = arith.mulf %136, %135 : vector<8x128xf32>
      %138 = math.tanh %137 : vector<8x128xf32>
      %cst_59 = arith.constant 1.000000e+00 : f32
      %139 = vector.broadcast %cst_59 : f32 to vector<8x128xf32>
      %140 = arith.addf %138, %139 : vector<8x128xf32>
      %cst_60 = arith.constant 5.000000e-01 : f32
      %141 = vector.broadcast %cst_60 : f32 to vector<8x128xf32>
      %142 = arith.mulf %141, %140 : vector<8x128xf32>
      %143 = vector.extract_strided_slice %134 {offsets = [0, 128], sizes = [8, 128], strides = [1, 1]} : vector<8x512xf32> to vector<8x128xf32>
      %cst_61 = arith.constant 5.000000e-01 : f32
      %144 = vector.broadcast %cst_61 : f32 to vector<8x128xf32>
      %145 = arith.mulf %144, %143 : vector<8x128xf32>
      %146 = math.tanh %145 : vector<8x128xf32>
      %cst_62 = arith.constant 1.000000e+00 : f32
      %147 = vector.broadcast %cst_62 : f32 to vector<8x128xf32>
      %148 = arith.addf %146, %147 : vector<8x128xf32>
      %cst_63 = arith.constant 5.000000e-01 : f32
      %149 = vector.broadcast %cst_63 : f32 to vector<8x128xf32>
      %150 = arith.mulf %149, %148 : vector<8x128xf32>
      %151 = vector.extract_strided_slice %134 {offsets = [0, 256], sizes = [8, 128], strides = [1, 1]} : vector<8x512xf32> to vector<8x128xf32>
      %152 = math.tanh %151 : vector<8x128xf32>
      %153 = vector.extract_strided_slice %134 {offsets = [0, 384], sizes = [8, 128], strides = [1, 1]} : vector<8x512xf32> to vector<8x128xf32>
      %cst_64 = arith.constant 5.000000e-01 : f32
      %154 = vector.broadcast %cst_64 : f32 to vector<8x128xf32>
      %155 = arith.mulf %154, %153 : vector<8x128xf32>
      %156 = math.tanh %155 : vector<8x128xf32>
      %cst_65 = arith.constant 1.000000e+00 : f32
      %157 = vector.broadcast %cst_65 : f32 to vector<8x128xf32>
      %158 = arith.addf %156, %157 : vector<8x128xf32>
      %cst_66 = arith.constant 5.000000e-01 : f32
      %159 = vector.broadcast %cst_66 : f32 to vector<8x128xf32>
      %160 = arith.mulf %159, %158 : vector<8x128xf32>
      %161 = arith.mulf %150, %126 : vector<8x128xf32>
      %162 = arith.mulf %142, %152 : vector<8x128xf32>
      %163 = arith.addf %161, %162 : vector<8x128xf32>
      %164 = math.tanh %163 : vector<8x128xf32>
      %165 = arith.mulf %160, %164 : vector<8x128xf32>
      %c4_i32 = arith.constant 4 : i32
      %166 = arith.truncf %165 : vector<8x128xf32> to vector<8x128xbf16>
      %cst_67 = arith.constant dense<0.000000e+00> : vector<8x512xf32>
      %167 = tpu.matmul %166, %12, %cst_67 {dimension_numbers = #tpu.dot_dimension_numbers<[1], [0], [0], [1], [0, 0, 1, 1], [], []>} : vector<8x128xbf16>, vector<128x512xbf16>, vector<8x512xf32> -> vector<8x512xf32>
      %168 = arith.index_cast %c4_i32 : i32 to index
      %c0_68 = arith.constant 0 : index
      %c0_69 = arith.constant 0 : index
      %169 = vector.load %arg10[%168, %c0_68, %c0_69] : memref<8x8x512xf32, #tpu.memory_space<vmem>>, vector<1x8x512xf32>
      %170 = vector.shape_cast %169 : vector<1x8x512xf32> to vector<8x512xf32>
      %171 = arith.addf %170, %167 : vector<8x512xf32>
      %172 = vector.extract_strided_slice %171 {offsets = [0, 0], sizes = [8, 128], strides = [1, 1]} : vector<8x512xf32> to vector<8x128xf32>
      %cst_70 = arith.constant 5.000000e-01 : f32
      %173 = vector.broadcast %cst_70 : f32 to vector<8x128xf32>
      %174 = arith.mulf %173, %172 : vector<8x128xf32>
      %175 = math.tanh %174 : vector<8x128xf32>
      %cst_71 = arith.constant 1.000000e+00 : f32
      %176 = vector.broadcast %cst_71 : f32 to vector<8x128xf32>
      %177 = arith.addf %175, %176 : vector<8x128xf32>
      %cst_72 = arith.constant 5.000000e-01 : f32
      %178 = vector.broadcast %cst_72 : f32 to vector<8x128xf32>
      %179 = arith.mulf %178, %177 : vector<8x128xf32>
      %180 = vector.extract_strided_slice %171 {offsets = [0, 128], sizes = [8, 128], strides = [1, 1]} : vector<8x512xf32> to vector<8x128xf32>
      %cst_73 = arith.constant 5.000000e-01 : f32
      %181 = vector.broadcast %cst_73 : f32 to vector<8x128xf32>
      %182 = arith.mulf %181, %180 : vector<8x128xf32>
      %183 = math.tanh %182 : vector<8x128xf32>
      %cst_74 = arith.constant 1.000000e+00 : f32
      %184 = vector.broadcast %cst_74 : f32 to vector<8x128xf32>
      %185 = arith.addf %183, %184 : vector<8x128xf32>
      %cst_75 = arith.constant 5.000000e-01 : f32
      %186 = vector.broadcast %cst_75 : f32 to vector<8x128xf32>
      %187 = arith.mulf %186, %185 : vector<8x128xf32>
      %188 = vector.extract_strided_slice %171 {offsets = [0, 256], sizes = [8, 128], strides = [1, 1]} : vector<8x512xf32> to vector<8x128xf32>
      %189 = math.tanh %188 : vector<8x128xf32>
      %190 = vector.extract_strided_slice %171 {offsets = [0, 384], sizes = [8, 128], strides = [1, 1]} : vector<8x512xf32> to vector<8x128xf32>
      %cst_76 = arith.constant 5.000000e-01 : f32
      %191 = vector.broadcast %cst_76 : f32 to vector<8x128xf32>
      %192 = arith.mulf %191, %190 : vector<8x128xf32>
      %193 = math.tanh %192 : vector<8x128xf32>
      %cst_77 = arith.constant 1.000000e+00 : f32
      %194 = vector.broadcast %cst_77 : f32 to vector<8x128xf32>
      %195 = arith.addf %193, %194 : vector<8x128xf32>
      %cst_78 = arith.constant 5.000000e-01 : f32
      %196 = vector.broadcast %cst_78 : f32 to vector<8x128xf32>
      %197 = arith.mulf %196, %195 : vector<8x128xf32>
      %198 = arith.mulf %187, %163 : vector<8x128xf32>
      %199 = arith.mulf %179, %189 : vector<8x128xf32>
      %200 = arith.addf %198, %199 : vector<8x128xf32>
      %201 = math.tanh %200 : vector<8x128xf32>
      %202 = arith.mulf %197, %201 : vector<8x128xf32>
      %c5_i32 = arith.constant 5 : i32
      %203 = arith.truncf %202 : vector<8x128xf32> to vector<8x128xbf16>
      %cst_79 = arith.constant dense<0.000000e+00> : vector<8x512xf32>
      %204 = tpu.matmul %203, %12, %cst_79 {dimension_numbers = #tpu.dot_dimension_numbers<[1], [0], [0], [1], [0, 0, 1, 1], [], []>} : vector<8x128xbf16>, vector<128x512xbf16>, vector<8x512xf32> -> vector<8x512xf32>
      %205 = arith.index_cast %c5_i32 : i32 to index
      %c0_80 = arith.constant 0 : index
      %c0_81 = arith.constant 0 : index
      %206 = vector.load %arg10[%205, %c0_80, %c0_81] : memref<8x8x512xf32, #tpu.memory_space<vmem>>, vector<1x8x512xf32>
      %207 = vector.shape_cast %206 : vector<1x8x512xf32> to vector<8x512xf32>
      %208 = arith.addf %207, %204 : vector<8x512xf32>
      %209 = vector.extract_strided_slice %208 {offsets = [0, 0], sizes = [8, 128], strides = [1, 1]} : vector<8x512xf32> to vector<8x128xf32>
      %cst_82 = arith.constant 5.000000e-01 : f32
      %210 = vector.broadcast %cst_82 : f32 to vector<8x128xf32>
      %211 = arith.mulf %210, %209 : vector<8x128xf32>
      %212 = math.tanh %211 : vector<8x128xf32>
      %cst_83 = arith.constant 1.000000e+00 : f32
      %213 = vector.broadcast %cst_83 : f32 to vector<8x128xf32>
      %214 = arith.addf %212, %213 : vector<8x128xf32>
      %cst_84 = arith.constant 5.000000e-01 : f32
      %215 = vector.broadcast %cst_84 : f32 to vector<8x128xf32>
      %216 = arith.mulf %215, %214 : vector<8x128xf32>
      %217 = vector.extract_strided_slice %208 {offsets = [0, 128], sizes = [8, 128], strides = [1, 1]} : vector<8x512xf32> to vector<8x128xf32>
      %cst_85 = arith.constant 5.000000e-01 : f32
      %218 = vector.broadcast %cst_85 : f32 to vector<8x128xf32>
      %219 = arith.mulf %218, %217 : vector<8x128xf32>
      %220 = math.tanh %219 : vector<8x128xf32>
      %cst_86 = arith.constant 1.000000e+00 : f32
      %221 = vector.broadcast %cst_86 : f32 to vector<8x128xf32>
      %222 = arith.addf %220, %221 : vector<8x128xf32>
      %cst_87 = arith.constant 5.000000e-01 : f32
      %223 = vector.broadcast %cst_87 : f32 to vector<8x128xf32>
      %224 = arith.mulf %223, %222 : vector<8x128xf32>
      %225 = vector.extract_strided_slice %208 {offsets = [0, 256], sizes = [8, 128], strides = [1, 1]} : vector<8x512xf32> to vector<8x128xf32>
      %226 = math.tanh %225 : vector<8x128xf32>
      %227 = vector.extract_strided_slice %208 {offsets = [0, 384], sizes = [8, 128], strides = [1, 1]} : vector<8x512xf32> to vector<8x128xf32>
      %cst_88 = arith.constant 5.000000e-01 : f32
      %228 = vector.broadcast %cst_88 : f32 to vector<8x128xf32>
      %229 = arith.mulf %228, %227 : vector<8x128xf32>
      %230 = math.tanh %229 : vector<8x128xf32>
      %cst_89 = arith.constant 1.000000e+00 : f32
      %231 = vector.broadcast %cst_89 : f32 to vector<8x128xf32>
      %232 = arith.addf %230, %231 : vector<8x128xf32>
      %cst_90 = arith.constant 5.000000e-01 : f32
      %233 = vector.broadcast %cst_90 : f32 to vector<8x128xf32>
      %234 = arith.mulf %233, %232 : vector<8x128xf32>
      %235 = arith.mulf %224, %200 : vector<8x128xf32>
      %236 = arith.mulf %216, %226 : vector<8x128xf32>
      %237 = arith.addf %235, %236 : vector<8x128xf32>
      %238 = math.tanh %237 : vector<8x128xf32>
      %239 = arith.mulf %234, %238 : vector<8x128xf32>
      %c6_i32 = arith.constant 6 : i32
      %240 = arith.truncf %239 : vector<8x128xf32> to vector<8x128xbf16>
      %cst_91 = arith.constant dense<0.000000e+00> : vector<8x512xf32>
      %241 = tpu.matmul %240, %12, %cst_91 {dimension_numbers = #tpu.dot_dimension_numbers<[1], [0], [0], [1], [0, 0, 1, 1], [], []>} : vector<8x128xbf16>, vector<128x512xbf16>, vector<8x512xf32> -> vector<8x512xf32>
      %242 = arith.index_cast %c6_i32 : i32 to index
      %c0_92 = arith.constant 0 : index
      %c0_93 = arith.constant 0 : index
      %243 = vector.load %arg10[%242, %c0_92, %c0_93] : memref<8x8x512xf32, #tpu.memory_space<vmem>>, vector<1x8x512xf32>
      %244 = vector.shape_cast %243 : vector<1x8x512xf32> to vector<8x512xf32>
      %245 = arith.addf %244, %241 : vector<8x512xf32>
      %246 = vector.extract_strided_slice %245 {offsets = [0, 0], sizes = [8, 128], strides = [1, 1]} : vector<8x512xf32> to vector<8x128xf32>
      %cst_94 = arith.constant 5.000000e-01 : f32
      %247 = vector.broadcast %cst_94 : f32 to vector<8x128xf32>
      %248 = arith.mulf %247, %246 : vector<8x128xf32>
      %249 = math.tanh %248 : vector<8x128xf32>
      %cst_95 = arith.constant 1.000000e+00 : f32
      %250 = vector.broadcast %cst_95 : f32 to vector<8x128xf32>
      %251 = arith.addf %249, %250 : vector<8x128xf32>
      %cst_96 = arith.constant 5.000000e-01 : f32
      %252 = vector.broadcast %cst_96 : f32 to vector<8x128xf32>
      %253 = arith.mulf %252, %251 : vector<8x128xf32>
      %254 = vector.extract_strided_slice %245 {offsets = [0, 128], sizes = [8, 128], strides = [1, 1]} : vector<8x512xf32> to vector<8x128xf32>
      %cst_97 = arith.constant 5.000000e-01 : f32
      %255 = vector.broadcast %cst_97 : f32 to vector<8x128xf32>
      %256 = arith.mulf %255, %254 : vector<8x128xf32>
      %257 = math.tanh %256 : vector<8x128xf32>
      %cst_98 = arith.constant 1.000000e+00 : f32
      %258 = vector.broadcast %cst_98 : f32 to vector<8x128xf32>
      %259 = arith.addf %257, %258 : vector<8x128xf32>
      %cst_99 = arith.constant 5.000000e-01 : f32
      %260 = vector.broadcast %cst_99 : f32 to vector<8x128xf32>
      %261 = arith.mulf %260, %259 : vector<8x128xf32>
      %262 = vector.extract_strided_slice %245 {offsets = [0, 256], sizes = [8, 128], strides = [1, 1]} : vector<8x512xf32> to vector<8x128xf32>
      %263 = math.tanh %262 : vector<8x128xf32>
      %264 = vector.extract_strided_slice %245 {offsets = [0, 384], sizes = [8, 128], strides = [1, 1]} : vector<8x512xf32> to vector<8x128xf32>
      %cst_100 = arith.constant 5.000000e-01 : f32
      %265 = vector.broadcast %cst_100 : f32 to vector<8x128xf32>
      %266 = arith.mulf %265, %264 : vector<8x128xf32>
      %267 = math.tanh %266 : vector<8x128xf32>
      %cst_101 = arith.constant 1.000000e+00 : f32
      %268 = vector.broadcast %cst_101 : f32 to vector<8x128xf32>
      %269 = arith.addf %267, %268 : vector<8x128xf32>
      %cst_102 = arith.constant 5.000000e-01 : f32
      %270 = vector.broadcast %cst_102 : f32 to vector<8x128xf32>
      %271 = arith.mulf %270, %269 : vector<8x128xf32>
      %272 = arith.mulf %261, %237 : vector<8x128xf32>
      %273 = arith.mulf %253, %263 : vector<8x128xf32>
      %274 = arith.addf %272, %273 : vector<8x128xf32>
      %275 = math.tanh %274 : vector<8x128xf32>
      %276 = arith.mulf %271, %275 : vector<8x128xf32>
      %c7_i32 = arith.constant 7 : i32
      %277 = arith.truncf %276 : vector<8x128xf32> to vector<8x128xbf16>
      %cst_103 = arith.constant dense<0.000000e+00> : vector<8x512xf32>
      %278 = tpu.matmul %277, %12, %cst_103 {dimension_numbers = #tpu.dot_dimension_numbers<[1], [0], [0], [1], [0, 0, 1, 1], [], []>} : vector<8x128xbf16>, vector<128x512xbf16>, vector<8x512xf32> -> vector<8x512xf32>
      %279 = arith.index_cast %c7_i32 : i32 to index
      %c0_104 = arith.constant 0 : index
      %c0_105 = arith.constant 0 : index
      %280 = vector.load %arg10[%279, %c0_104, %c0_105] : memref<8x8x512xf32, #tpu.memory_space<vmem>>, vector<1x8x512xf32>
      %281 = vector.shape_cast %280 : vector<1x8x512xf32> to vector<8x512xf32>
      %282 = arith.addf %281, %278 : vector<8x512xf32>
      %283 = vector.extract_strided_slice %282 {offsets = [0, 0], sizes = [8, 128], strides = [1, 1]} : vector<8x512xf32> to vector<8x128xf32>
      %cst_106 = arith.constant 5.000000e-01 : f32
      %284 = vector.broadcast %cst_106 : f32 to vector<8x128xf32>
      %285 = arith.mulf %284, %283 : vector<8x128xf32>
      %286 = math.tanh %285 : vector<8x128xf32>
      %cst_107 = arith.constant 1.000000e+00 : f32
      %287 = vector.broadcast %cst_107 : f32 to vector<8x128xf32>
      %288 = arith.addf %286, %287 : vector<8x128xf32>
      %cst_108 = arith.constant 5.000000e-01 : f32
      %289 = vector.broadcast %cst_108 : f32 to vector<8x128xf32>
      %290 = arith.mulf %289, %288 : vector<8x128xf32>
      %291 = vector.extract_strided_slice %282 {offsets = [0, 128], sizes = [8, 128], strides = [1, 1]} : vector<8x512xf32> to vector<8x128xf32>
      %cst_109 = arith.constant 5.000000e-01 : f32
      %292 = vector.broadcast %cst_109 : f32 to vector<8x128xf32>
      %293 = arith.mulf %292, %291 : vector<8x128xf32>
      %294 = math.tanh %293 : vector<8x128xf32>
      %cst_110 = arith.constant 1.000000e+00 : f32
      %295 = vector.broadcast %cst_110 : f32 to vector<8x128xf32>
      %296 = arith.addf %294, %295 : vector<8x128xf32>
      %cst_111 = arith.constant 5.000000e-01 : f32
      %297 = vector.broadcast %cst_111 : f32 to vector<8x128xf32>
      %298 = arith.mulf %297, %296 : vector<8x128xf32>
      %299 = vector.extract_strided_slice %282 {offsets = [0, 256], sizes = [8, 128], strides = [1, 1]} : vector<8x512xf32> to vector<8x128xf32>
      %300 = math.tanh %299 : vector<8x128xf32>
      %301 = vector.extract_strided_slice %282 {offsets = [0, 384], sizes = [8, 128], strides = [1, 1]} : vector<8x512xf32> to vector<8x128xf32>
      %cst_112 = arith.constant 5.000000e-01 : f32
      %302 = vector.broadcast %cst_112 : f32 to vector<8x128xf32>
      %303 = arith.mulf %302, %301 : vector<8x128xf32>
      %304 = math.tanh %303 : vector<8x128xf32>
      %cst_113 = arith.constant 1.000000e+00 : f32
      %305 = vector.broadcast %cst_113 : f32 to vector<8x128xf32>
      %306 = arith.addf %304, %305 : vector<8x128xf32>
      %cst_114 = arith.constant 5.000000e-01 : f32
      %307 = vector.broadcast %cst_114 : f32 to vector<8x128xf32>
      %308 = arith.mulf %307, %306 : vector<8x128xf32>
      %309 = arith.mulf %298, %274 : vector<8x128xf32>
      %310 = arith.mulf %290, %300 : vector<8x128xf32>
      %311 = arith.addf %309, %310 : vector<8x128xf32>
      %312 = math.tanh %311 : vector<8x128xf32>
      %313 = arith.mulf %308, %312 : vector<8x128xf32>
      %c8_i32 = arith.constant 8 : i32
      %c0_115 = arith.constant 0 : index
      %c0_116 = arith.constant 0 : index
      %314 = vector.load %arg8[%c0_115, %c0_116] : memref<8x128xf32, #tpu.memory_space<vmem>>, vector<8x128xf32>
      tpu.vector_store %arg8[%c0_115, %c0_116], %313 {strides = array<i32>} : memref<8x128xf32, #tpu.memory_space<vmem>>, vector<8x128xf32>,
      %c0_117 = arith.constant 0 : index
      %c0_118 = arith.constant 0 : index
      %315 = vector.load %arg9[%c0_117, %c0_118] : memref<8x128xf32, #tpu.memory_space<vmem>>, vector<8x128xf32>
      tpu.vector_store %arg9[%c0_117, %c0_118], %311 {strides = array<i32>} : memref<8x128xf32, #tpu.memory_space<vmem>>, vector<8x128xf32>,
      %316 = arith.truncf %313 : vector<8x128xf32> to vector<8x128xbf16>
      %c0_119 = arith.constant 0 : index
      %c0_120 = arith.constant 0 : index
      %317 = vector.load %arg5[%c0_119, %c0_120] : memref<128x128xbf16, #tpu.memory_space<vmem>>, vector<128x128xbf16>
      %cst_121 = arith.constant dense<0.000000e+00> : vector<8x128xf32>
      %318 = tpu.matmul %316, %317, %cst_121 {dimension_numbers = #tpu.dot_dimension_numbers<[1], [0], [0], [1], [0, 0, 1, 1], [], []>} : vector<8x128xbf16>, vector<128x128xbf16>, vector<8x128xf32> -> vector<8x128xf32>
      %c0_122 = arith.constant 0 : index
      %c0_123 = arith.constant 0 : index
      %319 = vector.load %arg6[%c0_122, %c0_123] : memref<1x128xf32, #tpu.memory_space<vmem>>, vector<1x128xf32>
      %320 = vector.broadcast %319 : vector<1x128xf32> to vector<8x128xf32>
      %321 = arith.addf %318, %320 : vector<8x128xf32>
      %c0_124 = arith.constant 0 : index
      %c0_125 = arith.constant 0 : index
      %322 = vector.load %arg7[%c0_124, %c0_125] : memref<8x128xf32, #tpu.memory_space<vmem>>, vector<8x128xf32>
      tpu.vector_store %arg7[%c0_124, %c0_125], %321 {strides = array<i32>} : memref<8x128xf32, #tpu.memory_space<vmem>>, vector<8x128xf32>,
    } else {
    }
    return
  }
  func.func @transform_0(%arg0: i32) -> (i32, i32, i32) {
    %c0_i32 = arith.constant 0 : i32
    %c0_i32_0 = arith.constant 0 : i32
    %c0_i32_1 = arith.constant 0 : i32
    return %arg0, %c0_i32, %c0_i32_0 : i32, i32, i32
  }
  func.func @transform_1(%arg0: i32) -> (i32, i32) {
    %c0_i32 = arith.constant 0 : i32
    %c0_i32_0 = arith.constant 0 : i32
    %c0_i32_1 = arith.constant 0 : i32
    return %c0_i32, %c0_i32_0 : i32, i32
  }
  func.func @transform_2(%arg0: i32) -> (i32, i32) {
    %c0_i32 = arith.constant 0 : i32
    %c0_i32_0 = arith.constant 0 : i32
    %c0_i32_1 = arith.constant 0 : i32
    return %c0_i32, %c0_i32_0 : i32, i32
  }
  func.func @transform_3(%arg0: i32) -> (i32, i32) {
    %c0_i32 = arith.constant 0 : i32
    %c0_i32_0 = arith.constant 0 : i32
    %c0_i32_1 = arith.constant 0 : i32
    return %c0_i32, %c0_i32_0 : i32, i32
  }
  func.func @transform_4(%arg0: i32) -> (i32, i32) {
    %c0_i32 = arith.constant 0 : i32
    %c0_i32_0 = arith.constant 0 : i32
    %c0_i32_1 = arith.constant 0 : i32
    return %c0_i32, %c0_i32_0 : i32, i32
  }
  func.func @transform_5(%arg0: i32) -> (i32, i32) {
    %c0_i32 = arith.constant 0 : i32
    %c0_i32_0 = arith.constant 0 : i32
    %c0_i32_1 = arith.constant 0 : i32
    return %c0_i32, %c0_i32_0 : i32, i32
  }
  func.func @transform_6(%arg0: i32) -> (i32, i32) {
    %c0_i32 = arith.constant 0 : i32
    %c0_i32_0 = arith.constant 0 : i32
    %c0_i32_1 = arith.constant 0 : i32
    return %c0_i32, %c0_i32_0 : i32, i32
  }
}

module attributes {stable_mosaic.version = 11 : i64} {
  func.func @lstm_fc_kernel(%arg0: i32, %arg1: memref<8x8x128xbf16, #tpu.memory_space<vmem>>, %arg2: memref<128x512xbf16, #tpu.memory_space<vmem>>, %arg3: memref<128x512xbf16, #tpu.memory_space<vmem>>, %arg4: memref<1x512xf32, #tpu.memory_space<vmem>>, %arg5: memref<128x128xbf16, #tpu.memory_space<vmem>>, %arg6: memref<1x128xf32, #tpu.memory_space<vmem>>, %arg7: memref<8x128xf32, #tpu.memory_space<vmem>>, %arg8: memref<8x128xf32, #tpu.memory_space<vmem>>, %arg9: memref<8x128xf32, #tpu.memory_space<vmem>>, %arg10: memref<8x8x512xf32, #tpu.memory_space<vmem>>) attributes {dimension_semantics = [#tpu.dimension_semantics<arbitrary>], iteration_bounds = array<i64: 1>, scalar_prefetch = 0 : i64, scratch_operands = 3 : i64, tpu.core_type = #tpu.core_type<tc>, window_params = [{transform_indices = @transform_0, window_bounds = array<i64: 8, 8, 128>}, {pipeline_mode = #tpu.pipeline_mode<synchronous>, transform_indices = @transform_1, window_bounds = array<i64: 128, 512>}, {pipeline_mode = #tpu.pipeline_mode<synchronous>, transform_indices = @transform_2, window_bounds = array<i64: 128, 512>}, {pipeline_mode = #tpu.pipeline_mode<synchronous>, transform_indices = @transform_3, window_bounds = array<i64: 1, 512>}, {pipeline_mode = #tpu.pipeline_mode<synchronous>, transform_indices = @transform_4, window_bounds = array<i64: 128, 128>}, {pipeline_mode = #tpu.pipeline_mode<synchronous>, transform_indices = @transform_5, window_bounds = array<i64: 1, 128>}, {pipeline_mode = #tpu.pipeline_mode<synchronous>, transform_indices = @transform_6, window_bounds = array<i64: 8, 128>}]} {
    %c0_i32 = arith.constant 0 : i32
    %0 = arith.cmpi eq, %arg0, %c0_i32 : i32
    %1 = arith.extui %0 : i1 to i32
    %c0_i32_0 = arith.constant 0 : i32
    %2 = arith.cmpi ne, %1, %c0_i32_0 : i32
    scf.if %2 {
      %cst_18 = arith.constant 0.000000e+00 : f32
      %18 = vector.broadcast %cst_18 : f32 to vector<8x128xf32>
      %c0_19 = arith.constant 0 : index
      %c0_20 = arith.constant 0 : index
      %19 = vector.load %arg8[%c0_19, %c0_20] : memref<8x128xf32, #tpu.memory_space<vmem>>, vector<8x128xf32>
      tpu.vector_store %arg8[%c0_19, %c0_20], %18 {strides = array<i32>} : memref<8x128xf32, #tpu.memory_space<vmem>>, vector<8x128xf32>,
      %cst_21 = arith.constant 0.000000e+00 : f32
      %20 = vector.broadcast %cst_21 : f32 to vector<8x128xf32>
      %c0_22 = arith.constant 0 : index
      %c0_23 = arith.constant 0 : index
      %21 = vector.load %arg9[%c0_22, %c0_23] : memref<8x128xf32, #tpu.memory_space<vmem>>, vector<8x128xf32>
      tpu.vector_store %arg9[%c0_22, %c0_23], %20 {strides = array<i32>} : memref<8x128xf32, #tpu.memory_space<vmem>>, vector<8x128xf32>,
    } else {
    }
    %c0 = arith.constant 0 : index
    %c0_1 = arith.constant 0 : index
    %c0_2 = arith.constant 0 : index
    %3 = vector.load %arg1[%c0, %c0_1, %c0_2] : memref<8x8x128xbf16, #tpu.memory_space<vmem>>, vector<8x8x128xbf16>
    %4 = vector.shape_cast %3 : vector<8x8x128xbf16> to vector<64x128xbf16>
    %c0_3 = arith.constant 0 : index
    %c0_4 = arith.constant 0 : index
    %5 = vector.load %arg2[%c0_3, %c0_4] : memref<128x512xbf16, #tpu.memory_space<vmem>>, vector<128x512xbf16>
    %cst = arith.constant dense<0.000000e+00> : vector<64x512xf32>
    %6 = tpu.matmul %4, %5, %cst {dimension_numbers = #tpu.dot_dimension_numbers<[1], [0], [0], [1], [0, 0, 1, 1], [], []>} : vector<64x128xbf16>, vector<128x512xbf16>, vector<64x512xf32> -> vector<64x512xf32>
    %c0_5 = arith.constant 0 : index
    %c0_6 = arith.constant 0 : index
    %7 = vector.load %arg4[%c0_5, %c0_6] : memref<1x512xf32, #tpu.memory_space<vmem>>, vector<1x512xf32>
    %8 = vector.broadcast %7 : vector<1x512xf32> to vector<64x512xf32>
    %9 = arith.addf %6, %8 : vector<64x512xf32>
    %10 = vector.shape_cast %9 : vector<64x512xf32> to vector<8x8x512xf32>
    %c0_7 = arith.constant 0 : index
    %c0_8 = arith.constant 0 : index
    %c0_9 = arith.constant 0 : index
    %11 = vector.load %arg10[%c0_7, %c0_8, %c0_9] : memref<8x8x512xf32, #tpu.memory_space<vmem>>, vector<8x8x512xf32>
    tpu.vector_store %arg10[%c0_7, %c0_8, %c0_9], %10 {strides = array<i32>} : memref<8x8x512xf32, #tpu.memory_space<vmem>>, vector<8x8x512xf32>,
    %c0_10 = arith.constant 0 : index
    %c0_11 = arith.constant 0 : index
    %12 = vector.load %arg3[%c0_10, %c0_11] : memref<128x512xbf16, #tpu.memory_space<vmem>>, vector<128x512xbf16>
    %c0_12 = arith.constant 0 : index
    %c0_13 = arith.constant 0 : index
    %13 = vector.load %arg8[%c0_12, %c0_13] : memref<8x128xf32, #tpu.memory_space<vmem>>, vector<8x128xf32>
    %c0_14 = arith.constant 0 : index
    %c0_15 = arith.constant 0 : index
    %14 = vector.load %arg9[%c0_14, %c0_15] : memref<8x128xf32, #tpu.memory_space<vmem>>, vector<8x128xf32>
    %c0_i32_16 = arith.constant 0 : i32
    %15 = arith.cmpi eq, %arg0, %c0_i32_16 : i32
    %16 = arith.extui %15 : i1 to i32
    %c0_i32_17 = arith.constant 0 : i32
    %17 = arith.cmpi ne, %16, %c0_i32_17 : i32
    scf.if %17 {
      %c0_i32_18 = arith.constant 0 : i32
      %18 = arith.truncf %13 : vector<8x128xf32> to vector<8x128xbf16>
      %cst_19 = arith.constant dense<0.000000e+00> : vector<8x512xf32>
      %19 = tpu.matmul %18, %12, %cst_19 {dimension_numbers = #tpu.dot_dimension_numbers<[1], [0], [0], [1], [0, 0, 1, 1], [], []>} : vector<8x128xbf16>, vector<128x512xbf16>, vector<8x512xf32> -> vector<8x512xf32>
      %20 = arith.index_cast %c0_i32_18 : i32 to index
      %c0_20 = arith.constant 0 : index
      %c0_21 = arith.constant 0 : index
      %21 = vector.load %arg10[%20, %c0_20, %c0_21] : memref<8x8x512xf32, #tpu.memory_space<vmem>>, vector<1x8x512xf32>
      %22 = vector.shape_cast %21 : vector<1x8x512xf32> to vector<8x512xf32>
      %23 = arith.addf %22, %19 : vector<8x512xf32>
      %24 = vector.extract_strided_slice %23 {offsets = [0, 0], sizes = [8, 128], strides = [1, 1]} : vector<8x512xf32> to vector<8x128xf32>
      %cst_22 = arith.constant 5.000000e-01 : f32
      %25 = vector.broadcast %cst_22 : f32 to vector<8x128xf32>
      %26 = arith.mulf %25, %24 : vector<8x128xf32>
      %27 = math.tanh %26 : vector<8x128xf32>
      %cst_23 = arith.constant 1.000000e+00 : f32
      %28 = vector.broadcast %cst_23 : f32 to vector<8x128xf32>
      %29 = arith.addf %27, %28 : vector<8x128xf32>
      %cst_24 = arith.constant 5.000000e-01 : f32
      %30 = vector.broadcast %cst_24 : f32 to vector<8x128xf32>
      %31 = arith.mulf %30, %29 : vector<8x128xf32>
      %32 = vector.extract_strided_slice %23 {offsets = [0, 128], sizes = [8, 128], strides = [1, 1]} : vector<8x512xf32> to vector<8x128xf32>
      %cst_25 = arith.constant 5.000000e-01 : f32
      %33 = vector.broadcast %cst_25 : f32 to vector<8x128xf32>
      %34 = arith.mulf %33, %32 : vector<8x128xf32>
      %35 = math.tanh %34 : vector<8x128xf32>
      %cst_26 = arith.constant 1.000000e+00 : f32
      %36 = vector.broadcast %cst_26 : f32 to vector<8x128xf32>
      %37 = arith.addf %35, %36 : vector<8x128xf32>
      %cst_27 = arith.constant 5.000000e-01 : f32
      %38 = vector.broadcast %cst_27 : f32 to vector<8x128xf32>
      %39 = arith.mulf %38, %37 : vector<8x128xf32>
      %40 = vector.extract_strided_slice %23 {offsets = [0, 256], sizes = [8, 128], strides = [1, 1]} : vector<8x512xf32> to vector<8x128xf32>
      %41 = math.tanh %40 : vector<8x128xf32>
      %42 = vector.extract_strided_slice %23 {offsets = [0, 384], sizes = [8, 128], strides = [1, 1]} : vector<8x512xf32> to vector<8x128xf32>
      %cst_28 = arith.constant 5.000000e-01 : f32
      %43 = vector.broadcast %cst_28 : f32 to vector<8x128xf32>
      %44 = arith.mulf %43, %42 : vector<8x128xf32>
      %45 = math.tanh %44 : vector<8x128xf32>
      %cst_29 = arith.constant 1.000000e+00 : f32
      %46 = vector.broadcast %cst_29 : f32 to vector<8x128xf32>
      %47 = arith.addf %45, %46 : vector<8x128xf32>
      %cst_30 = arith.constant 5.000000e-01 : f32
      %48 = vector.broadcast %cst_30 : f32 to vector<8x128xf32>
      %49 = arith.mulf %48, %47 : vector<8x128xf32>
      %50 = arith.mulf %39, %14 : vector<8x128xf32>
      %51 = arith.mulf %31, %41 : vector<8x128xf32>
      %52 = arith.addf %50, %51 : vector<8x128xf32>
      %53 = math.tanh %52 : vector<8x128xf32>
      %54 = arith.mulf %49, %53 : vector<8x128xf32>
      %c1_i32 = arith.constant 1 : i32
      %55 = arith.truncf %54 : vector<8x128xf32> to vector<8x128xbf16>
      %cst_31 = arith.constant dense<0.000000e+00> : vector<8x512xf32>
      %56 = tpu.matmul %55, %12, %cst_31 {dimension_numbers = #tpu.dot_dimension_numbers<[1], [0], [0], [1], [0, 0, 1, 1], [], []>} : vector<8x128xbf16>, vector<128x512xbf16>, vector<8x512xf32> -> vector<8x512xf32>
      %57 = arith.index_cast %c1_i32 : i32 to index
      %c0_32 = arith.constant 0 : index
      %c0_33 = arith.constant 0 : index
      %58 = vector.load %arg10[%57, %c0_32, %c0_33] : memref<8x8x512xf32, #tpu.memory_space<vmem>>, vector<1x8x512xf32>
      %59 = vector.shape_cast %58 : vector<1x8x512xf32> to vector<8x512xf32>
      %60 = arith.addf %59, %56 : vector<8x512xf32>
      %61 = vector.extract_strided_slice %60 {offsets = [0, 0], sizes = [8, 128], strides = [1, 1]} : vector<8x512xf32> to vector<8x128xf32>
      %cst_34 = arith.constant 5.000000e-01 : f32
      %62 = vector.broadcast %cst_34 : f32 to vector<8x128xf32>
      %63 = arith.mulf %62, %61 : vector<8x128xf32>
      %64 = math.tanh %63 : vector<8x128xf32>
      %cst_35 = arith.constant 1.000000e+00 : f32
      %65 = vector.broadcast %cst_35 : f32 to vector<8x128xf32>
      %66 = arith.addf %64, %65 : vector<8x128xf32>
      %cst_36 = arith.constant 5.000000e-01 : f32
      %67 = vector.broadcast %cst_36 : f32 to vector<8x128xf32>
      %68 = arith.mulf %67, %66 : vector<8x128xf32>
      %69 = vector.extract_strided_slice %60 {offsets = [0, 128], sizes = [8, 128], strides = [1, 1]} : vector<8x512xf32> to vector<8x128xf32>
      %cst_37 = arith.constant 5.000000e-01 : f32
      %70 = vector.broadcast %cst_37 : f32 to vector<8x128xf32>
      %71 = arith.mulf %70, %69 : vector<8x128xf32>
      %72 = math.tanh %71 : vector<8x128xf32>
      %cst_38 = arith.constant 1.000000e+00 : f32
      %73 = vector.broadcast %cst_38 : f32 to vector<8x128xf32>
      %74 = arith.addf %72, %73 : vector<8x128xf32>
      %cst_39 = arith.constant 5.000000e-01 : f32
      %75 = vector.broadcast %cst_39 : f32 to vector<8x128xf32>
      %76 = arith.mulf %75, %74 : vector<8x128xf32>
      %77 = vector.extract_strided_slice %60 {offsets = [0, 256], sizes = [8, 128], strides = [1, 1]} : vector<8x512xf32> to vector<8x128xf32>
      %78 = math.tanh %77 : vector<8x128xf32>
      %79 = vector.extract_strided_slice %60 {offsets = [0, 384], sizes = [8, 128], strides = [1, 1]} : vector<8x512xf32> to vector<8x128xf32>
      %cst_40 = arith.constant 5.000000e-01 : f32
      %80 = vector.broadcast %cst_40 : f32 to vector<8x128xf32>
      %81 = arith.mulf %80, %79 : vector<8x128xf32>
      %82 = math.tanh %81 : vector<8x128xf32>
      %cst_41 = arith.constant 1.000000e+00 : f32
      %83 = vector.broadcast %cst_41 : f32 to vector<8x128xf32>
      %84 = arith.addf %82, %83 : vector<8x128xf32>
      %cst_42 = arith.constant 5.000000e-01 : f32
      %85 = vector.broadcast %cst_42 : f32 to vector<8x128xf32>
      %86 = arith.mulf %85, %84 : vector<8x128xf32>
      %87 = arith.mulf %76, %52 : vector<8x128xf32>
      %88 = arith.mulf %68, %78 : vector<8x128xf32>
      %89 = arith.addf %87, %88 : vector<8x128xf32>
      %90 = math.tanh %89 : vector<8x128xf32>
      %91 = arith.mulf %86, %90 : vector<8x128xf32>
      %c2_i32 = arith.constant 2 : i32
      %92 = arith.truncf %91 : vector<8x128xf32> to vector<8x128xbf16>
      %cst_43 = arith.constant dense<0.000000e+00> : vector<8x512xf32>
      %93 = tpu.matmul %92, %12, %cst_43 {dimension_numbers = #tpu.dot_dimension_numbers<[1], [0], [0], [1], [0, 0, 1, 1], [], []>} : vector<8x128xbf16>, vector<128x512xbf16>, vector<8x512xf32> -> vector<8x512xf32>
      %94 = arith.index_cast %c2_i32 : i32 to index
      %c0_44 = arith.constant 0 : index
      %c0_45 = arith.constant 0 : index
      %95 = vector.load %arg10[%94, %c0_44, %c0_45] : memref<8x8x512xf32, #tpu.memory_space<vmem>>, vector<1x8x512xf32>
      %96 = vector.shape_cast %95 : vector<1x8x512xf32> to vector<8x512xf32>
      %97 = arith.addf %96, %93 : vector<8x512xf32>
      %98 = vector.extract_strided_slice %97 {offsets = [0, 0], sizes = [8, 128], strides = [1, 1]} : vector<8x512xf32> to vector<8x128xf32>
      %cst_46 = arith.constant 5.000000e-01 : f32
      %99 = vector.broadcast %cst_46 : f32 to vector<8x128xf32>
      %100 = arith.mulf %99, %98 : vector<8x128xf32>
      %101 = math.tanh %100 : vector<8x128xf32>
      %cst_47 = arith.constant 1.000000e+00 : f32
      %102 = vector.broadcast %cst_47 : f32 to vector<8x128xf32>
      %103 = arith.addf %101, %102 : vector<8x128xf32>
      %cst_48 = arith.constant 5.000000e-01 : f32
      %104 = vector.broadcast %cst_48 : f32 to vector<8x128xf32>
      %105 = arith.mulf %104, %103 : vector<8x128xf32>
      %106 = vector.extract_strided_slice %97 {offsets = [0, 128], sizes = [8, 128], strides = [1, 1]} : vector<8x512xf32> to vector<8x128xf32>
      %cst_49 = arith.constant 5.000000e-01 : f32
      %107 = vector.broadcast %cst_49 : f32 to vector<8x128xf32>
      %108 = arith.mulf %107, %106 : vector<8x128xf32>
      %109 = math.tanh %108 : vector<8x128xf32>
      %cst_50 = arith.constant 1.000000e+00 : f32
      %110 = vector.broadcast %cst_50 : f32 to vector<8x128xf32>
      %111 = arith.addf %109, %110 : vector<8x128xf32>
      %cst_51 = arith.constant 5.000000e-01 : f32
      %112 = vector.broadcast %cst_51 : f32 to vector<8x128xf32>
      %113 = arith.mulf %112, %111 : vector<8x128xf32>
      %114 = vector.extract_strided_slice %97 {offsets = [0, 256], sizes = [8, 128], strides = [1, 1]} : vector<8x512xf32> to vector<8x128xf32>
      %115 = math.tanh %114 : vector<8x128xf32>
      %116 = vector.extract_strided_slice %97 {offsets = [0, 384], sizes = [8, 128], strides = [1, 1]} : vector<8x512xf32> to vector<8x128xf32>
      %cst_52 = arith.constant 5.000000e-01 : f32
      %117 = vector.broadcast %cst_52 : f32 to vector<8x128xf32>
      %118 = arith.mulf %117, %116 : vector<8x128xf32>
      %119 = math.tanh %118 : vector<8x128xf32>
      %cst_53 = arith.constant 1.000000e+00 : f32
      %120 = vector.broadcast %cst_53 : f32 to vector<8x128xf32>
      %121 = arith.addf %119, %120 : vector<8x128xf32>
      %cst_54 = arith.constant 5.000000e-01 : f32
      %122 = vector.broadcast %cst_54 : f32 to vector<8x128xf32>
      %123 = arith.mulf %122, %121 : vector<8x128xf32>
      %124 = arith.mulf %113, %89 : vector<8x128xf32>
      %125 = arith.mulf %105, %115 : vector<8x128xf32>
      %126 = arith.addf %124, %125 : vector<8x128xf32>
      %127 = math.tanh %126 : vector<8x128xf32>
      %128 = arith.mulf %123, %127 : vector<8x128xf32>
      %c3_i32 = arith.constant 3 : i32
      %129 = arith.truncf %128 : vector<8x128xf32> to vector<8x128xbf16>
      %cst_55 = arith.constant dense<0.000000e+00> : vector<8x512xf32>
      %130 = tpu.matmul %129, %12, %cst_55 {dimension_numbers = #tpu.dot_dimension_numbers<[1], [0], [0], [1], [0, 0, 1, 1], [], []>} : vector<8x128xbf16>, vector<128x512xbf16>, vector<8x512xf32> -> vector<8x512xf32>
      %131 = arith.index_cast %c3_i32 : i32 to index
      %c0_56 = arith.constant 0 : index
      %c0_57 = arith.constant 0 : index
      %132 = vector.load %arg10[%131, %c0_56, %c0_57] : memref<8x8x512xf32, #tpu.memory_space<vmem>>, vector<1x8x512xf32>
      %133 = vector.shape_cast %132 : vector<1x8x512xf32> to vector<8x512xf32>
      %134 = arith.addf %133, %130 : vector<8x512xf32>
      %135 = vector.extract_strided_slice %134 {offsets = [0, 0], sizes = [8, 128], strides = [1, 1]} : vector<8x512xf32> to vector<8x128xf32>
      %cst_58 = arith.constant 5.000000e-01 : f32
      %136 = vector.broadcast %cst_58 : f32 to vector<8x128xf32>
      %137 = arith.mulf %136, %135 : vector<8x128xf32>
      %138 = math.tanh %137 : vector<8x128xf32>
      %cst_59 = arith.constant 1.000000e+00 : f32
      %139 = vector.broadcast %cst_59 : f32 to vector<8x128xf32>
      %140 = arith.addf %138, %139 : vector<8x128xf32>
      %cst_60 = arith.constant 5.000000e-01 : f32
      %141 = vector.broadcast %cst_60 : f32 to vector<8x128xf32>
      %142 = arith.mulf %141, %140 : vector<8x128xf32>
      %143 = vector.extract_strided_slice %134 {offsets = [0, 128], sizes = [8, 128], strides = [1, 1]} : vector<8x512xf32> to vector<8x128xf32>
      %cst_61 = arith.constant 5.000000e-01 : f32
      %144 = vector.broadcast %cst_61 : f32 to vector<8x128xf32>
      %145 = arith.mulf %144, %143 : vector<8x128xf32>
      %146 = math.tanh %145 : vector<8x128xf32>
      %cst_62 = arith.constant 1.000000e+00 : f32
      %147 = vector.broadcast %cst_62 : f32 to vector<8x128xf32>
      %148 = arith.addf %146, %147 : vector<8x128xf32>
      %cst_63 = arith.constant 5.000000e-01 : f32
      %149 = vector.broadcast %cst_63 : f32 to vector<8x128xf32>
      %150 = arith.mulf %149, %148 : vector<8x128xf32>
      %151 = vector.extract_strided_slice %134 {offsets = [0, 256], sizes = [8, 128], strides = [1, 1]} : vector<8x512xf32> to vector<8x128xf32>
      %152 = math.tanh %151 : vector<8x128xf32>
      %153 = vector.extract_strided_slice %134 {offsets = [0, 384], sizes = [8, 128], strides = [1, 1]} : vector<8x512xf32> to vector<8x128xf32>
      %cst_64 = arith.constant 5.000000e-01 : f32
      %154 = vector.broadcast %cst_64 : f32 to vector<8x128xf32>
      %155 = arith.mulf %154, %153 : vector<8x128xf32>
      %156 = math.tanh %155 : vector<8x128xf32>
      %cst_65 = arith.constant 1.000000e+00 : f32
      %157 = vector.broadcast %cst_65 : f32 to vector<8x128xf32>
      %158 = arith.addf %156, %157 : vector<8x128xf32>
      %cst_66 = arith.constant 5.000000e-01 : f32
      %159 = vector.broadcast %cst_66 : f32 to vector<8x128xf32>
      %160 = arith.mulf %159, %158 : vector<8x128xf32>
      %161 = arith.mulf %150, %126 : vector<8x128xf32>
      %162 = arith.mulf %142, %152 : vector<8x128xf32>
      %163 = arith.addf %161, %162 : vector<8x128xf32>
      %164 = math.tanh %163 : vector<8x128xf32>
      %165 = arith.mulf %160, %164 : vector<8x128xf32>
      %c4_i32 = arith.constant 4 : i32
      %166 = arith.truncf %165 : vector<8x128xf32> to vector<8x128xbf16>
      %cst_67 = arith.constant dense<0.000000e+00> : vector<8x512xf32>
      %167 = tpu.matmul %166, %12, %cst_67 {dimension_numbers = #tpu.dot_dimension_numbers<[1], [0], [0], [1], [0, 0, 1, 1], [], []>} : vector<8x128xbf16>, vector<128x512xbf16>, vector<8x512xf32> -> vector<8x512xf32>
      %168 = arith.index_cast %c4_i32 : i32 to index
      %c0_68 = arith.constant 0 : index
      %c0_69 = arith.constant 0 : index
      %169 = vector.load %arg10[%168, %c0_68, %c0_69] : memref<8x8x512xf32, #tpu.memory_space<vmem>>, vector<1x8x512xf32>
      %170 = vector.shape_cast %169 : vector<1x8x512xf32> to vector<8x512xf32>
      %171 = arith.addf %170, %167 : vector<8x512xf32>
      %172 = vector.extract_strided_slice %171 {offsets = [0, 0], sizes = [8, 128], strides = [1, 1]} : vector<8x512xf32> to vector<8x128xf32>
      %cst_70 = arith.constant 5.000000e-01 : f32
      %173 = vector.broadcast %cst_70 : f32 to vector<8x128xf32>
      %174 = arith.mulf %173, %172 : vector<8x128xf32>
      %175 = math.tanh %174 : vector<8x128xf32>
      %cst_71 = arith.constant 1.000000e+00 : f32
      %176 = vector.broadcast %cst_71 : f32 to vector<8x128xf32>
      %177 = arith.addf %175, %176 : vector<8x128xf32>
      %cst_72 = arith.constant 5.000000e-01 : f32
      %178 = vector.broadcast %cst_72 : f32 to vector<8x128xf32>
      %179 = arith.mulf %178, %177 : vector<8x128xf32>
      %180 = vector.extract_strided_slice %171 {offsets = [0, 128], sizes = [8, 128], strides = [1, 1]} : vector<8x512xf32> to vector<8x128xf32>
      %cst_73 = arith.constant 5.000000e-01 : f32
      %181 = vector.broadcast %cst_73 : f32 to vector<8x128xf32>
      %182 = arith.mulf %181, %180 : vector<8x128xf32>
      %183 = math.tanh %182 : vector<8x128xf32>
      %cst_74 = arith.constant 1.000000e+00 : f32
      %184 = vector.broadcast %cst_74 : f32 to vector<8x128xf32>
      %185 = arith.addf %183, %184 : vector<8x128xf32>
      %cst_75 = arith.constant 5.000000e-01 : f32
      %186 = vector.broadcast %cst_75 : f32 to vector<8x128xf32>
      %187 = arith.mulf %186, %185 : vector<8x128xf32>
      %188 = vector.extract_strided_slice %171 {offsets = [0, 256], sizes = [8, 128], strides = [1, 1]} : vector<8x512xf32> to vector<8x128xf32>
      %189 = math.tanh %188 : vector<8x128xf32>
      %190 = vector.extract_strided_slice %171 {offsets = [0, 384], sizes = [8, 128], strides = [1, 1]} : vector<8x512xf32> to vector<8x128xf32>
      %cst_76 = arith.constant 5.000000e-01 : f32
      %191 = vector.broadcast %cst_76 : f32 to vector<8x128xf32>
      %192 = arith.mulf %191, %190 : vector<8x128xf32>
      %193 = math.tanh %192 : vector<8x128xf32>
      %cst_77 = arith.constant 1.000000e+00 : f32
      %194 = vector.broadcast %cst_77 : f32 to vector<8x128xf32>
      %195 = arith.addf %193, %194 : vector<8x128xf32>
      %cst_78 = arith.constant 5.000000e-01 : f32
      %196 = vector.broadcast %cst_78 : f32 to vector<8x128xf32>
      %197 = arith.mulf %196, %195 : vector<8x128xf32>
      %198 = arith.mulf %187, %163 : vector<8x128xf32>
      %199 = arith.mulf %179, %189 : vector<8x128xf32>
      %200 = arith.addf %198, %199 : vector<8x128xf32>
      %201 = math.tanh %200 : vector<8x128xf32>
      %202 = arith.mulf %197, %201 : vector<8x128xf32>
      %c5_i32 = arith.constant 5 : i32
      %203 = arith.truncf %202 : vector<8x128xf32> to vector<8x128xbf16>
      %cst_79 = arith.constant dense<0.000000e+00> : vector<8x512xf32>
      %204 = tpu.matmul %203, %12, %cst_79 {dimension_numbers = #tpu.dot_dimension_numbers<[1], [0], [0], [1], [0, 0, 1, 1], [], []>} : vector<8x128xbf16>, vector<128x512xbf16>, vector<8x512xf32> -> vector<8x512xf32>
      %205 = arith.index_cast %c5_i32 : i32 to index
      %c0_80 = arith.constant 0 : index
      %c0_81 = arith.constant 0 : index
      %206 = vector.load %arg10[%205, %c0_80, %c0_81] : memref<8x8x512xf32, #tpu.memory_space<vmem>>, vector<1x8x512xf32>
      %207 = vector.shape_cast %206 : vector<1x8x512xf32> to vector<8x512xf32>
      %208 = arith.addf %207, %204 : vector<8x512xf32>
      %209 = vector.extract_strided_slice %208 {offsets = [0, 0], sizes = [8, 128], strides = [1, 1]} : vector<8x512xf32> to vector<8x128xf32>
      %cst_82 = arith.constant 5.000000e-01 : f32
      %210 = vector.broadcast %cst_82 : f32 to vector<8x128xf32>
      %211 = arith.mulf %210, %209 : vector<8x128xf32>
      %212 = math.tanh %211 : vector<8x128xf32>
      %cst_83 = arith.constant 1.000000e+00 : f32
      %213 = vector.broadcast %cst_83 : f32 to vector<8x128xf32>
      %214 = arith.addf %212, %213 : vector<8x128xf32>
      %cst_84 = arith.constant 5.000000e-01 : f32
      %215 = vector.broadcast %cst_84 : f32 to vector<8x128xf32>
      %216 = arith.mulf %215, %214 : vector<8x128xf32>
      %217 = vector.extract_strided_slice %208 {offsets = [0, 128], sizes = [8, 128], strides = [1, 1]} : vector<8x512xf32> to vector<8x128xf32>
      %cst_85 = arith.constant 5.000000e-01 : f32
      %218 = vector.broadcast %cst_85 : f32 to vector<8x128xf32>
      %219 = arith.mulf %218, %217 : vector<8x128xf32>
      %220 = math.tanh %219 : vector<8x128xf32>
      %cst_86 = arith.constant 1.000000e+00 : f32
      %221 = vector.broadcast %cst_86 : f32 to vector<8x128xf32>
      %222 = arith.addf %220, %221 : vector<8x128xf32>
      %cst_87 = arith.constant 5.000000e-01 : f32
      %223 = vector.broadcast %cst_87 : f32 to vector<8x128xf32>
      %224 = arith.mulf %223, %222 : vector<8x128xf32>
      %225 = vector.extract_strided_slice %208 {offsets = [0, 256], sizes = [8, 128], strides = [1, 1]} : vector<8x512xf32> to vector<8x128xf32>
      %226 = math.tanh %225 : vector<8x128xf32>
      %227 = vector.extract_strided_slice %208 {offsets = [0, 384], sizes = [8, 128], strides = [1, 1]} : vector<8x512xf32> to vector<8x128xf32>
      %cst_88 = arith.constant 5.000000e-01 : f32
      %228 = vector.broadcast %cst_88 : f32 to vector<8x128xf32>
      %229 = arith.mulf %228, %227 : vector<8x128xf32>
      %230 = math.tanh %229 : vector<8x128xf32>
      %cst_89 = arith.constant 1.000000e+00 : f32
      %231 = vector.broadcast %cst_89 : f32 to vector<8x128xf32>
      %232 = arith.addf %230, %231 : vector<8x128xf32>
      %cst_90 = arith.constant 5.000000e-01 : f32
      %233 = vector.broadcast %cst_90 : f32 to vector<8x128xf32>
      %234 = arith.mulf %233, %232 : vector<8x128xf32>
      %235 = arith.mulf %224, %200 : vector<8x128xf32>
      %236 = arith.mulf %216, %226 : vector<8x128xf32>
      %237 = arith.addf %235, %236 : vector<8x128xf32>
      %238 = math.tanh %237 : vector<8x128xf32>
      %239 = arith.mulf %234, %238 : vector<8x128xf32>
      %c6_i32 = arith.constant 6 : i32
      %240 = arith.truncf %239 : vector<8x128xf32> to vector<8x128xbf16>
      %cst_91 = arith.constant dense<0.000000e+00> : vector<8x512xf32>
      %241 = tpu.matmul %240, %12, %cst_91 {dimension_numbers = #tpu.dot_dimension_numbers<[1], [0], [0], [1], [0, 0, 1, 1], [], []>} : vector<8x128xbf16>, vector<128x512xbf16>, vector<8x512xf32> -> vector<8x512xf32>
      %242 = arith.index_cast %c6_i32 : i32 to index
      %c0_92 = arith.constant 0 : index
      %c0_93 = arith.constant 0 : index
      %243 = vector.load %arg10[%242, %c0_92, %c0_93] : memref<8x8x512xf32, #tpu.memory_space<vmem>>, vector<1x8x512xf32>
      %244 = vector.shape_cast %243 : vector<1x8x512xf32> to vector<8x512xf32>
      %245 = arith.addf %244, %241 : vector<8x512xf32>
      %246 = vector.extract_strided_slice %245 {offsets = [0, 0], sizes = [8, 128], strides = [1, 1]} : vector<8x512xf32> to vector<8x128xf32>
      %cst_94 = arith.constant 5.000000e-01 : f32
      %247 = vector.broadcast %cst_94 : f32 to vector<8x128xf32>
      %248 = arith.mulf %247, %246 : vector<8x128xf32>
      %249 = math.tanh %248 : vector<8x128xf32>
      %cst_95 = arith.constant 1.000000e+00 : f32
      %250 = vector.broadcast %cst_95 : f32 to vector<8x128xf32>
      %251 = arith.addf %249, %250 : vector<8x128xf32>
      %cst_96 = arith.constant 5.000000e-01 : f32
      %252 = vector.broadcast %cst_96 : f32 to vector<8x128xf32>
      %253 = arith.mulf %252, %251 : vector<8x128xf32>
      %254 = vector.extract_strided_slice %245 {offsets = [0, 128], sizes = [8, 128], strides = [1, 1]} : vector<8x512xf32> to vector<8x128xf32>
      %cst_97 = arith.constant 5.000000e-01 : f32
      %255 = vector.broadcast %cst_97 : f32 to vector<8x128xf32>
      %256 = arith.mulf %255, %254 : vector<8x128xf32>
      %257 = math.tanh %256 : vector<8x128xf32>
      %cst_98 = arith.constant 1.000000e+00 : f32
      %258 = vector.broadcast %cst_98 : f32 to vector<8x128xf32>
      %259 = arith.addf %257, %258 : vector<8x128xf32>
      %cst_99 = arith.constant 5.000000e-01 : f32
      %260 = vector.broadcast %cst_99 : f32 to vector<8x128xf32>
      %261 = arith.mulf %260, %259 : vector<8x128xf32>
      %262 = vector.extract_strided_slice %245 {offsets = [0, 256], sizes = [8, 128], strides = [1, 1]} : vector<8x512xf32> to vector<8x128xf32>
      %263 = math.tanh %262 : vector<8x128xf32>
      %264 = vector.extract_strided_slice %245 {offsets = [0, 384], sizes = [8, 128], strides = [1, 1]} : vector<8x512xf32> to vector<8x128xf32>
      %cst_100 = arith.constant 5.000000e-01 : f32
      %265 = vector.broadcast %cst_100 : f32 to vector<8x128xf32>
      %266 = arith.mulf %265, %264 : vector<8x128xf32>
      %267 = math.tanh %266 : vector<8x128xf32>
      %cst_101 = arith.constant 1.000000e+00 : f32
      %268 = vector.broadcast %cst_101 : f32 to vector<8x128xf32>
      %269 = arith.addf %267, %268 : vector<8x128xf32>
      %cst_102 = arith.constant 5.000000e-01 : f32
      %270 = vector.broadcast %cst_102 : f32 to vector<8x128xf32>
      %271 = arith.mulf %270, %269 : vector<8x128xf32>
      %272 = arith.mulf %261, %237 : vector<8x128xf32>
      %273 = arith.mulf %253, %263 : vector<8x128xf32>
      %274 = arith.addf %272, %273 : vector<8x128xf32>
      %275 = math.tanh %274 : vector<8x128xf32>
      %276 = arith.mulf %271, %275 : vector<8x128xf32>
      %c7_i32 = arith.constant 7 : i32
      %277 = arith.truncf %276 : vector<8x128xf32> to vector<8x128xbf16>
      %cst_103 = arith.constant dense<0.000000e+00> : vector<8x512xf32>
      %278 = tpu.matmul %277, %12, %cst_103 {dimension_numbers = #tpu.dot_dimension_numbers<[1], [0], [0], [1], [0, 0, 1, 1], [], []>} : vector<8x128xbf16>, vector<128x512xbf16>, vector<8x512xf32> -> vector<8x512xf32>
      %279 = arith.index_cast %c7_i32 : i32 to index
      %c0_104 = arith.constant 0 : index
      %c0_105 = arith.constant 0 : index
      %280 = vector.load %arg10[%279, %c0_104, %c0_105] : memref<8x8x512xf32, #tpu.memory_space<vmem>>, vector<1x8x512xf32>
      %281 = vector.shape_cast %280 : vector<1x8x512xf32> to vector<8x512xf32>
      %282 = arith.addf %281, %278 : vector<8x512xf32>
      %283 = vector.extract_strided_slice %282 {offsets = [0, 0], sizes = [8, 128], strides = [1, 1]} : vector<8x512xf32> to vector<8x128xf32>
      %cst_106 = arith.constant 5.000000e-01 : f32
      %284 = vector.broadcast %cst_106 : f32 to vector<8x128xf32>
      %285 = arith.mulf %284, %283 : vector<8x128xf32>
      %286 = math.tanh %285 : vector<8x128xf32>
      %cst_107 = arith.constant 1.000000e+00 : f32
      %287 = vector.broadcast %cst_107 : f32 to vector<8x128xf32>
      %288 = arith.addf %286, %287 : vector<8x128xf32>
      %cst_108 = arith.constant 5.000000e-01 : f32
      %289 = vector.broadcast %cst_108 : f32 to vector<8x128xf32>
      %290 = arith.mulf %289, %288 : vector<8x128xf32>
      %291 = vector.extract_strided_slice %282 {offsets = [0, 128], sizes = [8, 128], strides = [1, 1]} : vector<8x512xf32> to vector<8x128xf32>
      %cst_109 = arith.constant 5.000000e-01 : f32
      %292 = vector.broadcast %cst_109 : f32 to vector<8x128xf32>
      %293 = arith.mulf %292, %291 : vector<8x128xf32>
      %294 = math.tanh %293 : vector<8x128xf32>
      %cst_110 = arith.constant 1.000000e+00 : f32
      %295 = vector.broadcast %cst_110 : f32 to vector<8x128xf32>
      %296 = arith.addf %294, %295 : vector<8x128xf32>
      %cst_111 = arith.constant 5.000000e-01 : f32
      %297 = vector.broadcast %cst_111 : f32 to vector<8x128xf32>
      %298 = arith.mulf %297, %296 : vector<8x128xf32>
      %299 = vector.extract_strided_slice %282 {offsets = [0, 256], sizes = [8, 128], strides = [1, 1]} : vector<8x512xf32> to vector<8x128xf32>
      %300 = math.tanh %299 : vector<8x128xf32>
      %301 = vector.extract_strided_slice %282 {offsets = [0, 384], sizes = [8, 128], strides = [1, 1]} : vector<8x512xf32> to vector<8x128xf32>
      %cst_112 = arith.constant 5.000000e-01 : f32
      %302 = vector.broadcast %cst_112 : f32 to vector<8x128xf32>
      %303 = arith.mulf %302, %301 : vector<8x128xf32>
      %304 = math.tanh %303 : vector<8x128xf32>
      %cst_113 = arith.constant 1.000000e+00 : f32
      %305 = vector.broadcast %cst_113 : f32 to vector<8x128xf32>
      %306 = arith.addf %304, %305 : vector<8x128xf32>
      %cst_114 = arith.constant 5.000000e-01 : f32
      %307 = vector.broadcast %cst_114 : f32 to vector<8x128xf32>
      %308 = arith.mulf %307, %306 : vector<8x128xf32>
      %309 = arith.mulf %298, %274 : vector<8x128xf32>
      %310 = arith.mulf %290, %300 : vector<8x128xf32>
      %311 = arith.addf %309, %310 : vector<8x128xf32>
      %312 = math.tanh %311 : vector<8x128xf32>
      %313 = arith.mulf %308, %312 : vector<8x128xf32>
      %c8_i32 = arith.constant 8 : i32
      %c0_115 = arith.constant 0 : index
      %c0_116 = arith.constant 0 : index
      %314 = vector.load %arg8[%c0_115, %c0_116] : memref<8x128xf32, #tpu.memory_space<vmem>>, vector<8x128xf32>
      tpu.vector_store %arg8[%c0_115, %c0_116], %313 {strides = array<i32>} : memref<8x128xf32, #tpu.memory_space<vmem>>, vector<8x128xf32>,
      %c0_117 = arith.constant 0 : index
      %c0_118 = arith.constant 0 : index
      %315 = vector.load %arg9[%c0_117, %c0_118] : memref<8x128xf32, #tpu.memory_space<vmem>>, vector<8x128xf32>
      tpu.vector_store %arg9[%c0_117, %c0_118], %311 {strides = array<i32>} : memref<8x128xf32, #tpu.memory_space<vmem>>, vector<8x128xf32>,
      %316 = arith.truncf %313 : vector<8x128xf32> to vector<8x128xbf16>
      %c0_119 = arith.constant 0 : index
      %c0_120 = arith.constant 0 : index
      %317 = vector.load %arg5[%c0_119, %c0_120] : memref<128x128xbf16, #tpu.memory_space<vmem>>, vector<128x128xbf16>
      %cst_121 = arith.constant dense<0.000000e+00> : vector<8x128xf32>
      %318 = tpu.matmul %316, %317, %cst_121 {dimension_numbers = #tpu.dot_dimension_numbers<[1], [0], [0], [1], [0, 0, 1, 1], [], []>} : vector<8x128xbf16>, vector<128x128xbf16>, vector<8x128xf32> -> vector<8x128xf32>
      %c0_122 = arith.constant 0 : index
      %c0_123 = arith.constant 0 : index
      %319 = vector.load %arg6[%c0_122, %c0_123] : memref<1x128xf32, #tpu.memory_space<vmem>>, vector<1x128xf32>
      %320 = vector.broadcast %319 : vector<1x128xf32> to vector<8x128xf32>
      %321 = arith.addf %318, %320 : vector<8x128xf32>
      %c0_124 = arith.constant 0 : index
      %c0_125 = arith.constant 0 : index
      %322 = vector.load %arg7[%c0_124, %c0_125] : memref<8x128xf32, #tpu.memory_space<vmem>>, vector<8x128xf32>
      tpu.vector_store %arg7[%c0_124, %c0_125], %321 {strides = array<i32>} : memref<8x128xf32, #tpu.memory_space<vmem>>, vector<8x128xf32>,
    } else {
    }
    return
  }
  func.func @transform_0(%arg0: i32) -> (i32, i32, i32) {
    %c0_i32 = arith.constant 0 : i32
    %c0_i32_0 = arith.constant 0 : i32
    %c0_i32_1 = arith.constant 0 : i32
    return %arg0, %c0_i32, %c0_i32_0 : i32, i32, i32
  }
  func.func @transform_1(%arg0: i32) -> (i32, i32) {
    %c0_i32 = arith.constant 0 : i32
    %c0_i32_0 = arith.constant 0 : i32
    %c0_i32_1 = arith.constant 0 : i32
    return %c0_i32, %c0_i32_0 : i32, i32
  }
  func.func @transform_2(%arg0: i32) -> (i32, i32) {
    %c0_i32 = arith.constant 0 : i32
    %c0_i32_0 = arith.constant 0 : i32
    %c0_i32_1 = arith.constant 0 : i32
    return %c0_i32, %c0_i32_0 : i32, i32
  }
  func.func @transform_3(%arg0: i32) -> (i32, i32) {
    %c0_i32 = arith.constant 0 : i32
    %c0_i32_0 = arith.constant 0 : i32
    %c0_i32_1 = arith.constant 0 : i32
    return %c0_i32, %c0_i32_0 : i32, i32
  }
  func.func @transform_4(%arg0: i32) -> (i32, i32) {
    %c0_i32 = arith.constant 0 : i32
    %c0_i32_0 = arith.constant 0 : i32
    %c0_i32_1 = arith.constant 0 : i32
    return %c0_i32, %c0_i32_0 : i32, i32
  }
  func.func @transform_5(%arg0: i32) -> (i32, i32) {
    %c0_i32 = arith.constant 0 : i32
    %c0_i32_0 = arith.constant 0 : i32
    %c0_i32_1 = arith.constant 0 : i32
    return %c0_i32, %c0_i32_0 : i32, i32
  }
  func.func @transform_6(%arg0: i32) -> (i32, i32) {
    %c0_i32 = arith.constant 0 : i32
    %c0_i32_0 = arith.constant 0 : i32
    %c0_i32_1 = arith.constant 0 : i32
    return %c0_i32, %c0_i32_0 : i32, i32
  }
}

</mosaic_0001>

<bundles_post_ra>
// kernel: tpu_custom_call.1
= control target key start
LH: loop header
LB: loop body
LE: loop exit
PB: predicated region body
PF: predicated region fallthrough
CT: control target
= control target key end

     0   :  { %11 = vsyncpa [#allocation6], 0  ;;  %s2824_s0 = inlined_call_operand.hbm [shape: bf16[8,8,128], index: 0, kind: input, shape index: {}]   ;;  %s2825_s1 = inlined_call_operand.hbm [shape: bf16[128,512], index: 1, kind: input, shape index: {}]   ;;  %s2826_s2 = inlined_call_operand.hbm [shape: bf16[128,512], index: 2, kind: input, shape index: {}]   ;;  %s2827_s3 = inlined_call_operand.vmem [shape: f32[1,512], index: 3, kind: input, shape index: {}]   ;;  %s2828_s4 = inlined_call_operand.hbm [shape: bf16[128,128], index: 4, kind: input, shape index: {}]   ;;  %s2829_s5 = inlined_call_operand.vmem [shape: f32[1,128], index: 5, kind: input, shape index: {}]   ;;  %s2830_s6 = inlined_call_operand.hbm [shape: f32[8,128], index: 6, kind: output, shape index: {}]  }
   0x1   :  { %12 = vsyncpa [#allocation9], 0 }
   0x2   :  { %13 = vsyncpa [#allocation12], 0 }
   0x3   :  { %14 = vsyncpa [#allocation7], 0  ;;  %s2175_s21 = smov [#allocation8]   ;;  %s2057_s25 = scalar_lea.hbm %s2825_s1, 4096 }
   0x4   :  { %s32_s22 = sshll.u32 %s2175_s21, 4  ;;  %p2058_p0 = scmp.ne.s32.totalorder %s2825_s1, %s2057_s25  ;;  %s33_s22 = int_to_ptr.vmem [resolvable:$true] %s32_s22 }
   0x5   :  { %p2061_p1 = scmp.lt.u32.totalorder %s2057_s25, %s2825_s1 }
   0x7   :  { %p2063_p2 = pnand %p2061_p1, %p2058_p0 }
   0x9   :  { %2066 = shalt.err (!%p2063_p2)
}
   0xa   :  { %s2067_s30 = scalar_lea.vmem %s33_s22, 4096  ;;  %p2072_p4 = scmp.lt.s32.totalorder %s33_s22, %s33_s22 }
   0xb   :  { %p2068_p3 = scmp.ne.s32.totalorder %s33_s22, %s2067_s30  ;;  %p2073_p5 = scmp.lt.s32.totalorder %s2067_s30, %s2067_s30 }
   0xd   :  { %p2074_p6 = por %p2073_p5, %p2072_p4 }
   0xf   :  { %p2075_p7 = pnand %p2074_p6, %p2068_p3 }
  0x11   :  { %2078 = shalt.err (!%p2075_p7)
}
  0x12   :  { %s2176_s7 = smov 256   ;;  %s2177_s8 = smov 16  }
  0x13   :  { %38 = dma.hbm_to_vmem [thread:$0]  %s2825_s1, 4096, %s33_s22, [#allocation9], %s2176_s7, %s2176_s7, %s2177_s8  }
  0x14   :  { %s2178_s11 = smov [#allocation5]   ;;  %s2079_s15 = scalar_lea.hbm %s2824_s0, 512 }
  0x15   :  { %s20_s12 = sshll.u32 %s2178_s11, 4  ;;  %p2080_p8 = scmp.ne.s32.totalorder %s2824_s0, %s2079_s15  ;;  %s21_s12 = int_to_ptr.vmem [resolvable:$true] %s20_s12 }
  0x16   :  { %p2083_p9 = scmp.lt.u32.totalorder %s2079_s15, %s2824_s0 }
  0x18   :  { %p2085_p10 = pnand %p2083_p9, %p2080_p8 }
  0x1a   :  { %2088 = shalt.err (!%p2085_p10)
}
  0x1b   :  { %s2089_s20 = scalar_lea.vmem %s21_s12, 512  ;;  %p2094_p12 = scmp.lt.s32.totalorder %s21_s12, %s21_s12 }
  0x1c   :  { %p2090_p11 = scmp.ne.s32.totalorder %s21_s12, %s2089_s20  ;;  %p2095_p13 = scmp.lt.s32.totalorder %s2089_s20, %s2089_s20 }
  0x1e   :  { %p2096_p0 = por %p2095_p13, %p2094_p12 }
  0x20   :  { %p2097_p1 = pnand %p2096_p0, %p2090_p11 }
  0x22   :  { %2100 = shalt.err (!%p2097_p1)
}
  0x23   :  { %s2179_s1 = smov 64   ;;  %s2180_s21 = smov 4  }
  0x24   :  { %26 = dma.hbm_to_vmem [thread:$0]  %s2824_s0, 512, %s21_s12, [#allocation6], %s2179_s1, %s2179_s1, %s2180_s21  }
  0x25   :  { %s2181_s24 = smov [#allocation10]   ;;  %s2182_s26 = smov [#allocation11]  }
  0x26   :  { %s44_s25 = sshll.u32 %s2181_s24, 4  ;;  %s58_s27 = sshll.u32 %s2182_s26, 4  ;;  %s45_s25 = int_to_ptr.vmem [resolvable:$true] %s44_s25  ;;  %s2253_s27 = int_to_ptr.vmem [resolvable:$true] %s58_s27 }
  0x27   :  { %s2101_s30 = scalar_lea.hbm %s2826_s2, 4096 }
  0x28   :  { %p2102_p2 = scmp.ne.s32.totalorder %s2826_s2, %s2101_s30  ;;  %p2105_p3 = scmp.lt.u32.totalorder %s2101_s30, %s2826_s2 }
  0x2a   :  { %p2107_p4 = pnand %p2105_p3, %p2102_p2 }
  0x2c   :  { %2110 = shalt.err (!%p2107_p4)
}
  0x2d   :  { %s2111_s0 = scalar_lea.vmem %s45_s25, 4096  ;;  %p2116_p6 = scmp.lt.s32.totalorder %s45_s25, %s45_s25 }
  0x2e   :  { %p2112_p5 = scmp.ne.s32.totalorder %s45_s25, %s2111_s0  ;;  %p2117_p7 = scmp.lt.s32.totalorder %s2111_s0, %s2111_s0 }
  0x30   :  { %p2118_p8 = por %p2117_p7, %p2116_p6 }
  0x32   :  { %p2119_p9 = pnand %p2118_p8, %p2112_p5 }
  0x34   :  { %2122 = shalt.err (!%p2119_p9)
}
  0x35   :  { %50 = dma.hbm_to_vmem [thread:$0]  %s2826_s2, 4096, %s45_s25, [#allocation9], %s2176_s7, %s2176_s7, %s2177_s8  }
  0x36   :  { %s2123_s17 = scalar_lea.hbm %s2828_s4, 1024 }
  0x37   :  { %p2124_p10 = scmp.ne.s32.totalorder %s2828_s4, %s2123_s17  ;;  %p2127_p11 = scmp.lt.u32.totalorder %s2123_s17, %s2828_s4 }
  0x39   :  { %p2129_p12 = pnand %p2127_p11, %p2124_p10 }
  0x3b   :  { %2132 = shalt.err (!%p2129_p12)
}
  0x3c   :  { %s2133_s23 = scalar_lea.vmem %s2253_s27, 1024  ;;  %p2138_p0 = scmp.lt.s32.totalorder %s2253_s27, %s2253_s27 }
  0x3d   :  { %p2134_p13 = scmp.ne.s32.totalorder %s2253_s27, %s2133_s23  ;;  %p2139_p1 = scmp.lt.s32.totalorder %s2133_s23, %s2133_s23 }
  0x3f   :  { %p2140_p2 = por %p2139_p1, %p2138_p0 }
  0x41   :  { %p2141_p3 = pnand %p2140_p2, %p2134_p13 }
  0x43   :  { %2144 = shalt.err (!%p2141_p3)
}
  0x44   :  { %64 = dma.hbm_to_vmem [thread:$0]  %s2828_s4, 1024, %s2253_s27, [#allocation12], %s2179_s1, %s2179_s1, %s2180_s21  }
  0x45   :  { %2167 = dma.done.wait [#allocation6], 512  }
  0x46   :  { %2168 = vsyncadd [#allocation6], 4294966784 }
  0x47   :  { %2169 = dma.done.wait [#allocation9], 8192  }
  0x48   :  { %2170 = vsyncadd [#allocation9], 4294959104 }
  0x49   :  { %2171 = dma.done.wait [#allocation12], 1024  }
  0x4a   :  { %2172 = vsyncadd [#allocation12], 4294966272  ;;  %v2831_v0 = vmov 0   ;;  %v1837_v1 = vld [vmem:[#allocation8 + $0x4] ss:$16 sps:$4 sm:$0xff]   ;;  %v1898_v44 = vld [vmem:[#allocation5 + $0x8] sm:$0xff]  }
  0x4b   :  { %364 = vmatprep.mubr.bf16.mxu0 %v2831_v0  ;;  %437 = vmatprep.mubr.bf16.mxu1 %v2831_v0  ;;  %v1839_v2 = vld [vmem:[#allocation8 + $0xc] ss:$16 sps:$4 sm:$0xff]   ;;  %v1841_v3 = vld [vmem:[#allocation8] ss:$16 sps:$4 sm:$0xff]   ;;  %v1842_v4 = vld [vmem:[#allocation8 + $0x8] ss:$16 sps:$4 sm:$0xff]  }
  0x4c   :  { %332 = vmatprep.subr.bf16.mxu0 %v1837_v1  ;;  %405 = vmatprep.subr.bf16.mxu1 %v1839_v2  ;;  %v1843_v5 = vld [vmem:[#allocation8 + $0x24] ss:$16 sps:$4 sm:$0xff]   ;;  %v1845_v6 = vld [vmem:[#allocation8 + $0x2c] ss:$16 sps:$4 sm:$0xff]   ;;  %v1847_v7 = vld [vmem:[#allocation8 + $0x20] ss:$16 sps:$4 sm:$0xff]  }
  0x4d   :  { %333 = vmatpush1.bf16.msra.mxu0 %v1841_v3  ;;  %406 = vmatpush1.bf16.msra.mxu1 %v1842_v4  ;;  %v1848_v8 = vld [vmem:[#allocation8 + $0x28] ss:$16 sps:$4 sm:$0xff]   ;;  %v1849_v9 = vld [vmem:[#allocation8 + $0x44] ss:$16 sps:$4 sm:$0xff]   ;;  %v1851_v10 = vld [vmem:[#allocation8 + $0x4c] ss:$16 sps:$4 sm:$0xff]  }
  0x4e   :  { %334 = vmatprep.subr.bf16.mxu0 %v1843_v5  ;;  %407 = vmatprep.subr.bf16.mxu1 %v1845_v6  ;;  %v1853_v11 = vld [vmem:[#allocation8 + $0x40] ss:$16 sps:$4 sm:$0xff]   ;;  %v1854_v12 = vld [vmem:[#allocation8 + $0x48] ss:$16 sps:$4 sm:$0xff]   ;;  %v1855_v13 = vld [vmem:[#allocation8 + $0x64] ss:$16 sps:$4 sm:$0xff]  }
  0x4f   :  { %v1857_v14 = vld [vmem:[#allocation8 + $0x6c] ss:$16 sps:$4 sm:$0xff]   ;;  %v1859_v15 = vld [vmem:[#allocation8 + $0x60] ss:$16 sps:$4 sm:$0xff]   ;;  %v1860_v16 = vld [vmem:[#allocation8 + $0x68] ss:$16 sps:$4 sm:$0xff]  }
  0x50   :  { %v1861_v17 = vld [vmem:[#allocation8 + $0x84] ss:$16 sps:$4 sm:$0xff]   ;;  %v1863_v18 = vld [vmem:[#allocation8 + $0x8c] ss:$16 sps:$4 sm:$0xff]   ;;  %v1865_v19 = vld [vmem:[#allocation8 + $0x80] ss:$16 sps:$4 sm:$0xff]  }
  0x51   :  { %335 = vmatpush1.bf16.msra.mxu0 %v1847_v7  ;;  %408 = vmatpush1.bf16.msra.mxu1 %v1848_v8  ;;  %v1866_v20 = vld [vmem:[#allocation8 + $0x88] ss:$16 sps:$4 sm:$0xff]   ;;  %v1867_v21 = vld [vmem:[#allocation8 + $0xa4] ss:$16 sps:$4 sm:$0xff]   ;;  %v1869_v22 = vld [vmem:[#allocation8 + $0xac] ss:$16 sps:$4 sm:$0xff]   ;;  %v128_v7 = vlaneseq }
  0x52   :  { %336 = vmatprep.subr.bf16.mxu0 %v1849_v9  ;;  %409 = vmatprep.subr.bf16.mxu1 %v1851_v10  ;;  %v1871_v23 = vld [vmem:[#allocation8 + $0xa0] ss:$16 sps:$4 sm:$0xff]   ;;  %v1872_v24 = vld [vmem:[#allocation8 + $0xa8] ss:$16 sps:$4 sm:$0xff]   ;;  %v1873_v25 = vld [vmem:[#allocation8 + $0xc4] ss:$16 sps:$4 sm:$0xff]  }
  0x53   :  { %v1875_v26 = vld [vmem:[#allocation8 + $0xcc] ss:$16 sps:$4 sm:$0xff]   ;;  %v1877_v27 = vld [vmem:[#allocation8 + $0xc0] ss:$16 sps:$4 sm:$0xff]   ;;  %v1878_v28 = vld [vmem:[#allocation8 + $0xc8] ss:$16 sps:$4 sm:$0xff]  }
  0x54   :  { %v1879_v29 = vld [vmem:[#allocation8 + $0xe4] ss:$16 sps:$4 sm:$0xff]   ;;  %v1881_v30 = vld [vmem:[#allocation8 + $0xec] ss:$16 sps:$4 sm:$0xff]   ;;  %v1883_v31 = vld [vmem:[#allocation8 + $0xe0] ss:$16 sps:$4 sm:$0xff]  }
  0x55   :  { %337 = vmatpush1.bf16.msra.mxu0 %v1853_v11  ;;  %410 = vmatpush1.bf16.msra.mxu1 %v1854_v12  ;;  %v1884_v32 = vld [vmem:[#allocation8 + $0xe8] ss:$16 sps:$4 sm:$0xff]   ;;  %v2292_v33 = vld [vmem:[#allocation10 + $0x4] ss:$16 sps:$4 sm:$0xff]   ;;  %v2294_v34 = vld [vmem:[#allocation10 + $0xc] ss:$16 sps:$4 sm:$0xff]  }
  0x56   :  { %338 = vmatprep.subr.bf16.mxu0 %v1855_v13  ;;  %411 = vmatprep.subr.bf16.mxu1 %v1857_v14  ;;  %v1885_v35 = vld [vmem:[#allocation5] sm:$0xff]   ;;  %v2298_v37 = vld [vmem:[#allocation10 + $0x8] ss:$16 sps:$4 sm:$0xff]   ;;  %v2304_v39 = vld [vmem:[#allocation10 + $0x2c] ss:$16 sps:$4 sm:$0xff]   ;;  %v2184_v6 = vmov 0.0|0.0  }
  0x57   :  { %v2296_v36 = vld [vmem:[#allocation10] ss:$16 sps:$4 sm:$0xff]   ;;  %v2302_v38 = vld [vmem:[#allocation10 + $0x24] ss:$16 sps:$4 sm:$0xff]   ;;  %v2310_v41 = vld [vmem:[#allocation10 + $0x28] ss:$16 sps:$4 sm:$0xff]  }
  0x58   :  { %v2306_v40 = vld [vmem:[#allocation10 + $0x20] ss:$16 sps:$4 sm:$0xff]   ;;  %v2314_v42 = vld [vmem:[#allocation10 + $0x44] ss:$16 sps:$4 sm:$0xff]   ;;  %v2316_v43 = vld [vmem:[#allocation10 + $0x4c] ss:$16 sps:$4 sm:$0xff]  }
  0x59   :  { %339 = vmatpush1.bf16.msra.mxu0 %v1859_v15  ;;  %412 = vmatpush1.bf16.msra.mxu1 %v1860_v16  ;;  %v2320_v45 = vld [vmem:[#allocation10 + $0x40] ss:$16 sps:$4 sm:$0xff]   ;;  %v2322_v46 = vld [vmem:[#allocation10 + $0x48] ss:$16 sps:$4 sm:$0xff]   ;;  %v2326_v47 = vld [vmem:[#allocation10 + $0x64] ss:$16 sps:$4 sm:$0xff]  }
  0x5a   :  { %340 = vmatprep.subr.bf16.mxu0 %v1861_v17  ;;  %413 = vmatprep.subr.bf16.mxu1 %v1863_v18  ;;  %v2330_v48 = vld [vmem:[#allocation10 + $0x6c] ss:$16 sps:$4 sm:$0xff]   ;;  %v2332_v49 = vld [vmem:[#allocation10 + $0x60] ss:$16 sps:$4 sm:$0xff]   ;;  %v2334_v50 = vld [vmem:[#allocation10 + $0x68] ss:$16 sps:$4 sm:$0xff]  }
  0x5b   :  { %v2338_v51 = vld [vmem:[#allocation10 + $0x84] ss:$16 sps:$4 sm:$0xff]   ;;  %v2342_v52 = vld [vmem:[#allocation10 + $0x8c] ss:$16 sps:$4 sm:$0xff]   ;;  %v2346_v54 = vld [vmem:[#allocation10 + $0x80] ss:$16 sps:$4 sm:$0xff]  }
  0x5c   :  { %v1911_v53 = vld [vmem:[#allocation5 + $0x10] sm:$0xff]   ;;  %v2348_v55 = vld [vmem:[#allocation10 + $0x88] ss:$16 sps:$4 sm:$0xff]   ;;  %v2352_v57 = vld [vmem:[#allocation10 + $0xac] ss:$16 sps:$4 sm:$0xff]   ;;  %v129_v8 = vshrl.u32 %v128_v7, 7 }
  0x5d   :  { %341 = vmatpush1.bf16.msra.mxu0 %v1865_v19  ;;  %414 = vmatpush1.bf16.msra.mxu1 %v1866_v20  ;;  %v2350_v56 = vld [vmem:[#allocation10 + $0xa4] ss:$16 sps:$4 sm:$0xff]   ;;  %v2360_v58 = vld [vmem:[#allocation10 + $0xa0] ss:$16 sps:$4 sm:$0xff]   ;;  %v2362_v59 = vld [vmem:[#allocation10 + $0xa8] ss:$16 sps:$4 sm:$0xff]  }
  0x5e   :  { %342 = vmatprep.subr.bf16.mxu0 %v1867_v21  ;;  %415 = vmatprep.subr.bf16.mxu1 %v1869_v22  ;;  %v2366_v60 = vld [vmem:[#allocation10 + $0xc4] ss:$16 sps:$4 sm:$0xff]   ;;  %v2368_v61 = vld [vmem:[#allocation10 + $0xcc] ss:$16 sps:$4 sm:$0xff]   ;;  %v2374_v63 = vld [vmem:[#allocation10 + $0xc0] ss:$16 sps:$4 sm:$0xff]  }
  0x5f   :  { %v1924_v62 = vld [vmem:[#allocation5 + $0x18] sm:$0xff]   ;;  %v2380_v2 = vld [vmem:[#allocation10 + $0xe4] ss:$16 sps:$4 sm:$0xff]   ;;  %v2386_v4 = vld [vmem:[#allocation10 + $0xe0] ss:$16 sps:$4 sm:$0xff]   ;;  %v138_v9 = vsub.s32 2, %v129_v8 }
  0x60   :  { %v2376_v1 = vld [vmem:[#allocation10 + $0xc8] ss:$16 sps:$4 sm:$0xff]   ;;  %v2382_v3 = vld [vmem:[#allocation10 + $0xec] ss:$16 sps:$4 sm:$0xff]   ;;  %v142_v10 = vsub.s32 3, %v129_v8  ;;  %v130_v11 = vsub.s32 0, %v129_v8 }
  0x61   :  { %343 = vmatpush1.bf16.msra.mxu0 %v1871_v23  ;;  %416 = vmatpush1.bf16.msra.mxu1 %v1872_v24  ;;  %v2388_v5 = vld [vmem:[#allocation10 + $0xe8] ss:$16 sps:$4 sm:$0xff]   ;;  %v126_v12 = vld [vmem:[%s2827_s3] sm:$0xf]  ;;  %v134_v13 = vsub.s32 1, %v129_v8  ;;  %vm2186_vm0 = vmmov 0  }
  0x62   :  { %344 = vmatprep.subr.bf16.mxu0 %v1873_v25  ;;  %417 = vmatprep.subr.bf16.mxu1 %v1875_v26  ;;  %v2435_v14 = vrot.slane %v126_v12, %v138_v9  ;;  %v2441_v17 = vrot.slane %v126_v12, %v142_v10  ;;  %v131_v18 = vrot.slane %v126_v12, %v130_v11  ;;  %s2187_s21 = smov [#allocation13]  }
  0x63   :  { %v135_v21 = vrot.slane %v126_v12, %v134_v13  ;;  %s1707_s24 = sshll.u32 %s2187_s21, 4  ;;  %s1708_s24 = int_to_ptr.vmem [resolvable:$true] %s1707_s24 }
  0x64   :  { %s2145_s25 = scalar_lea.vmem %s1708_s24, 128  ;;  %p2150_p5 = scmp.lt.s32.totalorder %s1708_s24, %s1708_s24 }
  0x65   :  { %345 = vmatpush1.bf16.msra.mxu0 %v1877_v27  ;;  %418 = vmatpush1.bf16.msra.mxu1 %v1878_v28  ;;  %p2146_p4 = scmp.ne.s32.totalorder %s1708_s24, %s2145_s25  ;;  %p2151_p6 = scmp.lt.s32.totalorder %s2145_s25, %s2145_s25 }
  0x66   :  { %346 = vmatprep.subr.bf16.mxu0 %v1879_v29  ;;  %419 = vmatprep.subr.bf16.mxu1 %v1881_v30 }
  0x67   :  { %p2152_p7 = por %p2151_p6, %p2150_p5 }
  0x69   :  { %347 = vmatpush1.bf16.msra.mxu0 %v1883_v31  ;;  %420 = vmatpush1.bf16.msra.mxu1 %v1884_v32  ;;  %p2153_p8 = pnand %p2152_p7, %p2146_p4 }
  0x6a   :  { %708 = vmatprep.subr.bf16.mxu0 %v2292_v33  ;;  %749 = vmatprep.subr.bf16.mxu1 %v2294_v34 }
  0x6c   :  { %365 = vmatmul.mubr.bf16.vlgmr.msra.gmra.mrb[0].mxu0 %v1885_v35  ;;  %438 = vmatmul.mubr.bf16.vlgmr.msra.gmra.mrb[0].mxu1 %v1885_v35 }
  0x6d   :  { %709 = vmatpush1.bf16.msra.mxu0 %v2296_v36  ;;  %750 = vmatpush1.bf16.msra.mxu1 %v2298_v37 }
  0x6e   :  { %710 = vmatprep.subr.bf16.mxu0 %v2302_v38  ;;  %751 = vmatprep.subr.bf16.mxu1 %v2304_v39 }
  0x6f   :  { %374 = vmatprep.mubr.bf16.mxu0 %v2831_v0  ;;  %447 = vmatprep.mubr.bf16.mxu1 %v2831_v0 }
  0x71   :  { %711 = vmatpush1.bf16.msra.mxu0 %v2306_v40  ;;  %752 = vmatpush1.bf16.msra.mxu1 %v2310_v41 }
  0x72   :  { %712 = vmatprep.subr.bf16.mxu0 %v2314_v42  ;;  %753 = vmatprep.subr.bf16.mxu1 %v2316_v43 }
  0x74   :  { %375 = vmatmul.mubr.bf16.gmra.mrb[4].mxu0 %v1898_v44  ;;  %448 = vmatmul.mubr.bf16.gmra.mrb[4].mxu1 %v1898_v44 }
  0x75   :  { %713 = vmatpush1.bf16.msra.mxu0 %v2320_v45  ;;  %754 = vmatpush1.bf16.msra.mxu1 %v2322_v46 }
  0x76   :  { %714 = vmatprep.subr.bf16.mxu0 %v2326_v47  ;;  %755 = vmatprep.subr.bf16.mxu1 %v2330_v48 }
  0x77   :  { %384 = vmatprep.mubr.bf16.mxu0 %v2831_v0  ;;  %457 = vmatprep.mubr.bf16.mxu1 %v2831_v0 }
  0x79   :  { %715 = vmatpush1.bf16.msra.mxu0 %v2332_v49  ;;  %756 = vmatpush1.bf16.msra.mxu1 %v2334_v50 }
  0x7a   :  { %716 = vmatprep.subr.bf16.mxu0 %v2338_v51  ;;  %757 = vmatprep.subr.bf16.mxu1 %v2342_v52 }
  0x7c   :  { %385 = vmatmul.mubr.bf16.gmra.mrb[8].mxu0 %v1911_v53  ;;  %458 = vmatmul.mubr.bf16.gmra.mrb[8].mxu1 %v1911_v53 }
  0x7d   :  { %717 = vmatpush1.bf16.msra.mxu0 %v2346_v54  ;;  %758 = vmatpush1.bf16.msra.mxu1 %v2348_v55 }
  0x7e   :  { %718 = vmatprep.subr.bf16.mxu0 %v2350_v56  ;;  %759 = vmatprep.subr.bf16.mxu1 %v2352_v57 }
  0x7f   :  { %394 = vmatprep.mubr.bf16.mxu0 %v2831_v0  ;;  %467 = vmatprep.mubr.bf16.mxu1 %v2831_v0 }
  0x81   :  { %719 = vmatpush1.bf16.msra.mxu0 %v2360_v58  ;;  %760 = vmatpush1.bf16.msra.mxu1 %v2362_v59 }
  0x82   :  { %720 = vmatprep.subr.bf16.mxu0 %v2366_v60  ;;  %761 = vmatprep.subr.bf16.mxu1 %v2368_v61 }
  0x84   :  { %395 = vmatmul.mubr.bf16.gmra.mrb[12].mxu0 %v1924_v62  ;;  %468 = vmatmul.mubr.bf16.gmra.mrb[12].mxu1 %v1924_v62 }
  0x85   :  { %721 = vmatpush1.bf16.msra.mxu0 %v2374_v63  ;;  %762 = vmatpush1.bf16.msra.mxu1 %v2376_v1 }
  0x86   :  { %722 = vmatprep.subr.bf16.mxu0 %v2380_v2  ;;  %763 = vmatprep.subr.bf16.mxu1 %v2382_v3 }
  0x87   :  { %740 = vmatprep.mubr.bf16.mxu0 %v2831_v0  ;;  %781 = vmatprep.mubr.bf16.mxu1 %v2831_v0 }
  0x89   :  { %723 = vmatpush1.bf16.msra.mxu0 %v2386_v4  ;;  %764 = vmatpush1.bf16.msra.mxu1 %v2388_v5 }
  0x8a   :  { %817 = vmatprep.subr.bf16.mxu0 %v2292_v33  ;;  %858 = vmatprep.subr.bf16.mxu1 %v2294_v34 }
  0x8c   :  { %741 = vmatmul.mubr.bf16.vlgmr.msra.gmra.mrb[16].mxu0 %v2184_v6  ;;  %782 = vmatmul.mubr.bf16.vlgmr.msra.gmra.mrb[16].mxu1 %v2184_v6 }
  0x8d   :  { %818 = vmatpush1.bf16.msra.mxu0 %v2296_v36  ;;  %859 = vmatpush1.bf16.msra.mxu1 %v2298_v37 }
  0x8e   :  { %819 = vmatprep.subr.bf16.mxu0 %v2302_v38  ;;  %860 = vmatprep.subr.bf16.mxu1 %v2304_v39 }
  0x8f   :  { %849 = vmatprep.mubr.bf16.mxu0 %v2831_v0  ;;  %890 = vmatprep.mubr.bf16.mxu1 %v2831_v0 }
  0x91   :  { %820 = vmatpush1.bf16.msra.mxu0 %v2306_v40  ;;  %861 = vmatpush1.bf16.msra.mxu1 %v2310_v41 }
  0x92   :  { %821 = vmatprep.subr.bf16.mxu0 %v2314_v42  ;;  %862 = vmatprep.subr.bf16.mxu1 %v2316_v43 }
  0x95   :  { %822 = vmatpush1.bf16.msra.mxu0 %v2320_v45  ;;  %863 = vmatpush1.bf16.msra.mxu1 %v2322_v46 }
  0x96   :  { %823 = vmatprep.subr.bf16.mxu0 %v2326_v47  ;;  %864 = vmatprep.subr.bf16.mxu1 %v2330_v48 }
  0x99   :  { %824 = vmatpush1.bf16.msra.mxu0 %v2332_v49  ;;  %865 = vmatpush1.bf16.msra.mxu1 %v2334_v50 }
  0x9a   :  { %825 = vmatprep.subr.bf16.mxu0 %v2338_v51  ;;  %866 = vmatprep.subr.bf16.mxu1 %v2342_v52 }
  0x9d   :  { %826 = vmatpush1.bf16.msra.mxu0 %v2346_v54  ;;  %867 = vmatpush1.bf16.msra.mxu1 %v2348_v55 }
  0x9e   :  { %827 = vmatprep.subr.bf16.mxu0 %v2350_v56  ;;  %868 = vmatprep.subr.bf16.mxu1 %v2352_v57 }
  0xa1   :  { %828 = vmatpush1.bf16.msra.mxu0 %v2360_v58  ;;  %869 = vmatpush1.bf16.msra.mxu1 %v2362_v59 }
  0xa2   :  { %829 = vmatprep.subr.bf16.mxu0 %v2366_v60  ;;  %870 = vmatprep.subr.bf16.mxu1 %v2368_v61 }
  0xa5   :  { %830 = vmatpush1.bf16.msra.mxu0 %v2374_v63  ;;  %871 = vmatpush1.bf16.msra.mxu1 %v2376_v1 }
  0xa6   :  { %831 = vmatprep.subr.bf16.mxu0 %v2380_v2  ;;  %872 = vmatprep.subr.bf16.mxu1 %v2382_v3 }
  0xa9   :  { %832 = vmatpush1.bf16.msra.mxu0 %v2386_v4  ;;  %873 = vmatpush1.bf16.msra.mxu1 %v2388_v5 }
  0xaa   :  { %927 = vmatprep.subr.bf16.mxu0 %v2292_v33  ;;  %968 = vmatprep.subr.bf16.mxu1 %v2294_v34 }
 0x13f   :  { %v2437_v15 = vpop.f32.mrb[0].mxu0  ;;  %v2439_v16 = vpop.f32.mrb[0].mxu1 }
 0x140   :  { %v368_v19 = vpop.f32.mrb[1].mxu0  ;;  %v441_v20 = vpop.f32.mrb[1].mxu1 }
 0x141   :  { %v370_v22 = vpop.f32.mrb[2].mxu0  ;;  %v443_v23 = vpop.f32.mrb[2].mxu1 }
 0x142   :  { %v2443_v24 = vadd.f32 %v370_v22, %v131_v18  ;;  %v372_v25 = vpop.f32.mrb[3].mxu0  ;;  %v2446_v26 = vadd.f32 %v443_v23, %v2435_v14  ;;  %v445_v27 = vpop.f32.mrb[3].mxu1 }
 0x143   :  { %v2448_v28 = vadd.f32 %v372_v25, %v135_v21  ;;  %v2451_v29 = vadd.f32 %v445_v27, %v2441_v17 }
 0x147   :  { %v376_v30 = vpop.f32.mrb[4].mxu0  ;;  %v449_v31 = vpop.f32.mrb[4].mxu1 }
 0x148   :  { %v2453_v32 = vadd.f32 %v376_v30, %v131_v18  ;;  %v378_v35 = vpop.f32.mrb[5].mxu0  ;;  %v2456_v44 = vadd.f32 %v449_v31, %v2435_v14  ;;  %v451_v53 = vpop.f32.mrb[5].mxu1 }
 0x149   :  { %v2458_v62 = vadd.f32 %v378_v35, %v135_v21  ;;  %v380_v6 = vpop.f32.mrb[6].mxu0  ;;  %v2461_v7 = vadd.f32 %v451_v53, %v2441_v17  ;;  %v453_v8 = vpop.f32.mrb[6].mxu1 }
 0x14a   :  { %v2463_v9 = vadd.f32 %v380_v6, %v131_v18  ;;  %v382_v10 = vpop.f32.mrb[7].mxu0  ;;  %v2466_v11 = vadd.f32 %v453_v8, %v2435_v14  ;;  %v455_v12 = vpop.f32.mrb[7].mxu1 }
 0x14b   :  { %2833 = vst [vmem:[#allocation18_spill] sm:$0xff] %v2461_v7  ;;  %v2468_v13 = vadd.f32 %v382_v10, %v135_v21  ;;  %v2471_v22 = vadd.f32 %v455_v12, %v2441_v17 }
 0x14c   :  { %2834 = vst [vmem:[#allocation19_spill] sm:$0xff] %v2463_v9  ;;  %2835 = vst [vmem:[#allocation20_spill] sm:$0xff] %v2466_v11 }
 0x14d   :  { %2836 = vst [vmem:[#allocation21_spill] sm:$0xff] %v2468_v13  ;;  %2837 = vst [vmem:[#allocation22_spill] sm:$0xff] %v2471_v22 }
 0x14f   :  { %v386_v23 = vpop.f32.mrb[8].mxu0  ;;  %v459_v25 = vpop.f32.mrb[8].mxu1 }
 0x150   :  { %v2473_v27 = vadd.f32 %v386_v23, %v131_v18  ;;  %v388_v30 = vpop.f32.mrb[9].mxu0  ;;  %v2476_v31 = vadd.f32 %v459_v25, %v2435_v14  ;;  %v461_v35 = vpop.f32.mrb[9].mxu1 }
 0x151   :  { %v2478_v53 = vadd.f32 %v388_v30, %v135_v21  ;;  %v390_v6 = vpop.f32.mrb[10].mxu0  ;;  %v2481_v8 = vadd.f32 %v461_v35, %v2441_v17  ;;  %v463_v10 = vpop.f32.mrb[10].mxu1 }
 0x152   :  { %2838 = vst [vmem:[#allocation23_spill] sm:$0xff] %v2473_v27  ;;  %2839 = vst [vmem:[#allocation24_spill] sm:$0xff] %v2476_v31  ;;  %v2483_v0 = vadd.f32 %v390_v6, %v131_v18  ;;  %v392_v12 = vpop.f32.mrb[11].mxu0  ;;  %v2486_v22 = vadd.f32 %v463_v10, %v2435_v14  ;;  %v465_v23 = vpop.f32.mrb[11].mxu1 }
 0x153   :  { %2840 = vst [vmem:[#allocation25_spill] sm:$0xff] %v2478_v53  ;;  %2841 = vst [vmem:[#allocation26_spill] sm:$0xff] %v2481_v8  ;;  %v2488_v27 = vadd.f32 %v392_v12, %v135_v21  ;;  %v2491_v25 = vadd.f32 %v465_v23, %v2441_v17 }
 0x154   :  { %2842 = vst [vmem:[#allocation27_spill] sm:$0xff] %v2483_v0  ;;  %2843 = vst [vmem:[#allocation28_spill] sm:$0xff] %v2486_v22 }
 0x155   :  { %2844 = vst [vmem:[#allocation29_spill] sm:$0xff] %v2488_v27  ;;  %2845 = vst [vmem:[#allocation30_spill] sm:$0xff] %v2491_v25 }
 0x157   :  { %v396_v31 = vpop.f32.mrb[12].mxu0  ;;  %v469_v30 = vpop.f32.mrb[12].mxu1 }
 0x158   :  { %v2493_v53 = vadd.f32 %v396_v31, %v131_v18  ;;  %v398_v13 = vpop.f32.mrb[13].mxu0  ;;  %v2496_v35 = vadd.f32 %v469_v30, %v2435_v14  ;;  %v471_v6 = vpop.f32.mrb[13].mxu1 }
 0x159   :  { %v2498_v0 = vadd.f32 %v398_v13, %v135_v21  ;;  %v400_v8 = vpop.f32.mrb[14].mxu0  ;;  %v2501_v10 = vadd.f32 %v471_v6, %v2441_v17  ;;  %v473_v12 = vpop.f32.mrb[14].mxu1  ;;  %v367_v13 = vadd.f32 %v2437_v15, %v131_v18  ;;  %v369_v6 = vadd.f32 %v368_v19, %v135_v21 }
 0x15a   :  { %2846 = vst [vmem:[#allocation31_spill] sm:$0xff] %v2493_v53  ;;  %2847 = vst [vmem:[#allocation32_spill] sm:$0xff] %v2496_v35  ;;  %v2503_v27 = vadd.f32 %v400_v8, %v131_v18  ;;  %v402_v23 = vpop.f32.mrb[15].mxu0  ;;  %v2506_v25 = vadd.f32 %v473_v12, %v2435_v14  ;;  %v475_v31 = vpop.f32.mrb[15].mxu1 }
 0x15b   :  { %2848 = vst [vmem:[#allocation33_spill] sm:$0xff] %v2498_v0  ;;  %2849 = vst [vmem:[#allocation34_spill] sm:$0xff] %v2501_v10  ;;  %v2508_v53 = vadd.f32 %v402_v23, %v135_v21  ;;  %v2511_v30 = vadd.f32 %v475_v31, %v2441_v17  ;;  %v440_v0 = vadd.f32 %v2439_v16, %v2435_v14 }
 0x15c   :  { %2850 = vst [vmem:[#allocation35_spill] sm:$0xff] %v2503_v27  ;;  %2851 = vst [vmem:[#allocation36_spill] sm:$0xff] %v2506_v25  ;;  %v442_v10 = vadd.f32 %v441_v20, %v2441_v17 }
 0x15d   :  { %2852 = vst [vmem:[#allocation37_spill] sm:$0xff] %v2508_v53  ;;  %2853 = vst [vmem:[#allocation38_spill] sm:$0xff] %v2511_v30 }
 0x15f   :  { %v742_v8 = vpop.f32.mrb[16].mxu0  ;;  %v783_v27 = vpop.f32.mrb[16].mxu1 }
 0x160   :  { %v794_v35 = vadd.f32 %v742_v8, %v367_v13  ;;  %v796_v22 = vadd.f32 %v783_v27, %v440_v0  ;;  %v744_v12 = vpop.f32.mrb[17].mxu0  ;;  %v785_v25 = vpop.f32.mrb[17].mxu1 }
 0x161   :  { %v795_v11 = vadd.f32 %v744_v12, %v369_v6  ;;  %v797_v23 = vadd.f32 %v785_v25, %v442_v10  ;;  %v746_v53 = vpop.f32.mrb[18].mxu0  ;;  %v787_v9 = vpop.f32.mrb[18].mxu1 }
 0x162   :  { %v798_v31 = vmul.f32 0.5, %v794_v35  ;;  %v747_v30 = vpop.f32.mrb[19].mxu0  ;;  %v788_v7 = vpop.f32.mrb[19].mxu1 }
 0x163   :  { %v802_v15 = vmul.f32 0.5, %v795_v11  ;;  %v807_v14 = vmul.f32 0.5, %v797_v23  ;;  %v2854_v30 = vmov 0  }
 0x164   :  { %1945 = vtanh.f32 %v798_v31 }
 0x165   :  { %1947 = vtanh.f32 %v802_v15 }
 0x166   :  { %1949 = vtanh.f32 %v796_v22 }
 0x167   :  { %1951 = vtanh.f32 %v807_v14 }
 0x16e   :  { %v1946_v16 = vpop.eup %1945 }
 0x16f   :  { %v1948_v17 = vpop.eup %1947  ;;  %v800_v18 = vadd.f32 1.0, %v1946_v16 }
 0x170   :  { %v804_v19 = vadd.f32 1.0, %v1948_v17  ;;  %v1950_v20 = vpop.eup %1949 }
 0x171   :  { %v801_v0 = vmul.f32 0.5, %v800_v18  ;;  %v1952_v7 = vpop.eup %1951 }
 0x172   :  { %v805_v21 = vmul.f32 0.5, %v804_v19  ;;  %v809_v9 = vadd.f32 1.0, %v1952_v7 }
 0x173   :  { %v812_v27 = vmul.f32 %v1950_v20, %v801_v0 }
 0x174   :  { %v811_v25 = vmul.f32 0.0, %v805_v21  ;;  %v810_v11 = vmul.f32 0.5, %v809_v9 }
 0x176   :  { %v2517_v53 = vadd.f32 %v812_v27, %v811_v25 }
 0x178   :  { %1953 = vtanh.f32 %v2517_v53 }
 0x182   :  { %v1954_v35 = vpop.eup %1953 }
 0x183   :  { %v815_v22 = vmul.f32 %v1954_v35, %v810_v11 }
 0x185   :  { %v816_v10 = vpack.c.bf16 %v815_v22, %v815_v22 }
 0x187   :  { %850 = vmatmul.mubr.bf16.vlgmr.msra.gmra.mrb[20].mxu0 %v816_v10  ;;  %891 = vmatmul.mubr.bf16.vlgmr.msra.gmra.mrb[20].mxu1 %v816_v10 }
 0x188   :  { %928 = vmatpush1.bf16.msra.mxu0 %v2296_v36  ;;  %969 = vmatpush1.bf16.msra.mxu1 %v2298_v37 }
 0x189   :  { %929 = vmatprep.subr.bf16.mxu0 %v2302_v38  ;;  %970 = vmatprep.subr.bf16.mxu1 %v2304_v39 }
 0x18a   :  { %959 = vmatprep.mubr.bf16.mxu0 %v2854_v30  ;;  %1000 = vmatprep.mubr.bf16.mxu1 %v2854_v30 }
 0x18c   :  { %930 = vmatpush1.bf16.msra.mxu0 %v2306_v40  ;;  %971 = vmatpush1.bf16.msra.mxu1 %v2310_v41 }
 0x18d   :  { %931 = vmatprep.subr.bf16.mxu0 %v2314_v42  ;;  %972 = vmatprep.subr.bf16.mxu1 %v2316_v43 }
 0x190   :  { %932 = vmatpush1.bf16.msra.mxu0 %v2320_v45  ;;  %973 = vmatpush1.bf16.msra.mxu1 %v2322_v46 }
 0x191   :  { %933 = vmatprep.subr.bf16.mxu0 %v2326_v47  ;;  %974 = vmatprep.subr.bf16.mxu1 %v2330_v48 }
 0x194   :  { %934 = vmatpush1.bf16.msra.mxu0 %v2332_v49  ;;  %975 = vmatpush1.bf16.msra.mxu1 %v2334_v50 }
 0x195   :  { %935 = vmatprep.subr.bf16.mxu0 %v2338_v51  ;;  %976 = vmatprep.subr.bf16.mxu1 %v2342_v52 }
 0x198   :  { %936 = vmatpush1.bf16.msra.mxu0 %v2346_v54  ;;  %977 = vmatpush1.bf16.msra.mxu1 %v2348_v55 }
 0x199   :  { %937 = vmatprep.subr.bf16.mxu0 %v2350_v56  ;;  %978 = vmatprep.subr.bf16.mxu1 %v2352_v57 }
 0x19c   :  { %938 = vmatpush1.bf16.msra.mxu0 %v2360_v58  ;;  %979 = vmatpush1.bf16.msra.mxu1 %v2362_v59 }
 0x19d   :  { %939 = vmatprep.subr.bf16.mxu0 %v2366_v60  ;;  %980 = vmatprep.subr.bf16.mxu1 %v2368_v61 }
 0x1a0   :  { %940 = vmatpush1.bf16.msra.mxu0 %v2374_v63  ;;  %981 = vmatpush1.bf16.msra.mxu1 %v2376_v1 }
 0x1a1   :  { %941 = vmatprep.subr.bf16.mxu0 %v2380_v2  ;;  %982 = vmatprep.subr.bf16.mxu1 %v2382_v3 }
 0x1a4   :  { %942 = vmatpush1.bf16.msra.mxu0 %v2386_v4  ;;  %983 = vmatpush1.bf16.msra.mxu1 %v2388_v5 }
 0x1a5   :  { %1037 = vmatprep.subr.bf16.mxu0 %v2292_v33  ;;  %1078 = vmatprep.subr.bf16.mxu1 %v2294_v34 }
 0x25a   :  { %v851_v13 = vpop.f32.mrb[20].mxu0  ;;  %v892_v6 = vpop.f32.mrb[20].mxu1 }
 0x25b   :  { %v904_v8 = vadd.f32 %v851_v13, %v2443_v24  ;;  %v906_v12 = vadd.f32 %v892_v6, %v2446_v26  ;;  %v853_v23 = vpop.f32.mrb[21].mxu0  ;;  %v894_v31 = vpop.f32.mrb[21].mxu1 }
 0x25c   :  { %v905_v15 = vadd.f32 %v853_v23, %v2448_v28  ;;  %v907_v14 = vadd.f32 %v894_v31, %v2451_v29  ;;  %v855_v16 = vpop.f32.mrb[22].mxu0  ;;  %v896_v17 = vpop.f32.mrb[22].mxu1 }
 0x25d   :  { %v908_v18 = vmul.f32 0.5, %v904_v8  ;;  %v856_v19 = vpop.f32.mrb[23].mxu0  ;;  %v897_v0 = vpop.f32.mrb[23].mxu1 }
 0x25e   :  { %v912_v20 = vmul.f32 0.5, %v905_v15  ;;  %v917_v21 = vmul.f32 0.5, %v907_v14 }
 0x25f   :  { %1955 = vtanh.f32 %v908_v18  ;;  %v2855_v18 = vld [vmem:[#allocation18_spill] sm:$0xff] }
 0x260   :  { %1957 = vtanh.f32 %v912_v20 }
 0x261   :  { %1959 = vtanh.f32 %v906_v12 }
 0x262   :  { %1961 = vtanh.f32 %v917_v21 }
 0x269   :  { %v1956_v27 = vpop.eup %1955 }
 0x26a   :  { %v1958_v24 = vpop.eup %1957  ;;  %v910_v25 = vadd.f32 1.0, %v1956_v27 }
 0x26b   :  { %v914_v26 = vadd.f32 1.0, %v1958_v24  ;;  %v1960_v9 = vpop.eup %1959 }
 0x26c   :  { %v911_v7 = vmul.f32 0.5, %v910_v25  ;;  %v1962_v22 = vpop.eup %1961 }
 0x26d   :  { %v915_v28 = vmul.f32 0.5, %v914_v26  ;;  %v919_v10 = vadd.f32 1.0, %v1962_v22 }
 0x26e   :  { %v922_v11 = vmul.f32 %v1960_v9, %v911_v7 }
 0x26f   :  { %v921_v29 = vmul.f32 %v915_v28, %v2517_v53  ;;  %v920_v13 = vmul.f32 0.5, %v919_v10 }
 0x271   :  { %v2559_v35 = vadd.f32 %v922_v11, %v921_v29 }
 0x273   :  { %1963 = vtanh.f32 %v2559_v35 }
 0x27d   :  { %v1964_v6 = vpop.eup %1963 }
 0x27e   :  { %v925_v8 = vmul.f32 %v1964_v6, %v920_v13 }
 0x280   :  { %v926_v12 = vpack.c.bf16 %v925_v8, %v925_v8 }
 0x282   :  { %960 = vmatmul.mubr.bf16.vlgmr.msra.gmra.mrb[24].mxu0 %v926_v12  ;;  %1001 = vmatmul.mubr.bf16.vlgmr.msra.gmra.mrb[24].mxu1 %v926_v12 }
 0x283   :  { %1038 = vmatpush1.bf16.msra.mxu0 %v2296_v36  ;;  %1079 = vmatpush1.bf16.msra.mxu1 %v2298_v37 }
 0x284   :  { %1039 = vmatprep.subr.bf16.mxu0 %v2302_v38  ;;  %1080 = vmatprep.subr.bf16.mxu1 %v2304_v39 }
 0x285   :  { %1069 = vmatprep.mubr.bf16.mxu0 %v2854_v30  ;;  %1110 = vmatprep.mubr.bf16.mxu1 %v2854_v30 }
 0x287   :  { %1040 = vmatpush1.bf16.msra.mxu0 %v2306_v40  ;;  %1081 = vmatpush1.bf16.msra.mxu1 %v2310_v41 }
 0x288   :  { %1041 = vmatprep.subr.bf16.mxu0 %v2314_v42  ;;  %1082 = vmatprep.subr.bf16.mxu1 %v2316_v43 }
 0x28b   :  { %1042 = vmatpush1.bf16.msra.mxu0 %v2320_v45  ;;  %1083 = vmatpush1.bf16.msra.mxu1 %v2322_v46 }
 0x28c   :  { %1043 = vmatprep.subr.bf16.mxu0 %v2326_v47  ;;  %1084 = vmatprep.subr.bf16.mxu1 %v2330_v48 }
 0x28f   :  { %1044 = vmatpush1.bf16.msra.mxu0 %v2332_v49  ;;  %1085 = vmatpush1.bf16.msra.mxu1 %v2334_v50 }
 0x290   :  { %1045 = vmatprep.subr.bf16.mxu0 %v2338_v51  ;;  %1086 = vmatprep.subr.bf16.mxu1 %v2342_v52 }
 0x293   :  { %1046 = vmatpush1.bf16.msra.mxu0 %v2346_v54  ;;  %1087 = vmatpush1.bf16.msra.mxu1 %v2348_v55 }
 0x294   :  { %1047 = vmatprep.subr.bf16.mxu0 %v2350_v56  ;;  %1088 = vmatprep.subr.bf16.mxu1 %v2352_v57 }
 0x297   :  { %1048 = vmatpush1.bf16.msra.mxu0 %v2360_v58  ;;  %1089 = vmatpush1.bf16.msra.mxu1 %v2362_v59 }
 0x298   :  { %1049 = vmatprep.subr.bf16.mxu0 %v2366_v60  ;;  %1090 = vmatprep.subr.bf16.mxu1 %v2368_v61 }
 0x29b   :  { %1050 = vmatpush1.bf16.msra.mxu0 %v2374_v63  ;;  %1091 = vmatpush1.bf16.msra.mxu1 %v2376_v1 }
 0x29c   :  { %1051 = vmatprep.subr.bf16.mxu0 %v2380_v2  ;;  %1092 = vmatprep.subr.bf16.mxu1 %v2382_v3 }
 0x29f   :  { %1052 = vmatpush1.bf16.msra.mxu0 %v2386_v4  ;;  %1093 = vmatpush1.bf16.msra.mxu1 %v2388_v5 }
 0x2a0   :  { %1147 = vmatprep.subr.bf16.mxu0 %v2292_v33  ;;  %1188 = vmatprep.subr.bf16.mxu1 %v2294_v34 }
 0x355   :  { %v961_v53 = vpop.f32.mrb[24].mxu0  ;;  %v1002_v23 = vpop.f32.mrb[24].mxu1 }
 0x356   :  { %v1014_v31 = vadd.f32 %v961_v53, %v2453_v32  ;;  %v1016_v15 = vadd.f32 %v1002_v23, %v2456_v44  ;;  %v963_v14 = vpop.f32.mrb[25].mxu0  ;;  %v1004_v16 = vpop.f32.mrb[25].mxu1 }
 0x357   :  { %v1015_v17 = vadd.f32 %v963_v14, %v2458_v62  ;;  %v1017_v19 = vadd.f32 %v1004_v16, %v2855_v18  ;;  %v965_v0 = vpop.f32.mrb[26].mxu0  ;;  %v1006_v20 = vpop.f32.mrb[26].mxu1  ;;  %v2857_v16 = vld [vmem:[#allocation20_spill] sm:$0xff] }
 0x358   :  { %v1018_v21 = vmul.f32 0.5, %v1014_v31  ;;  %v966_v27 = vpop.f32.mrb[27].mxu0  ;;  %v1007_v24 = vpop.f32.mrb[27].mxu1  ;;  %v2858_v0 = vld [vmem:[#allocation21_spill] sm:$0xff] }
 0x359   :  { %v1022_v25 = vmul.f32 0.5, %v1015_v17  ;;  %v1027_v26 = vmul.f32 0.5, %v1017_v19 }
 0x35a   :  { %1965 = vtanh.f32 %v1018_v21  ;;  %v2859_v21 = vld [vmem:[#allocation22_spill] sm:$0xff] }
 0x35b   :  { %1967 = vtanh.f32 %v1022_v25 }
 0x35c   :  { %1969 = vtanh.f32 %v1016_v15  ;;  %v2856_v15 = vld [vmem:[#allocation19_spill] sm:$0xff] }
 0x35d   :  { %1971 = vtanh.f32 %v1027_v26 }
 0x364   :  { %v1966_v7 = vpop.eup %1965 }
 0x365   :  { %v1968_v32 = vpop.eup %1967  ;;  %v1020_v9 = vadd.f32 1.0, %v1966_v7 }
 0x366   :  { %v1024_v44 = vadd.f32 1.0, %v1968_v32  ;;  %v1970_v11 = vpop.eup %1969 }
 0x367   :  { %v1021_v28 = vmul.f32 0.5, %v1020_v9  ;;  %v1972_v13 = vpop.eup %1971 }
 0x368   :  { %v1025_v62 = vmul.f32 0.5, %v1024_v44  ;;  %v1029_v6 = vadd.f32 1.0, %v1972_v13 }
 0x369   :  { %v1032_v29 = vmul.f32 %v1970_v11, %v1021_v28 }
 0x36a   :  { %v1031_v22 = vmul.f32 %v1025_v62, %v2559_v35  ;;  %v1030_v8 = vmul.f32 0.5, %v1029_v6 }
 0x36c   :  { %v2601_v10 = vadd.f32 %v1032_v29, %v1031_v22 }
 0x36e   :  { %1973 = vtanh.f32 %v2601_v10 }
 0x378   :  { %v1974_v12 = vpop.eup %1973 }
 0x379   :  { %v1035_v53 = vmul.f32 %v1974_v12, %v1030_v8 }
 0x37b   :  { %v1036_v23 = vpack.c.bf16 %v1035_v53, %v1035_v53 }
 0x37d   :  { %1070 = vmatmul.mubr.bf16.vlgmr.msra.gmra.mrb[28].mxu0 %v1036_v23  ;;  %1111 = vmatmul.mubr.bf16.vlgmr.msra.gmra.mrb[28].mxu1 %v1036_v23 }
 0x37e   :  { %1148 = vmatpush1.bf16.msra.mxu0 %v2296_v36  ;;  %1189 = vmatpush1.bf16.msra.mxu1 %v2298_v37 }
 0x37f   :  { %1149 = vmatprep.subr.bf16.mxu0 %v2302_v38  ;;  %1190 = vmatprep.subr.bf16.mxu1 %v2304_v39 }
 0x380   :  { %1179 = vmatprep.mubr.bf16.mxu0 %v2854_v30  ;;  %1220 = vmatprep.mubr.bf16.mxu1 %v2854_v30 }
 0x382   :  { %1150 = vmatpush1.bf16.msra.mxu0 %v2306_v40  ;;  %1191 = vmatpush1.bf16.msra.mxu1 %v2310_v41 }
 0x383   :  { %1151 = vmatprep.subr.bf16.mxu0 %v2314_v42  ;;  %1192 = vmatprep.subr.bf16.mxu1 %v2316_v43 }
 0x386   :  { %1152 = vmatpush1.bf16.msra.mxu0 %v2320_v45  ;;  %1193 = vmatpush1.bf16.msra.mxu1 %v2322_v46 }
 0x387   :  { %1153 = vmatprep.subr.bf16.mxu0 %v2326_v47  ;;  %1194 = vmatprep.subr.bf16.mxu1 %v2330_v48 }
 0x38a   :  { %1154 = vmatpush1.bf16.msra.mxu0 %v2332_v49  ;;  %1195 = vmatpush1.bf16.msra.mxu1 %v2334_v50 }
 0x38b   :  { %1155 = vmatprep.subr.bf16.mxu0 %v2338_v51  ;;  %1196 = vmatprep.subr.bf16.mxu1 %v2342_v52 }
 0x38e   :  { %1156 = vmatpush1.bf16.msra.mxu0 %v2346_v54  ;;  %1197 = vmatpush1.bf16.msra.mxu1 %v2348_v55 }
 0x38f   :  { %1157 = vmatprep.subr.bf16.mxu0 %v2350_v56  ;;  %1198 = vmatprep.subr.bf16.mxu1 %v2352_v57 }
 0x392   :  { %1158 = vmatpush1.bf16.msra.mxu0 %v2360_v58  ;;  %1199 = vmatpush1.bf16.msra.mxu1 %v2362_v59 }
 0x393   :  { %1159 = vmatprep.subr.bf16.mxu0 %v2366_v60  ;;  %1200 = vmatprep.subr.bf16.mxu1 %v2368_v61 }
 0x396   :  { %1160 = vmatpush1.bf16.msra.mxu0 %v2374_v63  ;;  %1201 = vmatpush1.bf16.msra.mxu1 %v2376_v1 }
 0x397   :  { %1161 = vmatprep.subr.bf16.mxu0 %v2380_v2  ;;  %1202 = vmatprep.subr.bf16.mxu1 %v2382_v3 }
 0x39a   :  { %1162 = vmatpush1.bf16.msra.mxu0 %v2386_v4  ;;  %1203 = vmatpush1.bf16.msra.mxu1 %v2388_v5 }
 0x39b   :  { %1257 = vmatprep.subr.bf16.mxu0 %v2292_v33  ;;  %1298 = vmatprep.subr.bf16.mxu1 %v2294_v34 }
 0x450   :  { %v1071_v35 = vpop.f32.mrb[28].mxu0  ;;  %v1112_v31 = vpop.f32.mrb[28].mxu1 }
 0x451   :  { %v1124_v14 = vadd.f32 %v1071_v35, %v2856_v15  ;;  %v1126_v17 = vadd.f32 %v1112_v31, %v2857_v16  ;;  %v1073_v18 = vpop.f32.mrb[29].mxu0  ;;  %v1114_v19 = vpop.f32.mrb[29].mxu1 }
 0x452   :  { %v1125_v20 = vadd.f32 %v1073_v18, %v2858_v0  ;;  %v1127_v27 = vadd.f32 %v1114_v19, %v2859_v21  ;;  %v1075_v24 = vpop.f32.mrb[30].mxu0  ;;  %v1116_v25 = vpop.f32.mrb[30].mxu1 }
 0x453   :  { %v1128_v26 = vmul.f32 0.5, %v1124_v14  ;;  %v1076_v7 = vpop.f32.mrb[31].mxu0  ;;  %v1117_v32 = vpop.f32.mrb[31].mxu1 }
 0x454   :  { %v1132_v33 = vmul.f32 0.5, %v1125_v20  ;;  %v1137_v34 = vmul.f32 0.5, %v1127_v27 }
 0x455   :  { %1975 = vtanh.f32 %v1128_v26 }
 0x456   :  { %1977 = vtanh.f32 %v1132_v33 }
 0x457   :  { %1979 = vtanh.f32 %v1126_v17 }
 0x458   :  { %1981 = vtanh.f32 %v1137_v34 }
 0x45f   :  { %v1976_v9 = vpop.eup %1975 }
 0x460   :  { %v1978_v44 = vpop.eup %1977  ;;  %v1130_v28 = vadd.f32 1.0, %v1976_v9  ;;  %v2692_v9 = vld [vmem:[#allocation10] ss:$16 sps:$4 sm:$0xff]  }
 0x461   :  { %v1134_v11 = vadd.f32 1.0, %v1978_v44  ;;  %v1980_v29 = vpop.eup %1979  ;;  %v2695_v44 = vld [vmem:[#allocation10 + $0x8] ss:$16 sps:$4 sm:$0xff]  }
 0x462   :  { %v1131_v62 = vmul.f32 0.5, %v1130_v28  ;;  %v1982_v12 = vpop.eup %1981  ;;  %v2698_v28 = vld [vmem:[#allocation10 + $0x24] ss:$16 sps:$4 sm:$0xff]  }
 0x463   :  { %v1135_v22 = vmul.f32 0.5, %v1134_v11  ;;  %v1139_v53 = vadd.f32 1.0, %v1982_v12  ;;  %v2701_v11 = vld [vmem:[#allocation10 + $0x2c] ss:$16 sps:$4 sm:$0xff]   ;;  %v2724_v12 = vld [vmem:[#allocation10 + $0x64] ss:$16 sps:$4 sm:$0xff]  }
 0x464   :  { %v1142_v13 = vmul.f32 %v1980_v29, %v1131_v62  ;;  %v2706_v62 = vld [vmem:[#allocation10 + $0x20] ss:$16 sps:$4 sm:$0xff]   ;;  %v2709_v29 = vld [vmem:[#allocation10 + $0x28] ss:$16 sps:$4 sm:$0xff]  }
 0x465   :  { %v1141_v6 = vmul.f32 %v1135_v22, %v2601_v10  ;;  %v1140_v23 = vmul.f32 0.5, %v1139_v53  ;;  %v2712_v22 = vld [vmem:[#allocation10 + $0x44] ss:$16 sps:$4 sm:$0xff]   ;;  %v2727_v53 = vld [vmem:[#allocation10 + $0x6c] ss:$16 sps:$4 sm:$0xff]  }
 0x467   :  { %v2643_v8 = vadd.f32 %v1142_v13, %v1141_v6  ;;  %v2715_v13 = vld [vmem:[#allocation10 + $0x4c] ss:$16 sps:$4 sm:$0xff]   ;;  %v2718_v6 = vld [vmem:[#allocation10 + $0x40] ss:$16 sps:$4 sm:$0xff]  }
 0x469   :  { %1983 = vtanh.f32 %v2643_v8 }
 0x473   :  { %v1984_v35 = vpop.eup %1983 }
 0x474   :  { %v1145_v31 = vmul.f32 %v1984_v35, %v1140_v23  ;;  %v2730_v23 = vld [vmem:[#allocation10 + $0x60] ss:$16 sps:$4 sm:$0xff]   ;;  %v2733_v35 = vld [vmem:[#allocation10 + $0x68] ss:$16 sps:$4 sm:$0xff]  }
 0x476   :  { %v1146_v15 = vpack.c.bf16 %v1145_v31, %v1145_v31  ;;  %v2736_v31 = vld [vmem:[#allocation10 + $0x84] ss:$16 sps:$4 sm:$0xff]  }
 0x478   :  { %1180 = vmatmul.mubr.bf16.vlgmr.msra.gmra.mrb[32].mxu0 %v1146_v15  ;;  %1221 = vmatmul.mubr.bf16.vlgmr.msra.gmra.mrb[32].mxu1 %v1146_v15  ;;  %v2739_v15 = vld [vmem:[#allocation10 + $0x8c] ss:$16 sps:$4 sm:$0xff]  }
 0x479   :  { %1258 = vmatpush1.bf16.msra.mxu0 %v2296_v36  ;;  %1299 = vmatpush1.bf16.msra.mxu1 %v2298_v37  ;;  %v2678_v36 = vld [vmem:[#allocation10 + $0x4] ss:$16 sps:$4 sm:$0xff]   ;;  %v2681_v37 = vld [vmem:[#allocation10 + $0xc] ss:$16 sps:$4 sm:$0xff]  }
 0x47a   :  { %1259 = vmatprep.subr.bf16.mxu0 %v2302_v38  ;;  %1300 = vmatprep.subr.bf16.mxu1 %v2304_v39 }
 0x47b   :  { %1289 = vmatprep.mubr.bf16.mxu0 %v2854_v30  ;;  %1330 = vmatprep.mubr.bf16.mxu1 %v2854_v30 }
 0x47d   :  { %1260 = vmatpush1.bf16.msra.mxu0 %v2306_v40  ;;  %1301 = vmatpush1.bf16.msra.mxu1 %v2310_v41  ;;  %v2860_v40 = vld [vmem:[#allocation23_spill] sm:$0xff] }
 0x47e   :  { %1261 = vmatprep.subr.bf16.mxu0 %v2314_v42  ;;  %1302 = vmatprep.subr.bf16.mxu1 %v2316_v43  ;;  %v2861_v42 = vld [vmem:[#allocation24_spill] sm:$0xff] }
 0x481   :  { %1262 = vmatpush1.bf16.msra.mxu0 %v2320_v45  ;;  %1303 = vmatpush1.bf16.msra.mxu1 %v2322_v46 }
 0x482   :  { %1263 = vmatprep.subr.bf16.mxu0 %v2326_v47  ;;  %1304 = vmatprep.subr.bf16.mxu1 %v2330_v48  ;;  %v2862_v47 = vld [vmem:[#allocation25_spill] sm:$0xff] }
 0x485   :  { %1264 = vmatpush1.bf16.msra.mxu0 %v2332_v49  ;;  %1305 = vmatpush1.bf16.msra.mxu1 %v2334_v50  ;;  %v2863_v49 = vld [vmem:[#allocation26_spill] sm:$0xff] }
 0x486   :  { %1265 = vmatprep.subr.bf16.mxu0 %v2338_v51  ;;  %1306 = vmatprep.subr.bf16.mxu1 %v2342_v52 }
 0x489   :  { %1266 = vmatpush1.bf16.msra.mxu0 %v2346_v54  ;;  %1307 = vmatpush1.bf16.msra.mxu1 %v2348_v55 }
 0x48a   :  { %1267 = vmatprep.subr.bf16.mxu0 %v2350_v56  ;;  %1308 = vmatprep.subr.bf16.mxu1 %v2352_v57 }
 0x48d   :  { %1268 = vmatpush1.bf16.msra.mxu0 %v2360_v58  ;;  %1309 = vmatpush1.bf16.msra.mxu1 %v2362_v59 }
 0x48e   :  { %1269 = vmatprep.subr.bf16.mxu0 %v2366_v60  ;;  %1310 = vmatprep.subr.bf16.mxu1 %v2368_v61 }
 0x491   :  { %1270 = vmatpush1.bf16.msra.mxu0 %v2374_v63  ;;  %1311 = vmatpush1.bf16.msra.mxu1 %v2376_v1 }
 0x492   :  { %1271 = vmatprep.subr.bf16.mxu0 %v2380_v2  ;;  %1312 = vmatprep.subr.bf16.mxu1 %v2382_v3 }
 0x495   :  { %1272 = vmatpush1.bf16.msra.mxu0 %v2386_v4  ;;  %1313 = vmatpush1.bf16.msra.mxu1 %v2388_v5 }
 0x496   :  { %1367 = vmatprep.subr.bf16.mxu0 %v2678_v36  ;;  %1408 = vmatprep.subr.bf16.mxu1 %v2681_v37 }
 0x54b   :  { %v1181_v38 = vpop.f32.mrb[32].mxu0  ;;  %v1222_v39 = vpop.f32.mrb[32].mxu1 }
 0x54c   :  { %v1234_v41 = vadd.f32 %v1181_v38, %v2860_v40  ;;  %v1236_v43 = vadd.f32 %v1222_v39, %v2861_v42  ;;  %v1183_v45 = vpop.f32.mrb[33].mxu0  ;;  %v1224_v46 = vpop.f32.mrb[33].mxu1  ;;  %v2742_v38 = vld [vmem:[#allocation10 + $0x80] ss:$16 sps:$4 sm:$0xff]   ;;  %v2745_v39 = vld [vmem:[#allocation10 + $0x88] ss:$16 sps:$4 sm:$0xff]  }
 0x54d   :  { %v1235_v48 = vadd.f32 %v1183_v45, %v2862_v47  ;;  %v1237_v50 = vadd.f32 %v1224_v46, %v2863_v49  ;;  %v1185_v51 = vpop.f32.mrb[34].mxu0  ;;  %v1226_v52 = vpop.f32.mrb[34].mxu1  ;;  %v2748_v40 = vld [vmem:[#allocation10 + $0xa4] ss:$16 sps:$4 sm:$0xff]   ;;  %v2865_v42 = vld [vmem:[#allocation28_spill] sm:$0xff]  ;;  %v2867_v46 = vld [vmem:[#allocation30_spill] sm:$0xff] }
 0x54e   :  { %v1238_v54 = vmul.f32 0.5, %v1234_v41  ;;  %v1186_v55 = vpop.f32.mrb[35].mxu0  ;;  %v1227_v56 = vpop.f32.mrb[35].mxu1  ;;  %v2751_v41 = vld [vmem:[#allocation10 + $0xac] ss:$16 sps:$4 sm:$0xff]   ;;  %v2866_v45 = vld [vmem:[#allocation29_spill] sm:$0xff] }
 0x54f   :  { %v1242_v57 = vmul.f32 0.5, %v1235_v48  ;;  %v1247_v10 = vmul.f32 0.5, %v1237_v50 }
 0x550   :  { %1985 = vtanh.f32 %v1238_v54 }
 0x551   :  { %1987 = vtanh.f32 %v1242_v57 }
 0x552   :  { %1989 = vtanh.f32 %v1236_v43 }
 0x553   :  { %1991 = vtanh.f32 %v1247_v10 }
 0x55a   :  { %v1986_v14 = vpop.eup %1985 }
 0x55b   :  { %v1988_v16 = vpop.eup %1987  ;;  %v1240_v17 = vadd.f32 1.0, %v1986_v14 }
 0x55c   :  { %v1244_v18 = vadd.f32 1.0, %v1988_v16  ;;  %v1990_v0 = vpop.eup %1989 }
 0x55d   :  { %v1241_v19 = vmul.f32 0.5, %v1240_v17  ;;  %v1992_v25 = vpop.eup %1991 }
 0x55e   :  { %v1245_v20 = vmul.f32 0.5, %v1244_v18  ;;  %v1249_v26 = vadd.f32 1.0, %v1992_v25  ;;  %v2050_v25 = vld [vmem:[#allocation10 + $0xcc] ss:$16 sps:$4 sm:$0xff]  }
 0x55f   :  { %v1252_v21 = vmul.f32 %v1990_v0, %v1241_v19 }
 0x560   :  { %v1251_v27 = vmul.f32 %v1245_v20, %v2643_v8  ;;  %v1250_v7 = vmul.f32 0.5, %v1249_v26  ;;  %v2721_v8 = vld [vmem:[#allocation10 + $0x48] ss:$16 sps:$4 sm:$0xff]   ;;  %v2051_v26 = vld [vmem:[#allocation10 + $0xc0] ss:$16 sps:$4 sm:$0xff]  }
 0x562   :  { %v2689_v24 = vadd.f32 %v1252_v21, %v1251_v27  ;;  %v2048_v27 = vld [vmem:[#allocation10 + $0xa8] ss:$16 sps:$4 sm:$0xff]  }
 0x564   :  { %1993 = vtanh.f32 %v2689_v24 }
 0x56e   :  { %v1994_v32 = vpop.eup %1993 }
 0x56f   :  { %v1255_v33 = vmul.f32 %v1994_v32, %v1250_v7  ;;  %v2052_v7 = vld [vmem:[#allocation10 + $0xc8] ss:$16 sps:$4 sm:$0xff]   ;;  %v2053_v32 = vld [vmem:[#allocation10 + $0xe4] ss:$16 sps:$4 sm:$0xff]  }
 0x571   :  { %v1256_v34 = vpack.c.bf16 %v1255_v33, %v1255_v33  ;;  %v2054_v33 = vld [vmem:[#allocation10 + $0xec] ss:$16 sps:$4 sm:$0xff]  }
 0x573   :  { %1290 = vmatmul.mubr.bf16.vlgmr.msra.gmra.mrb[36].mxu0 %v1256_v34  ;;  %1331 = vmatmul.mubr.bf16.vlgmr.msra.gmra.mrb[36].mxu1 %v1256_v34  ;;  %v2055_v34 = vld [vmem:[#allocation10 + $0xe0] ss:$16 sps:$4 sm:$0xff]  }
 0x574   :  { %1368 = vmatpush1.bf16.msra.mxu0 %v2692_v9  ;;  %1409 = vmatpush1.bf16.msra.mxu1 %v2695_v44 }
 0x575   :  { %1369 = vmatprep.subr.bf16.mxu0 %v2698_v28  ;;  %1410 = vmatprep.subr.bf16.mxu1 %v2701_v11 }
 0x576   :  { %1399 = vmatprep.mubr.bf16.mxu0 %v2854_v30  ;;  %1440 = vmatprep.mubr.bf16.mxu1 %v2854_v30 }
 0x578   :  { %1370 = vmatpush1.bf16.msra.mxu0 %v2706_v62  ;;  %1411 = vmatpush1.bf16.msra.mxu1 %v2709_v29 }
 0x579   :  { %1371 = vmatprep.subr.bf16.mxu0 %v2712_v22  ;;  %1412 = vmatprep.subr.bf16.mxu1 %v2715_v13 }
 0x57c   :  { %1372 = vmatpush1.bf16.msra.mxu0 %v2718_v6  ;;  %1413 = vmatpush1.bf16.msra.mxu1 %v2721_v8 }
 0x57d   :  { %1373 = vmatprep.subr.bf16.mxu0 %v2724_v12  ;;  %1414 = vmatprep.subr.bf16.mxu1 %v2727_v53 }
 0x580   :  { %1374 = vmatpush1.bf16.msra.mxu0 %v2730_v23  ;;  %1415 = vmatpush1.bf16.msra.mxu1 %v2733_v35 }
 0x581   :  { %1375 = vmatprep.subr.bf16.mxu0 %v2736_v31  ;;  %1416 = vmatprep.subr.bf16.mxu1 %v2739_v15 }
 0x584   :  { %1376 = vmatpush1.bf16.msra.mxu0 %v2742_v38  ;;  %1417 = vmatpush1.bf16.msra.mxu1 %v2745_v39 }
 0x585   :  { %1377 = vmatprep.subr.bf16.mxu0 %v2748_v40  ;;  %1418 = vmatprep.subr.bf16.mxu1 %v2751_v41 }
 0x588   :  { %1378 = vmatpush1.bf16.msra.mxu0 %v2360_v58  ;;  %1419 = vmatpush1.bf16.msra.mxu1 %v2362_v59 }
 0x589   :  { %1379 = vmatprep.subr.bf16.mxu0 %v2366_v60  ;;  %1420 = vmatprep.subr.bf16.mxu1 %v2368_v61  ;;  %v2864_v60 = vld [vmem:[#allocation27_spill] sm:$0xff] }
 0x58c   :  { %1380 = vmatpush1.bf16.msra.mxu0 %v2374_v63  ;;  %1421 = vmatpush1.bf16.msra.mxu1 %v2376_v1 }
 0x58d   :  { %1381 = vmatprep.subr.bf16.mxu0 %v2380_v2  ;;  %1422 = vmatprep.subr.bf16.mxu1 %v2382_v3 }
 0x590   :  { %1382 = vmatpush1.bf16.msra.mxu0 %v2386_v4  ;;  %1423 = vmatpush1.bf16.msra.mxu1 %v2388_v5 }
 0x591   :  { %1477 = vmatprep.subr.bf16.mxu0 %v2678_v36  ;;  %1518 = vmatprep.subr.bf16.mxu1 %v2681_v37 }
 0x646   :  { %v1291_v58 = vpop.f32.mrb[36].mxu0  ;;  %v1332_v59 = vpop.f32.mrb[36].mxu1 }
 0x647   :  { %v1344_v61 = vadd.f32 %v1291_v58, %v2864_v60  ;;  %v1346_v63 = vadd.f32 %v1332_v59, %v2865_v42  ;;  %v1293_v43 = vpop.f32.mrb[37].mxu0  ;;  %v1334_v1 = vpop.f32.mrb[37].mxu1 }
 0x648   :  { %v1345_v2 = vadd.f32 %v1293_v43, %v2866_v45  ;;  %v1347_v3 = vadd.f32 %v1334_v1, %v2867_v46  ;;  %v1295_v47 = vpop.f32.mrb[38].mxu0  ;;  %v1336_v4 = vpop.f32.mrb[38].mxu1 }
 0x649   :  { %v1348_v48 = vmul.f32 0.5, %v1344_v61  ;;  %v1296_v5 = vpop.f32.mrb[39].mxu0  ;;  %v1337_v49 = vpop.f32.mrb[39].mxu1 }
 0x64a   :  { %v1352_v36 = vmul.f32 0.5, %v1345_v2  ;;  %v1357_v37 = vmul.f32 0.5, %v1347_v3  ;;  %v1937_v49 = vld [vmem:[#allocation11] sm:$0xff]  }
 0x64b   :  { %1995 = vtanh.f32 %v1348_v48 }
 0x64c   :  { %1997 = vtanh.f32 %v1352_v36  ;;  %v2185_v36 = vmov 0.0  }
 0x64d   :  { %1999 = vtanh.f32 %v1346_v63 }
 0x64e   :  { %2001 = vtanh.f32 %v1357_v37  ;;  %v1938_v37 = vld [vmem:[#allocation11 + $0x8] sm:$0xff]  }
 0x655   :  { %v1996_v50 = vpop.eup %1995 }
 0x656   :  { %v1998_v51 = vpop.eup %1997  ;;  %v1350_v52 = vadd.f32 1.0, %v1996_v50  ;;  %v1939_v50 = vld [vmem:[#allocation11 + $0x10] sm:$0xff]  }
 0x657   :  { %v1354_v54 = vadd.f32 1.0, %v1998_v51  ;;  %v2000_v56 = vpop.eup %1999  ;;  %v1940_v51 = vld [vmem:[#allocation11 + $0x18] sm:$0xff]  }
 0x658   :  { %v1351_v55 = vmul.f32 0.5, %v1350_v52  ;;  %v2002_v17 = vpop.eup %2001  ;;  %v1941_v52 = vld [vmem:[#allocation11 + $0x20] sm:$0xff]  }
 0x659   :  { %v1355_v57 = vmul.f32 0.5, %v1354_v54  ;;  %v1359_v18 = vadd.f32 1.0, %v2002_v17  ;;  %v1942_v54 = vld [vmem:[#allocation11 + $0x28] sm:$0xff]   ;;  %v2873_v17 = vld [vmem:[#allocation36_spill] sm:$0xff] }
 0x65a   :  { %v1362_v10 = vmul.f32 %v2000_v56, %v1351_v55  ;;  %v1943_v55 = vld [vmem:[#allocation11 + $0x30] sm:$0xff]   ;;  %v1944_v56 = vld [vmem:[#allocation11 + $0x38] sm:$0xff]  }
 0x65b   :  { %v1361_v14 = vmul.f32 %v1355_v57, %v2689_v24  ;;  %v1360_v19 = vmul.f32 0.5, %v1359_v18  ;;  %v2049_v24 = vld [vmem:[#allocation10 + $0xc4] ss:$16 sps:$4 sm:$0xff]  }
 0x65d   :  { %v2771_v16 = vadd.f32 %v1362_v10, %v1361_v14  ;;  %v2872_v14 = vld [vmem:[#allocation35_spill] sm:$0xff] }
 0x65f   :  { %2003 = vtanh.f32 %v2771_v16 }
 0x669   :  { %v2004_v0 = vpop.eup %2003 }
 0x66a   :  { %v1365_v20 = vmul.f32 %v2004_v0, %v1360_v19 }
 0x66c   :  { %v1366_v21 = vpack.c.bf16 %v1365_v20, %v1365_v20  ;;  %v2874_v20 = vld [vmem:[#allocation37_spill] sm:$0xff] }
 0x66e   :  { %1400 = vmatmul.mubr.bf16.vlgmr.msra.gmra.mrb[40].mxu0 %v1366_v21  ;;  %1441 = vmatmul.mubr.bf16.vlgmr.msra.gmra.mrb[40].mxu1 %v1366_v21 }
 0x66f   :  { %1478 = vmatpush1.bf16.msra.mxu0 %v2692_v9  ;;  %1519 = vmatpush1.bf16.msra.mxu1 %v2695_v44  ;;  %v2056_v9 = vld [vmem:[#allocation10 + $0xe8] ss:$16 sps:$4 sm:$0xff]  }
 0x670   :  { %1479 = vmatprep.subr.bf16.mxu0 %v2698_v28  ;;  %1520 = vmatprep.subr.bf16.mxu1 %v2701_v11  ;;  %v2868_v11 = vld [vmem:[#allocation31_spill] sm:$0xff] }
 0x671   :  { %1509 = vmatprep.mubr.bf16.mxu0 %v2854_v30  ;;  %1550 = vmatprep.mubr.bf16.mxu1 %v2854_v30  ;;  %v2047_v30 = vld [vmem:[#allocation10 + $0xa0] ss:$16 sps:$4 sm:$0xff]  }
 0x673   :  { %1480 = vmatpush1.bf16.msra.mxu0 %v2706_v62  ;;  %1521 = vmatpush1.bf16.msra.mxu1 %v2709_v29  ;;  %v2869_v29 = vld [vmem:[#allocation32_spill] sm:$0xff] }
 0x674   :  { %1481 = vmatprep.subr.bf16.mxu0 %v2712_v22  ;;  %1522 = vmatprep.subr.bf16.mxu1 %v2715_v13 }
 0x677   :  { %1482 = vmatpush1.bf16.msra.mxu0 %v2718_v6  ;;  %1523 = vmatpush1.bf16.msra.mxu1 %v2721_v8  ;;  %v2870_v8 = vld [vmem:[#allocation33_spill] sm:$0xff] }
 0x678   :  { %1483 = vmatprep.subr.bf16.mxu0 %v2724_v12  ;;  %1524 = vmatprep.subr.bf16.mxu1 %v2727_v53  ;;  %v2871_v53 = vld [vmem:[#allocation34_spill] sm:$0xff] }
 0x67b   :  { %1484 = vmatpush1.bf16.msra.mxu0 %v2730_v23  ;;  %1525 = vmatpush1.bf16.msra.mxu1 %v2733_v35 }
 0x67c   :  { %1485 = vmatprep.subr.bf16.mxu0 %v2736_v31  ;;  %1526 = vmatprep.subr.bf16.mxu1 %v2739_v15 }
 0x67f   :  { %1486 = vmatpush1.bf16.msra.mxu0 %v2742_v38  ;;  %1527 = vmatpush1.bf16.msra.mxu1 %v2745_v39 }
 0x680   :  { %1487 = vmatprep.subr.bf16.mxu0 %v2748_v40  ;;  %1528 = vmatprep.subr.bf16.mxu1 %v2751_v41 }
 0x683   :  { %1488 = vmatpush1.bf16.msra.mxu0 %v2047_v30  ;;  %1529 = vmatpush1.bf16.msra.mxu1 %v2048_v27  ;;  %v2875_v30 = vld [vmem:[#allocation38_spill] sm:$0xff] }
 0x684   :  { %1489 = vmatprep.subr.bf16.mxu0 %v2049_v24  ;;  %1530 = vmatprep.subr.bf16.mxu1 %v2050_v25 }
 0x687   :  { %1490 = vmatpush1.bf16.msra.mxu0 %v2051_v26  ;;  %1531 = vmatpush1.bf16.msra.mxu1 %v2052_v7 }
 0x688   :  { %1491 = vmatprep.subr.bf16.mxu0 %v2053_v32  ;;  %1532 = vmatprep.subr.bf16.mxu1 %v2054_v33 }
 0x68b   :  { %1492 = vmatpush1.bf16.msra.mxu0 %v2055_v34  ;;  %1533 = vmatpush1.bf16.msra.mxu1 %v2056_v9 }
 0x68c   :  { %1804 = vmatprep.subr.bf16.mxu0 %v2185_v36 }
 0x741   :  { %v1401_v44 = vpop.f32.mrb[40].mxu0  ;;  %v1442_v28 = vpop.f32.mrb[40].mxu1 }
 0x742   :  { %v1454_v62 = vadd.f32 %v1401_v44, %v2868_v11  ;;  %v1456_v22 = vadd.f32 %v1442_v28, %v2869_v29  ;;  %v1403_v13 = vpop.f32.mrb[41].mxu0  ;;  %v1444_v6 = vpop.f32.mrb[41].mxu1 }
 0x743   :  { %v1455_v12 = vadd.f32 %v1403_v13, %v2870_v8  ;;  %v1457_v23 = vadd.f32 %v1444_v6, %v2871_v53  ;;  %v1405_v35 = vpop.f32.mrb[42].mxu0  ;;  %v1446_v31 = vpop.f32.mrb[42].mxu1 }
 0x744   :  { %v1458_v15 = vmul.f32 0.5, %v1454_v62  ;;  %v1406_v38 = vpop.f32.mrb[43].mxu0  ;;  %v1447_v39 = vpop.f32.mrb[43].mxu1 }
 0x745   :  { %v1462_v40 = vmul.f32 0.5, %v1455_v12  ;;  %v1467_v41 = vmul.f32 0.5, %v1457_v23  ;;  %v1786_v38 = vld [vmem:[%s2829_s5] ss:$0 sm:$0xff] }
 0x746   :  { %2005 = vtanh.f32 %v1458_v15 }
 0x747   :  { %2007 = vtanh.f32 %v1462_v40 }
 0x748   :  { %2009 = vtanh.f32 %v1456_v22 }
 0x749   :  { %2011 = vtanh.f32 %v1467_v41 }
 0x750   :  { %v2006_v58 = vpop.eup %2005 }
 0x751   :  { %v2008_v59 = vpop.eup %2007  ;;  %v1460_v60 = vadd.f32 1.0, %v2006_v58 }
 0x752   :  { %v1464_v61 = vadd.f32 1.0, %v2008_v59  ;;  %v2010_v63 = vpop.eup %2009 }
 0x753   :  { %v1461_v42 = vmul.f32 0.5, %v1460_v60  ;;  %v2012_v46 = vpop.eup %2011 }
 0x754   :  { %v1465_v43 = vmul.f32 0.5, %v1464_v61  ;;  %v1469_v3 = vadd.f32 1.0, %v2012_v46 }
 0x755   :  { %v1472_v1 = vmul.f32 %v2010_v63, %v1461_v42 }
 0x756   :  { %v1471_v45 = vmul.f32 %v1465_v43, %v2771_v16  ;;  %v1470_v47 = vmul.f32 0.5, %v1469_v3 }
 0x758   :  { %v2801_v2 = vadd.f32 %v1472_v1, %v1471_v45 }
 0x75a   :  { %2013 = vtanh.f32 %v2801_v2 }
 0x764   :  { %v2014_v4 = vpop.eup %2013 }
 0x765   :  { %v1475_v48 = vmul.f32 %v2014_v4, %v1470_v47 }
 0x767   :  { %v1476_v5 = vpack.c.bf16 %v1475_v48, %v1475_v48 }
 0x769   :  { %1510 = vmatmul.mubr.bf16.vlgmr.msra.gmra.mrb[44].mxu0 %v1476_v5  ;;  %1551 = vmatmul.mubr.bf16.vlgmr.msra.gmra.mrb[44].mxu1 %v1476_v5 }
 0x76a   :  { %1805 = vmatpush3.bf16.msra.mxu0 %v1937_v49  ;;  %1820 = vmatprep.mubr.msk.bf16.mxu0 %vm2186_vm0, %v2185_v36 }
 0x76b   :  { %1806 = vmatprep.subr.bf16.mxu0 %v2185_v36 }
 0x76e   :  { %1807 = vmatpush3.bf16.msra.mxu0 %v1938_v37 }
 0x76f   :  { %1808 = vmatprep.subr.bf16.mxu0 %v2185_v36 }
 0x772   :  { %1809 = vmatpush3.bf16.msra.mxu0 %v1939_v50 }
 0x773   :  { %1810 = vmatprep.subr.bf16.mxu0 %v2185_v36 }
 0x776   :  { %1811 = vmatpush3.bf16.msra.mxu0 %v1940_v51 }
 0x777   :  { %1812 = vmatprep.subr.bf16.mxu0 %v2185_v36 }
 0x77a   :  { %1813 = vmatpush3.bf16.msra.mxu0 %v1941_v52 }
 0x77b   :  { %1814 = vmatprep.subr.bf16.mxu0 %v2185_v36 }
 0x77e   :  { %1815 = vmatpush3.bf16.msra.mxu0 %v1942_v54 }
 0x77f   :  { %1816 = vmatprep.subr.bf16.mxu0 %v2185_v36 }
 0x782   :  { %1817 = vmatpush3.bf16.msra.mxu0 %v1943_v55 }
 0x783   :  { %1818 = vmatprep.subr.bf16.mxu0 %v2185_v36 }
 0x786   :  { %1819 = vmatpush3.bf16.msra.mxu0 %v1944_v56 }
 0x83c   :  { %v1511_v57 = vpop.f32.mrb[44].mxu0  ;;  %v1552_v10 = vpop.f32.mrb[44].mxu1 }
 0x83d   :  { %v1564_v16 = vadd.f32 %v1511_v57, %v2872_v14  ;;  %v1566_v18 = vadd.f32 %v1552_v10, %v2873_v17  ;;  %v1513_v19 = vpop.f32.mrb[45].mxu0  ;;  %v1554_v0 = vpop.f32.mrb[45].mxu1 }
 0x83e   :  { %v1565_v21 = vadd.f32 %v1513_v19, %v2874_v20  ;;  %v1567_v27 = vadd.f32 %v1554_v0, %v2875_v30  ;;  %v1515_v24 = vpop.f32.mrb[46].mxu0  ;;  %v1556_v25 = vpop.f32.mrb[46].mxu1 }
 0x83f   :  { %v1568_v26 = vmul.f32 0.5, %v1564_v16  ;;  %v1516_v7 = vpop.f32.mrb[47].mxu0  ;;  %v1557_v32 = vpop.f32.mrb[47].mxu1 }
 0x840   :  { %v1572_v33 = vmul.f32 0.5, %v1565_v21  ;;  %v1577_v34 = vmul.f32 0.5, %v1567_v27 }
 0x841   :  { %2015 = vtanh.f32 %v1568_v26 }
 0x842   :  { %2017 = vtanh.f32 %v1572_v33 }
 0x843   :  { %2019 = vtanh.f32 %v1566_v18 }
 0x844   :  { %2021 = vtanh.f32 %v1577_v34 }
 0x84b   :  { %v2016_v9 = vpop.eup %2015 }
 0x84c   :  { %v2018_v44 = vpop.eup %2017  ;;  %v1570_v28 = vadd.f32 1.0, %v2016_v9 }
 0x84d   :  { %v1574_v11 = vadd.f32 1.0, %v2018_v44  ;;  %v2020_v29 = vpop.eup %2019 }
 0x84e   :  { %v1571_v62 = vmul.f32 0.5, %v1570_v28  ;;  %v2022_v12 = vpop.eup %2021 }
 0x84f   :  { %v1575_v22 = vmul.f32 0.5, %v1574_v11  ;;  %v1579_v53 = vadd.f32 1.0, %v2022_v12 }
 0x850   :  { %v1582_v13 = vmul.f32 %v2020_v29, %v1571_v62 }
 0x851   :  { %v1581_v6 = vmul.f32 %v1575_v22, %v2801_v2  ;;  %v1580_v23 = vmul.f32 0.5, %v1579_v53 }
 0x853   :  { %v1583_v8 = vadd.f32 %v1582_v13, %v1581_v6 }
 0x855   :  { %2023 = vtanh.f32 %v1583_v8 }
 0x85f   :  { %v2024_v35 = vpop.eup %2023 }
 0x860   :  { %v1585_v31 = vmul.f32 %v2024_v35, %v1580_v23 }
 0x862   :  { %v1588_v15 = vpack.c.bf16 %v1585_v31, %v1585_v31 }
 0x864   :  { %1821 = vmatmul.mubr.bf16.vlgmr.msra.gmra.mrb[48].mxu0 %v1588_v15 }
 0x937   :  { %v1694_v39 = vpop.f32.mrb[48].mxu0 }
 0x938   :  { %v1695_v40 = vadd.f32 %v1786_v38, %v1694_v39  ;;  %v1822_v41 = vpop.f32.mrb[49].mxu0 }
 0x939   :  { %v1697_v58 = vpop.f32.mrb[50].mxu0 }
 0x93a   :  { %1700 = vst [vmem:[#allocation13] sm:$0xff] %v1695_v40  ;;  %v1823_v59 = vpop.f32.mrb[51].mxu0 }
 0x93b   :  { %2156 = shalt.err (!%p2153_p8)
}
 0x93c   :  { %s2157_s5 = scalar_lea.hbm %s2830_s6, 128 }
 0x93d   :  { %p2158_p9 = scmp.ne.s32.totalorder %s2830_s6, %s2157_s5  ;;  %p2161_p10 = scmp.lt.u32.totalorder %s2157_s5, %s2830_s6 }
 0x93f   :  { %p2163_p11 = pnand %p2161_p10, %p2158_p9 }
 0x941   :  { %2166 = shalt.err (!%p2163_p11)
}
 0x942   :  { %1710 = dma.vmem_to_hbm [thread:$0]  %s1708_s24, 128, %s2830_s6, [#allocation7]  }
 0x943   :  { %2173 = dma.done.wait [#allocation7], 128  }
 0x944   :  { %2174 = vsyncadd [#allocation7], 4294967168 }
 0x945   :  { %1714 = vsyncpa [#allocation6], 1 }
 0x946   :  { %1715 = vsyncpa [#allocation9], 1 }
 0x947   :  { %1716 = vsyncpa [#allocation12], 1 }
 0x948   :  { %1717 = vsyncpa [#allocation7], 1 }

// kernel: tpu_custom_call.1
= control target key start
LH: loop header
LB: loop body
LE: loop exit
PB: predicated region body
PF: predicated region fallthrough
CT: control target
= control target key end

     0   :  { %11 = vsyncpa [#allocation6], 0  ;;  %s2824_s0 = inlined_call_operand.hbm [shape: bf16[8,8,128], index: 0, kind: input, shape index: {}]   ;;  %s2825_s1 = inlined_call_operand.hbm [shape: bf16[128,512], index: 1, kind: input, shape index: {}]   ;;  %s2826_s2 = inlined_call_operand.hbm [shape: bf16[128,512], index: 2, kind: input, shape index: {}]   ;;  %s2827_s3 = inlined_call_operand.vmem [shape: f32[1,512], index: 3, kind: input, shape index: {}]   ;;  %s2828_s4 = inlined_call_operand.hbm [shape: bf16[128,128], index: 4, kind: input, shape index: {}]   ;;  %s2829_s5 = inlined_call_operand.vmem [shape: f32[1,128], index: 5, kind: input, shape index: {}]   ;;  %s2830_s6 = inlined_call_operand.hbm [shape: f32[8,128], index: 6, kind: output, shape index: {}]  }
   0x1   :  { %12 = vsyncpa [#allocation9], 0 }
   0x2   :  { %13 = vsyncpa [#allocation12], 0 }
   0x3   :  { %14 = vsyncpa [#allocation7], 0  ;;  %s2175_s21 = smov [#allocation8]   ;;  %s2057_s25 = scalar_lea.hbm %s2825_s1, 4096 }
   0x4   :  { %s32_s22 = sshll.u32 %s2175_s21, 4  ;;  %p2058_p0 = scmp.ne.s32.totalorder %s2825_s1, %s2057_s25  ;;  %s33_s22 = int_to_ptr.vmem [resolvable:$true] %s32_s22 }
   0x5   :  { %p2061_p1 = scmp.lt.u32.totalorder %s2057_s25, %s2825_s1 }
   0x7   :  { %p2063_p2 = pnand %p2061_p1, %p2058_p0 }
   0x9   :  { %2066 = shalt.err (!%p2063_p2)
}
   0xa   :  { %s2067_s30 = scalar_lea.vmem %s33_s22, 4096  ;;  %p2072_p4 = scmp.lt.s32.totalorder %s33_s22, %s33_s22 }
   0xb   :  { %p2068_p3 = scmp.ne.s32.totalorder %s33_s22, %s2067_s30  ;;  %p2073_p5 = scmp.lt.s32.totalorder %s2067_s30, %s2067_s30 }
   0xd   :  { %p2074_p6 = por %p2073_p5, %p2072_p4 }
   0xf   :  { %p2075_p7 = pnand %p2074_p6, %p2068_p3 }
  0x11   :  { %2078 = shalt.err (!%p2075_p7)
}
  0x12   :  { %s2176_s7 = smov 256   ;;  %s2177_s8 = smov 16  }
  0x13   :  { %38 = dma.hbm_to_vmem [thread:$0]  %s2825_s1, 4096, %s33_s22, [#allocation9], %s2176_s7, %s2176_s7, %s2177_s8  }
  0x14   :  { %s2178_s11 = smov [#allocation5]   ;;  %s2079_s15 = scalar_lea.hbm %s2824_s0, 512 }
  0x15   :  { %s20_s12 = sshll.u32 %s2178_s11, 4  ;;  %p2080_p8 = scmp.ne.s32.totalorder %s2824_s0, %s2079_s15  ;;  %s21_s12 = int_to_ptr.vmem [resolvable:$true] %s20_s12 }
  0x16   :  { %p2083_p9 = scmp.lt.u32.totalorder %s2079_s15, %s2824_s0 }
  0x18   :  { %p2085_p10 = pnand %p2083_p9, %p2080_p8 }
  0x1a   :  { %2088 = shalt.err (!%p2085_p10)
}
  0x1b   :  { %s2089_s20 = scalar_lea.vmem %s21_s12, 512  ;;  %p2094_p12 = scmp.lt.s32.totalorder %s21_s12, %s21_s12 }
  0x1c   :  { %p2090_p11 = scmp.ne.s32.totalorder %s21_s12, %s2089_s20  ;;  %p2095_p13 = scmp.lt.s32.totalorder %s2089_s20, %s2089_s20 }
  0x1e   :  { %p2096_p0 = por %p2095_p13, %p2094_p12 }
  0x20   :  { %p2097_p1 = pnand %p2096_p0, %p2090_p11 }
  0x22   :  { %2100 = shalt.err (!%p2097_p1)
}
  0x23   :  { %s2179_s1 = smov 64   ;;  %s2180_s21 = smov 4  }
  0x24   :  { %26 = dma.hbm_to_vmem [thread:$0]  %s2824_s0, 512, %s21_s12, [#allocation6], %s2179_s1, %s2179_s1, %s2180_s21  }
  0x25   :  { %s2181_s24 = smov [#allocation10]   ;;  %s2182_s26 = smov [#allocation11]  }
  0x26   :  { %s44_s25 = sshll.u32 %s2181_s24, 4  ;;  %s58_s27 = sshll.u32 %s2182_s26, 4  ;;  %s45_s25 = int_to_ptr.vmem [resolvable:$true] %s44_s25  ;;  %s2253_s27 = int_to_ptr.vmem [resolvable:$true] %s58_s27 }
  0x27   :  { %s2101_s30 = scalar_lea.hbm %s2826_s2, 4096 }
  0x28   :  { %p2102_p2 = scmp.ne.s32.totalorder %s2826_s2, %s2101_s30  ;;  %p2105_p3 = scmp.lt.u32.totalorder %s2101_s30, %s2826_s2 }
  0x2a   :  { %p2107_p4 = pnand %p2105_p3, %p2102_p2 }
  0x2c   :  { %2110 = shalt.err (!%p2107_p4)
}
  0x2d   :  { %s2111_s0 = scalar_lea.vmem %s45_s25, 4096  ;;  %p2116_p6 = scmp.lt.s32.totalorder %s45_s25, %s45_s25 }
  0x2e   :  { %p2112_p5 = scmp.ne.s32.totalorder %s45_s25, %s2111_s0  ;;  %p2117_p7 = scmp.lt.s32.totalorder %s2111_s0, %s2111_s0 }
  0x30   :  { %p2118_p8 = por %p2117_p7, %p2116_p6 }
  0x32   :  { %p2119_p9 = pnand %p2118_p8, %p2112_p5 }
  0x34   :  { %2122 = shalt.err (!%p2119_p9)
}
  0x35   :  { %50 = dma.hbm_to_vmem [thread:$0]  %s2826_s2, 4096, %s45_s25, [#allocation9], %s2176_s7, %s2176_s7, %s2177_s8  }
  0x36   :  { %s2123_s17 = scalar_lea.hbm %s2828_s4, 1024 }
  0x37   :  { %p2124_p10 = scmp.ne.s32.totalorder %s2828_s4, %s2123_s17  ;;  %p2127_p11 = scmp.lt.u32.totalorder %s2123_s17, %s2828_s4 }
  0x39   :  { %p2129_p12 = pnand %p2127_p11, %p2124_p10 }
  0x3b   :  { %2132 = shalt.err (!%p2129_p12)
}
  0x3c   :  { %s2133_s23 = scalar_lea.vmem %s2253_s27, 1024  ;;  %p2138_p0 = scmp.lt.s32.totalorder %s2253_s27, %s2253_s27 }
  0x3d   :  { %p2134_p13 = scmp.ne.s32.totalorder %s2253_s27, %s2133_s23  ;;  %p2139_p1 = scmp.lt.s32.totalorder %s2133_s23, %s2133_s23 }
  0x3f   :  { %p2140_p2 = por %p2139_p1, %p2138_p0 }
  0x41   :  { %p2141_p3 = pnand %p2140_p2, %p2134_p13 }
  0x43   :  { %2144 = shalt.err (!%p2141_p3)
}
  0x44   :  { %64 = dma.hbm_to_vmem [thread:$0]  %s2828_s4, 1024, %s2253_s27, [#allocation12], %s2179_s1, %s2179_s1, %s2180_s21  }
  0x45   :  { %2167 = dma.done.wait [#allocation6], 512  }
  0x46   :  { %2168 = vsyncadd [#allocation6], 4294966784 }
  0x47   :  { %2169 = dma.done.wait [#allocation9], 8192  }
  0x48   :  { %2170 = vsyncadd [#allocation9], 4294959104 }
  0x49   :  { %2171 = dma.done.wait [#allocation12], 1024  }
  0x4a   :  { %2172 = vsyncadd [#allocation12], 4294966272  ;;  %v2831_v0 = vmov 0   ;;  %v1837_v1 = vld [vmem:[#allocation8 + $0x4] ss:$16 sps:$4 sm:$0xff]   ;;  %v1898_v44 = vld [vmem:[#allocation5 + $0x8] sm:$0xff]  }
  0x4b   :  { %364 = vmatprep.mubr.bf16.mxu0 %v2831_v0  ;;  %437 = vmatprep.mubr.bf16.mxu1 %v2831_v0  ;;  %v1839_v2 = vld [vmem:[#allocation8 + $0xc] ss:$16 sps:$4 sm:$0xff]   ;;  %v1841_v3 = vld [vmem:[#allocation8] ss:$16 sps:$4 sm:$0xff]   ;;  %v1842_v4 = vld [vmem:[#allocation8 + $0x8] ss:$16 sps:$4 sm:$0xff]  }
  0x4c   :  { %332 = vmatprep.subr.bf16.mxu0 %v1837_v1  ;;  %405 = vmatprep.subr.bf16.mxu1 %v1839_v2  ;;  %v1843_v5 = vld [vmem:[#allocation8 + $0x24] ss:$16 sps:$4 sm:$0xff]   ;;  %v1845_v6 = vld [vmem:[#allocation8 + $0x2c] ss:$16 sps:$4 sm:$0xff]   ;;  %v1847_v7 = vld [vmem:[#allocation8 + $0x20] ss:$16 sps:$4 sm:$0xff]  }
  0x4d   :  { %333 = vmatpush1.bf16.msra.mxu0 %v1841_v3  ;;  %406 = vmatpush1.bf16.msra.mxu1 %v1842_v4  ;;  %v1848_v8 = vld [vmem:[#allocation8 + $0x28] ss:$16 sps:$4 sm:$0xff]   ;;  %v1849_v9 = vld [vmem:[#allocation8 + $0x44] ss:$16 sps:$4 sm:$0xff]   ;;  %v1851_v10 = vld [vmem:[#allocation8 + $0x4c] ss:$16 sps:$4 sm:$0xff]  }
  0x4e   :  { %334 = vmatprep.subr.bf16.mxu0 %v1843_v5  ;;  %407 = vmatprep.subr.bf16.mxu1 %v1845_v6  ;;  %v1853_v11 = vld [vmem:[#allocation8 + $0x40] ss:$16 sps:$4 sm:$0xff]   ;;  %v1854_v12 = vld [vmem:[#allocation8 + $0x48] ss:$16 sps:$4 sm:$0xff]   ;;  %v1855_v13 = vld [vmem:[#allocation8 + $0x64] ss:$16 sps:$4 sm:$0xff]  }
  0x4f   :  { %v1857_v14 = vld [vmem:[#allocation8 + $0x6c] ss:$16 sps:$4 sm:$0xff]   ;;  %v1859_v15 = vld [vmem:[#allocation8 + $0x60] ss:$16 sps:$4 sm:$0xff]   ;;  %v1860_v16 = vld [vmem:[#allocation8 + $0x68] ss:$16 sps:$4 sm:$0xff]  }
  0x50   :  { %v1861_v17 = vld [vmem:[#allocation8 + $0x84] ss:$16 sps:$4 sm:$0xff]   ;;  %v1863_v18 = vld [vmem:[#allocation8 + $0x8c] ss:$16 sps:$4 sm:$0xff]   ;;  %v1865_v19 = vld [vmem:[#allocation8 + $0x80] ss:$16 sps:$4 sm:$0xff]  }
  0x51   :  { %335 = vmatpush1.bf16.msra.mxu0 %v1847_v7  ;;  %408 = vmatpush1.bf16.msra.mxu1 %v1848_v8  ;;  %v1866_v20 = vld [vmem:[#allocation8 + $0x88] ss:$16 sps:$4 sm:$0xff]   ;;  %v1867_v21 = vld [vmem:[#allocation8 + $0xa4] ss:$16 sps:$4 sm:$0xff]   ;;  %v1869_v22 = vld [vmem:[#allocation8 + $0xac] ss:$16 sps:$4 sm:$0xff]   ;;  %v128_v7 = vlaneseq }
  0x52   :  { %336 = vmatprep.subr.bf16.mxu0 %v1849_v9  ;;  %409 = vmatprep.subr.bf16.mxu1 %v1851_v10  ;;  %v1871_v23 = vld [vmem:[#allocation8 + $0xa0] ss:$16 sps:$4 sm:$0xff]   ;;  %v1872_v24 = vld [vmem:[#allocation8 + $0xa8] ss:$16 sps:$4 sm:$0xff]   ;;  %v1873_v25 = vld [vmem:[#allocation8 + $0xc4] ss:$16 sps:$4 sm:$0xff]  }
  0x53   :  { %v1875_v26 = vld [vmem:[#allocation8 + $0xcc] ss:$16 sps:$4 sm:$0xff]   ;;  %v1877_v27 = vld [vmem:[#allocation8 + $0xc0] ss:$16 sps:$4 sm:$0xff]   ;;  %v1878_v28 = vld [vmem:[#allocation8 + $0xc8] ss:$16 sps:$4 sm:$0xff]  }
  0x54   :  { %v1879_v29 = vld [vmem:[#allocation8 + $0xe4] ss:$16 sps:$4 sm:$0xff]   ;;  %v1881_v30 = vld [vmem:[#allocation8 + $0xec] ss:$16 sps:$4 sm:$0xff]   ;;  %v1883_v31 = vld [vmem:[#allocation8 + $0xe0] ss:$16 sps:$4 sm:$0xff]  }
  0x55   :  { %337 = vmatpush1.bf16.msra.mxu0 %v1853_v11  ;;  %410 = vmatpush1.bf16.msra.mxu1 %v1854_v12  ;;  %v1884_v32 = vld [vmem:[#allocation8 + $0xe8] ss:$16 sps:$4 sm:$0xff]   ;;  %v2292_v33 = vld [vmem:[#allocation10 + $0x4] ss:$16 sps:$4 sm:$0xff]   ;;  %v2294_v34 = vld [vmem:[#allocation10 + $0xc] ss:$16 sps:$4 sm:$0xff]  }
  0x56   :  { %338 = vmatprep.subr.bf16.mxu0 %v1855_v13  ;;  %411 = vmatprep.subr.bf16.mxu1 %v1857_v14  ;;  %v1885_v35 = vld [vmem:[#allocation5] sm:$0xff]   ;;  %v2298_v37 = vld [vmem:[#allocation10 + $0x8] ss:$16 sps:$4 sm:$0xff]   ;;  %v2304_v39 = vld [vmem:[#allocation10 + $0x2c] ss:$16 sps:$4 sm:$0xff]   ;;  %v2184_v6 = vmov 0.0|0.0  }
  0x57   :  { %v2296_v36 = vld [vmem:[#allocation10] ss:$16 sps:$4 sm:$0xff]   ;;  %v2302_v38 = vld [vmem:[#allocation10 + $0x24] ss:$16 sps:$4 sm:$0xff]   ;;  %v2310_v41 = vld [vmem:[#allocation10 + $0x28] ss:$16 sps:$4 sm:$0xff]  }
  0x58   :  { %v2306_v40 = vld [vmem:[#allocation10 + $0x20] ss:$16 sps:$4 sm:$0xff]   ;;  %v2314_v42 = vld [vmem:[#allocation10 + $0x44] ss:$16 sps:$4 sm:$0xff]   ;;  %v2316_v43 = vld [vmem:[#allocation10 + $0x4c] ss:$16 sps:$4 sm:$0xff]  }
  0x59   :  { %339 = vmatpush1.bf16.msra.mxu0 %v1859_v15  ;;  %412 = vmatpush1.bf16.msra.mxu1 %v1860_v16  ;;  %v2320_v45 = vld [vmem:[#allocation10 + $0x40] ss:$16 sps:$4 sm:$0xff]   ;;  %v2322_v46 = vld [vmem:[#allocation10 + $0x48] ss:$16 sps:$4 sm:$0xff]   ;;  %v2326_v47 = vld [vmem:[#allocation10 + $0x64] ss:$16 sps:$4 sm:$0xff]  }
  0x5a   :  { %340 = vmatprep.subr.bf16.mxu0 %v1861_v17  ;;  %413 = vmatprep.subr.bf16.mxu1 %v1863_v18  ;;  %v2330_v48 = vld [vmem:[#allocation10 + $0x6c] ss:$16 sps:$4 sm:$0xff]   ;;  %v2332_v49 = vld [vmem:[#allocation10 + $0x60] ss:$16 sps:$4 sm:$0xff]   ;;  %v2334_v50 = vld [vmem:[#allocation10 + $0x68] ss:$16 sps:$4 sm:$0xff]  }
  0x5b   :  { %v2338_v51 = vld [vmem:[#allocation10 + $0x84] ss:$16 sps:$4 sm:$0xff]   ;;  %v2342_v52 = vld [vmem:[#allocation10 + $0x8c] ss:$16 sps:$4 sm:$0xff]   ;;  %v2346_v54 = vld [vmem:[#allocation10 + $0x80] ss:$16 sps:$4 sm:$0xff]  }
  0x5c   :  { %v1911_v53 = vld [vmem:[#allocation5 + $0x10] sm:$0xff]   ;;  %v2348_v55 = vld [vmem:[#allocation10 + $0x88] ss:$16 sps:$4 sm:$0xff]   ;;  %v2352_v57 = vld [vmem:[#allocation10 + $0xac] ss:$16 sps:$4 sm:$0xff]   ;;  %v129_v8 = vshrl.u32 %v128_v7, 7 }
  0x5d   :  { %341 = vmatpush1.bf16.msra.mxu0 %v1865_v19  ;;  %414 = vmatpush1.bf16.msra.mxu1 %v1866_v20  ;;  %v2350_v56 = vld [vmem:[#allocation10 + $0xa4] ss:$16 sps:$4 sm:$0xff]   ;;  %v2360_v58 = vld [vmem:[#allocation10 + $0xa0] ss:$16 sps:$4 sm:$0xff]   ;;  %v2362_v59 = vld [vmem:[#allocation10 + $0xa8] ss:$16 sps:$4 sm:$0xff]  }
  0x5e   :  { %342 = vmatprep.subr.bf16.mxu0 %v1867_v21  ;;  %415 = vmatprep.subr.bf16.mxu1 %v1869_v22  ;;  %v2366_v60 = vld [vmem:[#allocation10 + $0xc4] ss:$16 sps:$4 sm:$0xff]   ;;  %v2368_v61 = vld [vmem:[#allocation10 + $0xcc] ss:$16 sps:$4 sm:$0xff]   ;;  %v2374_v63 = vld [vmem:[#allocation10 + $0xc0] ss:$16 sps:$4 sm:$0xff]  }
  0x5f   :  { %v1924_v62 = vld [vmem:[#allocation5 + $0x18] sm:$0xff]   ;;  %v2380_v2 = vld [vmem:[#allocation10 + $0xe4] ss:$16 sps:$4 sm:$0xff]   ;;  %v2386_v4 = vld [vmem:[#allocation10 + $0xe0] ss:$16 sps:$4 sm:$0xff]   ;;  %v138_v9 = vsub.s32 2, %v129_v8 }
  0x60   :  { %v2376_v1 = vld [vmem:[#allocation10 + $0xc8] ss:$16 sps:$4 sm:$0xff]   ;;  %v2382_v3 = vld [vmem:[#allocation10 + $0xec] ss:$16 sps:$4 sm:$0xff]   ;;  %v142_v10 = vsub.s32 3, %v129_v8  ;;  %v130_v11 = vsub.s32 0, %v129_v8 }
  0x61   :  { %343 = vmatpush1.bf16.msra.mxu0 %v1871_v23  ;;  %416 = vmatpush1.bf16.msra.mxu1 %v1872_v24  ;;  %v2388_v5 = vld [vmem:[#allocation10 + $0xe8] ss:$16 sps:$4 sm:$0xff]   ;;  %v126_v12 = vld [vmem:[%s2827_s3] sm:$0xf]  ;;  %v134_v13 = vsub.s32 1, %v129_v8  ;;  %vm2186_vm0 = vmmov 0  }
  0x62   :  { %344 = vmatprep.subr.bf16.mxu0 %v1873_v25  ;;  %417 = vmatprep.subr.bf16.mxu1 %v1875_v26  ;;  %v2435_v14 = vrot.slane %v126_v12, %v138_v9  ;;  %v2441_v17 = vrot.slane %v126_v12, %v142_v10  ;;  %v131_v18 = vrot.slane %v126_v12, %v130_v11  ;;  %s2187_s21 = smov [#allocation13]  }
  0x63   :  { %v135_v21 = vrot.slane %v126_v12, %v134_v13  ;;  %s1707_s24 = sshll.u32 %s2187_s21, 4  ;;  %s1708_s24 = int_to_ptr.vmem [resolvable:$true] %s1707_s24 }
  0x64   :  { %s2145_s25 = scalar_lea.vmem %s1708_s24, 128  ;;  %p2150_p5 = scmp.lt.s32.totalorder %s1708_s24, %s1708_s24 }
  0x65   :  { %345 = vmatpush1.bf16.msra.mxu0 %v1877_v27  ;;  %418 = vmatpush1.bf16.msra.mxu1 %v1878_v28  ;;  %p2146_p4 = scmp.ne.s32.totalorder %s1708_s24, %s2145_s25  ;;  %p2151_p6 = scmp.lt.s32.totalorder %s2145_s25, %s2145_s25 }
  0x66   :  { %346 = vmatprep.subr.bf16.mxu0 %v1879_v29  ;;  %419 = vmatprep.subr.bf16.mxu1 %v1881_v30 }
  0x67   :  { %p2152_p7 = por %p2151_p6, %p2150_p5 }
  0x69   :  { %347 = vmatpush1.bf16.msra.mxu0 %v1883_v31  ;;  %420 = vmatpush1.bf16.msra.mxu1 %v1884_v32  ;;  %p2153_p8 = pnand %p2152_p7, %p2146_p4 }
  0x6a   :  { %708 = vmatprep.subr.bf16.mxu0 %v2292_v33  ;;  %749 = vmatprep.subr.bf16.mxu1 %v2294_v34 }
  0x6c   :  { %365 = vmatmul.mubr.bf16.vlgmr.msra.gmra.mrb[0].mxu0 %v1885_v35  ;;  %438 = vmatmul.mubr.bf16.vlgmr.msra.gmra.mrb[0].mxu1 %v1885_v35 }
  0x6d   :  { %709 = vmatpush1.bf16.msra.mxu0 %v2296_v36  ;;  %750 = vmatpush1.bf16.msra.mxu1 %v2298_v37 }
  0x6e   :  { %710 = vmatprep.subr.bf16.mxu0 %v2302_v38  ;;  %751 = vmatprep.subr.bf16.mxu1 %v2304_v39 }
  0x6f   :  { %374 = vmatprep.mubr.bf16.mxu0 %v2831_v0  ;;  %447 = vmatprep.mubr.bf16.mxu1 %v2831_v0 }
  0x71   :  { %711 = vmatpush1.bf16.msra.mxu0 %v2306_v40  ;;  %752 = vmatpush1.bf16.msra.mxu1 %v2310_v41 }
  0x72   :  { %712 = vmatprep.subr.bf16.mxu0 %v2314_v42  ;;  %753 = vmatprep.subr.bf16.mxu1 %v2316_v43 }
  0x74   :  { %375 = vmatmul.mubr.bf16.gmra.mrb[4].mxu0 %v1898_v44  ;;  %448 = vmatmul.mubr.bf16.gmra.mrb[4].mxu1 %v1898_v44 }
  0x75   :  { %713 = vmatpush1.bf16.msra.mxu0 %v2320_v45  ;;  %754 = vmatpush1.bf16.msra.mxu1 %v2322_v46 }
  0x76   :  { %714 = vmatprep.subr.bf16.mxu0 %v2326_v47  ;;  %755 = vmatprep.subr.bf16.mxu1 %v2330_v48 }
  0x77   :  { %384 = vmatprep.mubr.bf16.mxu0 %v2831_v0  ;;  %457 = vmatprep.mubr.bf16.mxu1 %v2831_v0 }
  0x79   :  { %715 = vmatpush1.bf16.msra.mxu0 %v2332_v49  ;;  %756 = vmatpush1.bf16.msra.mxu1 %v2334_v50 }
  0x7a   :  { %716 = vmatprep.subr.bf16.mxu0 %v2338_v51  ;;  %757 = vmatprep.subr.bf16.mxu1 %v2342_v52 }
  0x7c   :  { %385 = vmatmul.mubr.bf16.gmra.mrb[8].mxu0 %v1911_v53  ;;  %458 = vmatmul.mubr.bf16.gmra.mrb[8].mxu1 %v1911_v53 }
  0x7d   :  { %717 = vmatpush1.bf16.msra.mxu0 %v2346_v54  ;;  %758 = vmatpush1.bf16.msra.mxu1 %v2348_v55 }
  0x7e   :  { %718 = vmatprep.subr.bf16.mxu0 %v2350_v56  ;;  %759 = vmatprep.subr.bf16.mxu1 %v2352_v57 }
  0x7f   :  { %394 = vmatprep.mubr.bf16.mxu0 %v2831_v0  ;;  %467 = vmatprep.mubr.bf16.mxu1 %v2831_v0 }
  0x81   :  { %719 = vmatpush1.bf16.msra.mxu0 %v2360_v58  ;;  %760 = vmatpush1.bf16.msra.mxu1 %v2362_v59 }
  0x82   :  { %720 = vmatprep.subr.bf16.mxu0 %v2366_v60  ;;  %761 = vmatprep.subr.bf16.mxu1 %v2368_v61 }
  0x84   :  { %395 = vmatmul.mubr.bf16.gmra.mrb[12].mxu0 %v1924_v62  ;;  %468 = vmatmul.mubr.bf16.gmra.mrb[12].mxu1 %v1924_v62 }
  0x85   :  { %721 = vmatpush1.bf16.msra.mxu0 %v2374_v63  ;;  %762 = vmatpush1.bf16.msra.mxu1 %v2376_v1 }
  0x86   :  { %722 = vmatprep.subr.bf16.mxu0 %v2380_v2  ;;  %763 = vmatprep.subr.bf16.mxu1 %v2382_v3 }
  0x87   :  { %740 = vmatprep.mubr.bf16.mxu0 %v2831_v0  ;;  %781 = vmatprep.mubr.bf16.mxu1 %v2831_v0 }
  0x89   :  { %723 = vmatpush1.bf16.msra.mxu0 %v2386_v4  ;;  %764 = vmatpush1.bf16.msra.mxu1 %v2388_v5 }
  0x8a   :  { %817 = vmatprep.subr.bf16.mxu0 %v2292_v33  ;;  %858 = vmatprep.subr.bf16.mxu1 %v2294_v34 }
  0x8c   :  { %741 = vmatmul.mubr.bf16.vlgmr.msra.gmra.mrb[16].mxu0 %v2184_v6  ;;  %782 = vmatmul.mubr.bf16.vlgmr.msra.gmra.mrb[16].mxu1 %v2184_v6 }
  0x8d   :  { %818 = vmatpush1.bf16.msra.mxu0 %v2296_v36  ;;  %859 = vmatpush1.bf16.msra.mxu1 %v2298_v37 }
  0x8e   :  { %819 = vmatprep.subr.bf16.mxu0 %v2302_v38  ;;  %860 = vmatprep.subr.bf16.mxu1 %v2304_v39 }
  0x8f   :  { %849 = vmatprep.mubr.bf16.mxu0 %v2831_v0  ;;  %890 = vmatprep.mubr.bf16.mxu1 %v2831_v0 }
  0x91   :  { %820 = vmatpush1.bf16.msra.mxu0 %v2306_v40  ;;  %861 = vmatpush1.bf16.msra.mxu1 %v2310_v41 }
  0x92   :  { %821 = vmatprep.subr.bf16.mxu0 %v2314_v42  ;;  %862 = vmatprep.subr.bf16.mxu1 %v2316_v43 }
  0x95   :  { %822 = vmatpush1.bf16.msra.mxu0 %v2320_v45  ;;  %863 = vmatpush1.bf16.msra.mxu1 %v2322_v46 }
  0x96   :  { %823 = vmatprep.subr.bf16.mxu0 %v2326_v47  ;;  %864 = vmatprep.subr.bf16.mxu1 %v2330_v48 }
  0x99   :  { %824 = vmatpush1.bf16.msra.mxu0 %v2332_v49  ;;  %865 = vmatpush1.bf16.msra.mxu1 %v2334_v50 }
  0x9a   :  { %825 = vmatprep.subr.bf16.mxu0 %v2338_v51  ;;  %866 = vmatprep.subr.bf16.mxu1 %v2342_v52 }
  0x9d   :  { %826 = vmatpush1.bf16.msra.mxu0 %v2346_v54  ;;  %867 = vmatpush1.bf16.msra.mxu1 %v2348_v55 }
  0x9e   :  { %827 = vmatprep.subr.bf16.mxu0 %v2350_v56  ;;  %868 = vmatprep.subr.bf16.mxu1 %v2352_v57 }
  0xa1   :  { %828 = vmatpush1.bf16.msra.mxu0 %v2360_v58  ;;  %869 = vmatpush1.bf16.msra.mxu1 %v2362_v59 }
  0xa2   :  { %829 = vmatprep.subr.bf16.mxu0 %v2366_v60  ;;  %870 = vmatprep.subr.bf16.mxu1 %v2368_v61 }
  0xa5   :  { %830 = vmatpush1.bf16.msra.mxu0 %v2374_v63  ;;  %871 = vmatpush1.bf16.msra.mxu1 %v2376_v1 }
  0xa6   :  { %831 = vmatprep.subr.bf16.mxu0 %v2380_v2  ;;  %872 = vmatprep.subr.bf16.mxu1 %v2382_v3 }
  0xa9   :  { %832 = vmatpush1.bf16.msra.mxu0 %v2386_v4  ;;  %873 = vmatpush1.bf16.msra.mxu1 %v2388_v5 }
  0xaa   :  { %927 = vmatprep.subr.bf16.mxu0 %v2292_v33  ;;  %968 = vmatprep.subr.bf16.mxu1 %v2294_v34 }
 0x13f   :  { %v2437_v15 = vpop.f32.mrb[0].mxu0  ;;  %v2439_v16 = vpop.f32.mrb[0].mxu1 }
 0x140   :  { %v368_v19 = vpop.f32.mrb[1].mxu0  ;;  %v441_v20 = vpop.f32.mrb[1].mxu1 }
 0x141   :  { %v370_v22 = vpop.f32.mrb[2].mxu0  ;;  %v443_v23 = vpop.f32.mrb[2].mxu1 }
 0x142   :  { %v2443_v24 = vadd.f32 %v370_v22, %v131_v18  ;;  %v372_v25 = vpop.f32.mrb[3].mxu0  ;;  %v2446_v26 = vadd.f32 %v443_v23, %v2435_v14  ;;  %v445_v27 = vpop.f32.mrb[3].mxu1 }
 0x143   :  { %v2448_v28 = vadd.f32 %v372_v25, %v135_v21  ;;  %v2451_v29 = vadd.f32 %v445_v27, %v2441_v17 }
 0x147   :  { %v376_v30 = vpop.f32.mrb[4].mxu0  ;;  %v449_v31 = vpop.f32.mrb[4].mxu1 }
 0x148   :  { %v2453_v32 = vadd.f32 %v376_v30, %v131_v18  ;;  %v378_v35 = vpop.f32.mrb[5].mxu0  ;;  %v2456_v44 = vadd.f32 %v449_v31, %v2435_v14  ;;  %v451_v53 = vpop.f32.mrb[5].mxu1 }
 0x149   :  { %v2458_v62 = vadd.f32 %v378_v35, %v135_v21  ;;  %v380_v6 = vpop.f32.mrb[6].mxu0  ;;  %v2461_v7 = vadd.f32 %v451_v53, %v2441_v17  ;;  %v453_v8 = vpop.f32.mrb[6].mxu1 }
 0x14a   :  { %v2463_v9 = vadd.f32 %v380_v6, %v131_v18  ;;  %v382_v10 = vpop.f32.mrb[7].mxu0  ;;  %v2466_v11 = vadd.f32 %v453_v8, %v2435_v14  ;;  %v455_v12 = vpop.f32.mrb[7].mxu1 }
 0x14b   :  { %2833 = vst [vmem:[#allocation18_spill] sm:$0xff] %v2461_v7  ;;  %v2468_v13 = vadd.f32 %v382_v10, %v135_v21  ;;  %v2471_v22 = vadd.f32 %v455_v12, %v2441_v17 }
 0x14c   :  { %2834 = vst [vmem:[#allocation19_spill] sm:$0xff] %v2463_v9  ;;  %2835 = vst [vmem:[#allocation20_spill] sm:$0xff] %v2466_v11 }
 0x14d   :  { %2836 = vst [vmem:[#allocation21_spill] sm:$0xff] %v2468_v13  ;;  %2837 = vst [vmem:[#allocation22_spill] sm:$0xff] %v2471_v22 }
 0x14f   :  { %v386_v23 = vpop.f32.mrb[8].mxu0  ;;  %v459_v25 = vpop.f32.mrb[8].mxu1 }
 0x150   :  { %v2473_v27 = vadd.f32 %v386_v23, %v131_v18  ;;  %v388_v30 = vpop.f32.mrb[9].mxu0  ;;  %v2476_v31 = vadd.f32 %v459_v25, %v2435_v14  ;;  %v461_v35 = vpop.f32.mrb[9].mxu1 }
 0x151   :  { %v2478_v53 = vadd.f32 %v388_v30, %v135_v21  ;;  %v390_v6 = vpop.f32.mrb[10].mxu0  ;;  %v2481_v8 = vadd.f32 %v461_v35, %v2441_v17  ;;  %v463_v10 = vpop.f32.mrb[10].mxu1 }
 0x152   :  { %2838 = vst [vmem:[#allocation23_spill] sm:$0xff] %v2473_v27  ;;  %2839 = vst [vmem:[#allocation24_spill] sm:$0xff] %v2476_v31  ;;  %v2483_v0 = vadd.f32 %v390_v6, %v131_v18  ;;  %v392_v12 = vpop.f32.mrb[11].mxu0  ;;  %v2486_v22 = vadd.f32 %v463_v10, %v2435_v14  ;;  %v465_v23 = vpop.f32.mrb[11].mxu1 }
 0x153   :  { %2840 = vst [vmem:[#allocation25_spill] sm:$0xff] %v2478_v53  ;;  %2841 = vst [vmem:[#allocation26_spill] sm:$0xff] %v2481_v8  ;;  %v2488_v27 = vadd.f32 %v392_v12, %v135_v21  ;;  %v2491_v25 = vadd.f32 %v465_v23, %v2441_v17 }
 0x154   :  { %2842 = vst [vmem:[#allocation27_spill] sm:$0xff] %v2483_v0  ;;  %2843 = vst [vmem:[#allocation28_spill] sm:$0xff] %v2486_v22 }
 0x155   :  { %2844 = vst [vmem:[#allocation29_spill] sm:$0xff] %v2488_v27  ;;  %2845 = vst [vmem:[#allocation30_spill] sm:$0xff] %v2491_v25 }
 0x157   :  { %v396_v31 = vpop.f32.mrb[12].mxu0  ;;  %v469_v30 = vpop.f32.mrb[12].mxu1 }
 0x158   :  { %v2493_v53 = vadd.f32 %v396_v31, %v131_v18  ;;  %v398_v13 = vpop.f32.mrb[13].mxu0  ;;  %v2496_v35 = vadd.f32 %v469_v30, %v2435_v14  ;;  %v471_v6 = vpop.f32.mrb[13].mxu1 }
 0x159   :  { %v2498_v0 = vadd.f32 %v398_v13, %v135_v21  ;;  %v400_v8 = vpop.f32.mrb[14].mxu0  ;;  %v2501_v10 = vadd.f32 %v471_v6, %v2441_v17  ;;  %v473_v12 = vpop.f32.mrb[14].mxu1  ;;  %v367_v13 = vadd.f32 %v2437_v15, %v131_v18  ;;  %v369_v6 = vadd.f32 %v368_v19, %v135_v21 }
 0x15a   :  { %2846 = vst [vmem:[#allocation31_spill] sm:$0xff] %v2493_v53  ;;  %2847 = vst [vmem:[#allocation32_spill] sm:$0xff] %v2496_v35  ;;  %v2503_v27 = vadd.f32 %v400_v8, %v131_v18  ;;  %v402_v23 = vpop.f32.mrb[15].mxu0  ;;  %v2506_v25 = vadd.f32 %v473_v12, %v2435_v14  ;;  %v475_v31 = vpop.f32.mrb[15].mxu1 }
 0x15b   :  { %2848 = vst [vmem:[#allocation33_spill] sm:$0xff] %v2498_v0  ;;  %2849 = vst [vmem:[#allocation34_spill] sm:$0xff] %v2501_v10  ;;  %v2508_v53 = vadd.f32 %v402_v23, %v135_v21  ;;  %v2511_v30 = vadd.f32 %v475_v31, %v2441_v17  ;;  %v440_v0 = vadd.f32 %v2439_v16, %v2435_v14 }
 0x15c   :  { %2850 = vst [vmem:[#allocation35_spill] sm:$0xff] %v2503_v27  ;;  %2851 = vst [vmem:[#allocation36_spill] sm:$0xff] %v2506_v25  ;;  %v442_v10 = vadd.f32 %v441_v20, %v2441_v17 }
 0x15d   :  { %2852 = vst [vmem:[#allocation37_spill] sm:$0xff] %v2508_v53  ;;  %2853 = vst [vmem:[#allocation38_spill] sm:$0xff] %v2511_v30 }
 0x15f   :  { %v742_v8 = vpop.f32.mrb[16].mxu0  ;;  %v783_v27 = vpop.f32.mrb[16].mxu1 }
 0x160   :  { %v794_v35 = vadd.f32 %v742_v8, %v367_v13  ;;  %v796_v22 = vadd.f32 %v783_v27, %v440_v0  ;;  %v744_v12 = vpop.f32.mrb[17].mxu0  ;;  %v785_v25 = vpop.f32.mrb[17].mxu1 }
 0x161   :  { %v795_v11 = vadd.f32 %v744_v12, %v369_v6  ;;  %v797_v23 = vadd.f32 %v785_v25, %v442_v10  ;;  %v746_v53 = vpop.f32.mrb[18].mxu0  ;;  %v787_v9 = vpop.f32.mrb[18].mxu1 }
 0x162   :  { %v798_v31 = vmul.f32 0.5, %v794_v35  ;;  %v747_v30 = vpop.f32.mrb[19].mxu0  ;;  %v788_v7 = vpop.f32.mrb[19].mxu1 }
 0x163   :  { %v802_v15 = vmul.f32 0.5, %v795_v11  ;;  %v807_v14 = vmul.f32 0.5, %v797_v23  ;;  %v2854_v30 = vmov 0  }
 0x164   :  { %1945 = vtanh.f32 %v798_v31 }
 0x165   :  { %1947 = vtanh.f32 %v802_v15 }
 0x166   :  { %1949 = vtanh.f32 %v796_v22 }
 0x167   :  { %1951 = vtanh.f32 %v807_v14 }
 0x16e   :  { %v1946_v16 = vpop.eup %1945 }
 0x16f   :  { %v1948_v17 = vpop.eup %1947  ;;  %v800_v18 = vadd.f32 1.0, %v1946_v16 }
 0x170   :  { %v804_v19 = vadd.f32 1.0, %v1948_v17  ;;  %v1950_v20 = vpop.eup %1949 }
 0x171   :  { %v801_v0 = vmul.f32 0.5, %v800_v18  ;;  %v1952_v7 = vpop.eup %1951 }
 0x172   :  { %v805_v21 = vmul.f32 0.5, %v804_v19  ;;  %v809_v9 = vadd.f32 1.0, %v1952_v7 }
 0x173   :  { %v812_v27 = vmul.f32 %v1950_v20, %v801_v0 }
 0x174   :  { %v811_v25 = vmul.f32 0.0, %v805_v21  ;;  %v810_v11 = vmul.f32 0.5, %v809_v9 }
 0x176   :  { %v2517_v53 = vadd.f32 %v812_v27, %v811_v25 }
 0x178   :  { %1953 = vtanh.f32 %v2517_v53 }
 0x182   :  { %v1954_v35 = vpop.eup %1953 }
 0x183   :  { %v815_v22 = vmul.f32 %v1954_v35, %v810_v11 }
 0x185   :  { %v816_v10 = vpack.c.bf16 %v815_v22, %v815_v22 }
 0x187   :  { %850 = vmatmul.mubr.bf16.vlgmr.msra.gmra.mrb[20].mxu0 %v816_v10  ;;  %891 = vmatmul.mubr.bf16.vlgmr.msra.gmra.mrb[20].mxu1 %v816_v10 }
 0x188   :  { %928 = vmatpush1.bf16.msra.mxu0 %v2296_v36  ;;  %969 = vmatpush1.bf16.msra.mxu1 %v2298_v37 }
 0x189   :  { %929 = vmatprep.subr.bf16.mxu0 %v2302_v38  ;;  %970 = vmatprep.subr.bf16.mxu1 %v2304_v39 }
 0x18a   :  { %959 = vmatprep.mubr.bf16.mxu0 %v2854_v30  ;;  %1000 = vmatprep.mubr.bf16.mxu1 %v2854_v30 }
 0x18c   :  { %930 = vmatpush1.bf16.msra.mxu0 %v2306_v40  ;;  %971 = vmatpush1.bf16.msra.mxu1 %v2310_v41 }
 0x18d   :  { %931 = vmatprep.subr.bf16.mxu0 %v2314_v42  ;;  %972 = vmatprep.subr.bf16.mxu1 %v2316_v43 }
 0x190   :  { %932 = vmatpush1.bf16.msra.mxu0 %v2320_v45  ;;  %973 = vmatpush1.bf16.msra.mxu1 %v2322_v46 }
 0x191   :  { %933 = vmatprep.subr.bf16.mxu0 %v2326_v47  ;;  %974 = vmatprep.subr.bf16.mxu1 %v2330_v48 }
 0x194   :  { %934 = vmatpush1.bf16.msra.mxu0 %v2332_v49  ;;  %975 = vmatpush1.bf16.msra.mxu1 %v2334_v50 }
 0x195   :  { %935 = vmatprep.subr.bf16.mxu0 %v2338_v51  ;;  %976 = vmatprep.subr.bf16.mxu1 %v2342_v52 }
 0x198   :  { %936 = vmatpush1.bf16.msra.mxu0 %v2346_v54  ;;  %977 = vmatpush1.bf16.msra.mxu1 %v2348_v55 }
 0x199   :  { %937 = vmatprep.subr.bf16.mxu0 %v2350_v56  ;;  %978 = vmatprep.subr.bf16.mxu1 %v2352_v57 }
 0x19c   :  { %938 = vmatpush1.bf16.msra.mxu0 %v2360_v58  ;;  %979 = vmatpush1.bf16.msra.mxu1 %v2362_v59 }
 0x19d   :  { %939 = vmatprep.subr.bf16.mxu0 %v2366_v60  ;;  %980 = vmatprep.subr.bf16.mxu1 %v2368_v61 }
 0x1a0   :  { %940 = vmatpush1.bf16.msra.mxu0 %v2374_v63  ;;  %981 = vmatpush1.bf16.msra.mxu1 %v2376_v1 }
 0x1a1   :  { %941 = vmatprep.subr.bf16.mxu0 %v2380_v2  ;;  %982 = vmatprep.subr.bf16.mxu1 %v2382_v3 }
 0x1a4   :  { %942 = vmatpush1.bf16.msra.mxu0 %v2386_v4  ;;  %983 = vmatpush1.bf16.msra.mxu1 %v2388_v5 }
 0x1a5   :  { %1037 = vmatprep.subr.bf16.mxu0 %v2292_v33  ;;  %1078 = vmatprep.subr.bf16.mxu1 %v2294_v34 }
 0x25a   :  { %v851_v13 = vpop.f32.mrb[20].mxu0  ;;  %v892_v6 = vpop.f32.mrb[20].mxu1 }
 0x25b   :  { %v904_v8 = vadd.f32 %v851_v13, %v2443_v24  ;;  %v906_v12 = vadd.f32 %v892_v6, %v2446_v26  ;;  %v853_v23 = vpop.f32.mrb[21].mxu0  ;;  %v894_v31 = vpop.f32.mrb[21].mxu1 }
 0x25c   :  { %v905_v15 = vadd.f32 %v853_v23, %v2448_v28  ;;  %v907_v14 = vadd.f32 %v894_v31, %v2451_v29  ;;  %v855_v16 = vpop.f32.mrb[22].mxu0  ;;  %v896_v17 = vpop.f32.mrb[22].mxu1 }
 0x25d   :  { %v908_v18 = vmul.f32 0.5, %v904_v8  ;;  %v856_v19 = vpop.f32.mrb[23].mxu0  ;;  %v897_v0 = vpop.f32.mrb[23].mxu1 }
 0x25e   :  { %v912_v20 = vmul.f32 0.5, %v905_v15  ;;  %v917_v21 = vmul.f32 0.5, %v907_v14 }
 0x25f   :  { %1955 = vtanh.f32 %v908_v18  ;;  %v2855_v18 = vld [vmem:[#allocation18_spill] sm:$0xff] }
 0x260   :  { %1957 = vtanh.f32 %v912_v20 }
 0x261   :  { %1959 = vtanh.f32 %v906_v12 }
 0x262   :  { %1961 = vtanh.f32 %v917_v21 }
 0x269   :  { %v1956_v27 = vpop.eup %1955 }
 0x26a   :  { %v1958_v24 = vpop.eup %1957  ;;  %v910_v25 = vadd.f32 1.0, %v1956_v27 }
 0x26b   :  { %v914_v26 = vadd.f32 1.0, %v1958_v24  ;;  %v1960_v9 = vpop.eup %1959 }
 0x26c   :  { %v911_v7 = vmul.f32 0.5, %v910_v25  ;;  %v1962_v22 = vpop.eup %1961 }
 0x26d   :  { %v915_v28 = vmul.f32 0.5, %v914_v26  ;;  %v919_v10 = vadd.f32 1.0, %v1962_v22 }
 0x26e   :  { %v922_v11 = vmul.f32 %v1960_v9, %v911_v7 }
 0x26f   :  { %v921_v29 = vmul.f32 %v915_v28, %v2517_v53  ;;  %v920_v13 = vmul.f32 0.5, %v919_v10 }
 0x271   :  { %v2559_v35 = vadd.f32 %v922_v11, %v921_v29 }
 0x273   :  { %1963 = vtanh.f32 %v2559_v35 }
 0x27d   :  { %v1964_v6 = vpop.eup %1963 }
 0x27e   :  { %v925_v8 = vmul.f32 %v1964_v6, %v920_v13 }
 0x280   :  { %v926_v12 = vpack.c.bf16 %v925_v8, %v925_v8 }
 0x282   :  { %960 = vmatmul.mubr.bf16.vlgmr.msra.gmra.mrb[24].mxu0 %v926_v12  ;;  %1001 = vmatmul.mubr.bf16.vlgmr.msra.gmra.mrb[24].mxu1 %v926_v12 }
 0x283   :  { %1038 = vmatpush1.bf16.msra.mxu0 %v2296_v36  ;;  %1079 = vmatpush1.bf16.msra.mxu1 %v2298_v37 }
 0x284   :  { %1039 = vmatprep.subr.bf16.mxu0 %v2302_v38  ;;  %1080 = vmatprep.subr.bf16.mxu1 %v2304_v39 }
 0x285   :  { %1069 = vmatprep.mubr.bf16.mxu0 %v2854_v30  ;;  %1110 = vmatprep.mubr.bf16.mxu1 %v2854_v30 }
 0x287   :  { %1040 = vmatpush1.bf16.msra.mxu0 %v2306_v40  ;;  %1081 = vmatpush1.bf16.msra.mxu1 %v2310_v41 }
 0x288   :  { %1041 = vmatprep.subr.bf16.mxu0 %v2314_v42  ;;  %1082 = vmatprep.subr.bf16.mxu1 %v2316_v43 }
 0x28b   :  { %1042 = vmatpush1.bf16.msra.mxu0 %v2320_v45  ;;  %1083 = vmatpush1.bf16.msra.mxu1 %v2322_v46 }
 0x28c   :  { %1043 = vmatprep.subr.bf16.mxu0 %v2326_v47  ;;  %1084 = vmatprep.subr.bf16.mxu1 %v2330_v48 }
 0x28f   :  { %1044 = vmatpush1.bf16.msra.mxu0 %v2332_v49  ;;  %1085 = vmatpush1.bf16.msra.mxu1 %v2334_v50 }
 0x290   :  { %1045 = vmatprep.subr.bf16.mxu0 %v2338_v51  ;;  %1086 = vmatprep.subr.bf16.mxu1 %v2342_v52 }
 0x293   :  { %1046 = vmatpush1.bf16.msra.mxu0 %v2346_v54  ;;  %1087 = vmatpush1.bf16.msra.mxu1 %v2348_v55 }
 0x294   :  { %1047 = vmatprep.subr.bf16.mxu0 %v2350_v56  ;;  %1088 = vmatprep.subr.bf16.mxu1 %v2352_v57 }
 0x297   :  { %1048 = vmatpush1.bf16.msra.mxu0 %v2360_v58  ;;  %1089 = vmatpush1.bf16.msra.mxu1 %v2362_v59 }
 0x298   :  { %1049 = vmatprep.subr.bf16.mxu0 %v2366_v60  ;;  %1090 = vmatprep.subr.bf16.mxu1 %v2368_v61 }
 0x29b   :  { %1050 = vmatpush1.bf16.msra.mxu0 %v2374_v63  ;;  %1091 = vmatpush1.bf16.msra.mxu1 %v2376_v1 }
 0x29c   :  { %1051 = vmatprep.subr.bf16.mxu0 %v2380_v2  ;;  %1092 = vmatprep.subr.bf16.mxu1 %v2382_v3 }
 0x29f   :  { %1052 = vmatpush1.bf16.msra.mxu0 %v2386_v4  ;;  %1093 = vmatpush1.bf16.msra.mxu1 %v2388_v5 }
 0x2a0   :  { %1147 = vmatprep.subr.bf16.mxu0 %v2292_v33  ;;  %1188 = vmatprep.subr.bf16.mxu1 %v2294_v34 }
 0x355   :  { %v961_v53 = vpop.f32.mrb[24].mxu0  ;;  %v1002_v23 = vpop.f32.mrb[24].mxu1 }
 0x356   :  { %v1014_v31 = vadd.f32 %v961_v53, %v2453_v32  ;;  %v1016_v15 = vadd.f32 %v1002_v23, %v2456_v44  ;;  %v963_v14 = vpop.f32.mrb[25].mxu0  ;;  %v1004_v16 = vpop.f32.mrb[25].mxu1 }
 0x357   :  { %v1015_v17 = vadd.f32 %v963_v14, %v2458_v62  ;;  %v1017_v19 = vadd.f32 %v1004_v16, %v2855_v18  ;;  %v965_v0 = vpop.f32.mrb[26].mxu0  ;;  %v1006_v20 = vpop.f32.mrb[26].mxu1  ;;  %v2857_v16 = vld [vmem:[#allocation20_spill] sm:$0xff] }
 0x358   :  { %v1018_v21 = vmul.f32 0.5, %v1014_v31  ;;  %v966_v27 = vpop.f32.mrb[27].mxu0  ;;  %v1007_v24 = vpop.f32.mrb[27].mxu1  ;;  %v2858_v0 = vld [vmem:[#allocation21_spill] sm:$0xff] }
 0x359   :  { %v1022_v25 = vmul.f32 0.5, %v1015_v17  ;;  %v1027_v26 = vmul.f32 0.5, %v1017_v19 }
 0x35a   :  { %1965 = vtanh.f32 %v1018_v21  ;;  %v2859_v21 = vld [vmem:[#allocation22_spill] sm:$0xff] }
 0x35b   :  { %1967 = vtanh.f32 %v1022_v25 }
 0x35c   :  { %1969 = vtanh.f32 %v1016_v15  ;;  %v2856_v15 = vld [vmem:[#allocation19_spill] sm:$0xff] }
 0x35d   :  { %1971 = vtanh.f32 %v1027_v26 }
 0x364   :  { %v1966_v7 = vpop.eup %1965 }
 0x365   :  { %v1968_v32 = vpop.eup %1967  ;;  %v1020_v9 = vadd.f32 1.0, %v1966_v7 }
 0x366   :  { %v1024_v44 = vadd.f32 1.0, %v1968_v32  ;;  %v1970_v11 = vpop.eup %1969 }
 0x367   :  { %v1021_v28 = vmul.f32 0.5, %v1020_v9  ;;  %v1972_v13 = vpop.eup %1971 }
 0x368   :  { %v1025_v62 = vmul.f32 0.5, %v1024_v44  ;;  %v1029_v6 = vadd.f32 1.0, %v1972_v13 }
 0x369   :  { %v1032_v29 = vmul.f32 %v1970_v11, %v1021_v28 }
 0x36a   :  { %v1031_v22 = vmul.f32 %v1025_v62, %v2559_v35  ;;  %v1030_v8 = vmul.f32 0.5, %v1029_v6 }
 0x36c   :  { %v2601_v10 = vadd.f32 %v1032_v29, %v1031_v22 }
 0x36e   :  { %1973 = vtanh.f32 %v2601_v10 }
 0x378   :  { %v1974_v12 = vpop.eup %1973 }
 0x379   :  { %v1035_v53 = vmul.f32 %v1974_v12, %v1030_v8 }
 0x37b   :  { %v1036_v23 = vpack.c.bf16 %v1035_v53, %v1035_v53 }
 0x37d   :  { %1070 = vmatmul.mubr.bf16.vlgmr.msra.gmra.mrb[28].mxu0 %v1036_v23  ;;  %1111 = vmatmul.mubr.bf16.vlgmr.msra.gmra.mrb[28].mxu1 %v1036_v23 }
 0x37e   :  { %1148 = vmatpush1.bf16.msra.mxu0 %v2296_v36  ;;  %1189 = vmatpush1.bf16.msra.mxu1 %v2298_v37 }
 0x37f   :  { %1149 = vmatprep.subr.bf16.mxu0 %v2302_v38  ;;  %1190 = vmatprep.subr.bf16.mxu1 %v2304_v39 }
 0x380   :  { %1179 = vmatprep.mubr.bf16.mxu0 %v2854_v30  ;;  %1220 = vmatprep.mubr.bf16.mxu1 %v2854_v30 }
 0x382   :  { %1150 = vmatpush1.bf16.msra.mxu0 %v2306_v40  ;;  %1191 = vmatpush1.bf16.msra.mxu1 %v2310_v41 }
 0x383   :  { %1151 = vmatprep.subr.bf16.mxu0 %v2314_v42  ;;  %1192 = vmatprep.subr.bf16.mxu1 %v2316_v43 }
 0x386   :  { %1152 = vmatpush1.bf16.msra.mxu0 %v2320_v45  ;;  %1193 = vmatpush1.bf16.msra.mxu1 %v2322_v46 }
 0x387   :  { %1153 = vmatprep.subr.bf16.mxu0 %v2326_v47  ;;  %1194 = vmatprep.subr.bf16.mxu1 %v2330_v48 }
 0x38a   :  { %1154 = vmatpush1.bf16.msra.mxu0 %v2332_v49  ;;  %1195 = vmatpush1.bf16.msra.mxu1 %v2334_v50 }
 0x38b   :  { %1155 = vmatprep.subr.bf16.mxu0 %v2338_v51  ;;  %1196 = vmatprep.subr.bf16.mxu1 %v2342_v52 }
 0x38e   :  { %1156 = vmatpush1.bf16.msra.mxu0 %v2346_v54  ;;  %1197 = vmatpush1.bf16.msra.mxu1 %v2348_v55 }
 0x38f   :  { %1157 = vmatprep.subr.bf16.mxu0 %v2350_v56  ;;  %1198 = vmatprep.subr.bf16.mxu1 %v2352_v57 }
 0x392   :  { %1158 = vmatpush1.bf16.msra.mxu0 %v2360_v58  ;;  %1199 = vmatpush1.bf16.msra.mxu1 %v2362_v59 }
 0x393   :  { %1159 = vmatprep.subr.bf16.mxu0 %v2366_v60  ;;  %1200 = vmatprep.subr.bf16.mxu1 %v2368_v61 }
 0x396   :  { %1160 = vmatpush1.bf16.msra.mxu0 %v2374_v63  ;;  %1201 = vmatpush1.bf16.msra.mxu1 %v2376_v1 }
 0x397   :  { %1161 = vmatprep.subr.bf16.mxu0 %v2380_v2  ;;  %1202 = vmatprep.subr.bf16.mxu1 %v2382_v3 }
 0x39a   :  { %1162 = vmatpush1.bf16.msra.mxu0 %v2386_v4  ;;  %1203 = vmatpush1.bf16.msra.mxu1 %v2388_v5 }
 0x39b   :  { %1257 = vmatprep.subr.bf16.mxu0 %v2292_v33  ;;  %1298 = vmatprep.subr.bf16.mxu1 %v2294_v34 }
 0x450   :  { %v1071_v35 = vpop.f32.mrb[28].mxu0  ;;  %v1112_v31 = vpop.f32.mrb[28].mxu1 }
 0x451   :  { %v1124_v14 = vadd.f32 %v1071_v35, %v2856_v15  ;;  %v1126_v17 = vadd.f32 %v1112_v31, %v2857_v16  ;;  %v1073_v18 = vpop.f32.mrb[29].mxu0  ;;  %v1114_v19 = vpop.f32.mrb[29].mxu1 }
 0x452   :  { %v1125_v20 = vadd.f32 %v1073_v18, %v2858_v0  ;;  %v1127_v27 = vadd.f32 %v1114_v19, %v2859_v21  ;;  %v1075_v24 = vpop.f32.mrb[30].mxu0  ;;  %v1116_v25 = vpop.f32.mrb[30].mxu1 }
 0x453   :  { %v1128_v26 = vmul.f32 0.5, %v1124_v14  ;;  %v1076_v7 = vpop.f32.mrb[31].mxu0  ;;  %v1117_v32 = vpop.f32.mrb[31].mxu1 }
 0x454   :  { %v1132_v33 = vmul.f32 0.5, %v1125_v20  ;;  %v1137_v34 = vmul.f32 0.5, %v1127_v27 }
 0x455   :  { %1975 = vtanh.f32 %v1128_v26 }
 0x456   :  { %1977 = vtanh.f32 %v1132_v33 }
 0x457   :  { %1979 = vtanh.f32 %v1126_v17 }
 0x458   :  { %1981 = vtanh.f32 %v1137_v34 }
 0x45f   :  { %v1976_v9 = vpop.eup %1975 }
 0x460   :  { %v1978_v44 = vpop.eup %1977  ;;  %v1130_v28 = vadd.f32 1.0, %v1976_v9  ;;  %v2692_v9 = vld [vmem:[#allocation10] ss:$16 sps:$4 sm:$0xff]  }
 0x461   :  { %v1134_v11 = vadd.f32 1.0, %v1978_v44  ;;  %v1980_v29 = vpop.eup %1979  ;;  %v2695_v44 = vld [vmem:[#allocation10 + $0x8] ss:$16 sps:$4 sm:$0xff]  }
 0x462   :  { %v1131_v62 = vmul.f32 0.5, %v1130_v28  ;;  %v1982_v12 = vpop.eup %1981  ;;  %v2698_v28 = vld [vmem:[#allocation10 + $0x24] ss:$16 sps:$4 sm:$0xff]  }
 0x463   :  { %v1135_v22 = vmul.f32 0.5, %v1134_v11  ;;  %v1139_v53 = vadd.f32 1.0, %v1982_v12  ;;  %v2701_v11 = vld [vmem:[#allocation10 + $0x2c] ss:$16 sps:$4 sm:$0xff]   ;;  %v2724_v12 = vld [vmem:[#allocation10 + $0x64] ss:$16 sps:$4 sm:$0xff]  }
 0x464   :  { %v1142_v13 = vmul.f32 %v1980_v29, %v1131_v62  ;;  %v2706_v62 = vld [vmem:[#allocation10 + $0x20] ss:$16 sps:$4 sm:$0xff]   ;;  %v2709_v29 = vld [vmem:[#allocation10 + $0x28] ss:$16 sps:$4 sm:$0xff]  }
 0x465   :  { %v1141_v6 = vmul.f32 %v1135_v22, %v2601_v10  ;;  %v1140_v23 = vmul.f32 0.5, %v1139_v53  ;;  %v2712_v22 = vld [vmem:[#allocation10 + $0x44] ss:$16 sps:$4 sm:$0xff]   ;;  %v2727_v53 = vld [vmem:[#allocation10 + $0x6c] ss:$16 sps:$4 sm:$0xff]  }
 0x467   :  { %v2643_v8 = vadd.f32 %v1142_v13, %v1141_v6  ;;  %v2715_v13 = vld [vmem:[#allocation10 + $0x4c] ss:$16 sps:$4 sm:$0xff]   ;;  %v2718_v6 = vld [vmem:[#allocation10 + $0x40] ss:$16 sps:$4 sm:$0xff]  }
 0x469   :  { %1983 = vtanh.f32 %v2643_v8 }
 0x473   :  { %v1984_v35 = vpop.eup %1983 }
 0x474   :  { %v1145_v31 = vmul.f32 %v1984_v35, %v1140_v23  ;;  %v2730_v23 = vld [vmem:[#allocation10 + $0x60] ss:$16 sps:$4 sm:$0xff]   ;;  %v2733_v35 = vld [vmem:[#allocation10 + $0x68] ss:$16 sps:$4 sm:$0xff]  }
 0x476   :  { %v1146_v15 = vpack.c.bf16 %v1145_v31, %v1145_v31  ;;  %v2736_v31 = vld [vmem:[#allocation10 + $0x84] ss:$16 sps:$4 sm:$0xff]  }
 0x478   :  { %1180 = vmatmul.mubr.bf16.vlgmr.msra.gmra.mrb[32].mxu0 %v1146_v15  ;;  %1221 = vmatmul.mubr.bf16.vlgmr.msra.gmra.mrb[32].mxu1 %v1146_v15  ;;  %v2739_v15 = vld [vmem:[#allocation10 + $0x8c] ss:$16 sps:$4 sm:$0xff]  }
 0x479   :  { %1258 = vmatpush1.bf16.msra.mxu0 %v2296_v36  ;;  %1299 = vmatpush1.bf16.msra.mxu1 %v2298_v37  ;;  %v2678_v36 = vld [vmem:[#allocation10 + $0x4] ss:$16 sps:$4 sm:$0xff]   ;;  %v2681_v37 = vld [vmem:[#allocation10 + $0xc] ss:$16 sps:$4 sm:$0xff]  }
 0x47a   :  { %1259 = vmatprep.subr.bf16.mxu0 %v2302_v38  ;;  %1300 = vmatprep.subr.bf16.mxu1 %v2304_v39 }
 0x47b   :  { %1289 = vmatprep.mubr.bf16.mxu0 %v2854_v30  ;;  %1330 = vmatprep.mubr.bf16.mxu1 %v2854_v30 }
 0x47d   :  { %1260 = vmatpush1.bf16.msra.mxu0 %v2306_v40  ;;  %1301 = vmatpush1.bf16.msra.mxu1 %v2310_v41  ;;  %v2860_v40 = vld [vmem:[#allocation23_spill] sm:$0xff] }
 0x47e   :  { %1261 = vmatprep.subr.bf16.mxu0 %v2314_v42  ;;  %1302 = vmatprep.subr.bf16.mxu1 %v2316_v43  ;;  %v2861_v42 = vld [vmem:[#allocation24_spill] sm:$0xff] }
 0x481   :  { %1262 = vmatpush1.bf16.msra.mxu0 %v2320_v45  ;;  %1303 = vmatpush1.bf16.msra.mxu1 %v2322_v46 }
 0x482   :  { %1263 = vmatprep.subr.bf16.mxu0 %v2326_v47  ;;  %1304 = vmatprep.subr.bf16.mxu1 %v2330_v48  ;;  %v2862_v47 = vld [vmem:[#allocation25_spill] sm:$0xff] }
 0x485   :  { %1264 = vmatpush1.bf16.msra.mxu0 %v2332_v49  ;;  %1305 = vmatpush1.bf16.msra.mxu1 %v2334_v50  ;;  %v2863_v49 = vld [vmem:[#allocation26_spill] sm:$0xff] }
 0x486   :  { %1265 = vmatprep.subr.bf16.mxu0 %v2338_v51  ;;  %1306 = vmatprep.subr.bf16.mxu1 %v2342_v52 }
 0x489   :  { %1266 = vmatpush1.bf16.msra.mxu0 %v2346_v54  ;;  %1307 = vmatpush1.bf16.msra.mxu1 %v2348_v55 }
 0x48a   :  { %1267 = vmatprep.subr.bf16.mxu0 %v2350_v56  ;;  %1308 = vmatprep.subr.bf16.mxu1 %v2352_v57 }
 0x48d   :  { %1268 = vmatpush1.bf16.msra.mxu0 %v2360_v58  ;;  %1309 = vmatpush1.bf16.msra.mxu1 %v2362_v59 }
 0x48e   :  { %1269 = vmatprep.subr.bf16.mxu0 %v2366_v60  ;;  %1310 = vmatprep.subr.bf16.mxu1 %v2368_v61 }
 0x491   :  { %1270 = vmatpush1.bf16.msra.mxu0 %v2374_v63  ;;  %1311 = vmatpush1.bf16.msra.mxu1 %v2376_v1 }
 0x492   :  { %1271 = vmatprep.subr.bf16.mxu0 %v2380_v2  ;;  %1312 = vmatprep.subr.bf16.mxu1 %v2382_v3 }
 0x495   :  { %1272 = vmatpush1.bf16.msra.mxu0 %v2386_v4  ;;  %1313 = vmatpush1.bf16.msra.mxu1 %v2388_v5 }
 0x496   :  { %1367 = vmatprep.subr.bf16.mxu0 %v2678_v36  ;;  %1408 = vmatprep.subr.bf16.mxu1 %v2681_v37 }
 0x54b   :  { %v1181_v38 = vpop.f32.mrb[32].mxu0  ;;  %v1222_v39 = vpop.f32.mrb[32].mxu1 }
 0x54c   :  { %v1234_v41 = vadd.f32 %v1181_v38, %v2860_v40  ;;  %v1236_v43 = vadd.f32 %v1222_v39, %v2861_v42  ;;  %v1183_v45 = vpop.f32.mrb[33].mxu0  ;;  %v1224_v46 = vpop.f32.mrb[33].mxu1  ;;  %v2742_v38 = vld [vmem:[#allocation10 + $0x80] ss:$16 sps:$4 sm:$0xff]   ;;  %v2745_v39 = vld [vmem:[#allocation10 + $0x88] ss:$16 sps:$4 sm:$0xff]  }
 0x54d   :  { %v1235_v48 = vadd.f32 %v1183_v45, %v2862_v47  ;;  %v1237_v50 = vadd.f32 %v1224_v46, %v2863_v49  ;;  %v1185_v51 = vpop.f32.mrb[34].mxu0  ;;  %v1226_v52 = vpop.f32.mrb[34].mxu1  ;;  %v2748_v40 = vld [vmem:[#allocation10 + $0xa4] ss:$16 sps:$4 sm:$0xff]   ;;  %v2865_v42 = vld [vmem:[#allocation28_spill] sm:$0xff]  ;;  %v2867_v46 = vld [vmem:[#allocation30_spill] sm:$0xff] }
 0x54e   :  { %v1238_v54 = vmul.f32 0.5, %v1234_v41  ;;  %v1186_v55 = vpop.f32.mrb[35].mxu0  ;;  %v1227_v56 = vpop.f32.mrb[35].mxu1  ;;  %v2751_v41 = vld [vmem:[#allocation10 + $0xac] ss:$16 sps:$4 sm:$0xff]   ;;  %v2866_v45 = vld [vmem:[#allocation29_spill] sm:$0xff] }
 0x54f   :  { %v1242_v57 = vmul.f32 0.5, %v1235_v48  ;;  %v1247_v10 = vmul.f32 0.5, %v1237_v50 }
 0x550   :  { %1985 = vtanh.f32 %v1238_v54 }
 0x551   :  { %1987 = vtanh.f32 %v1242_v57 }
 0x552   :  { %1989 = vtanh.f32 %v1236_v43 }
 0x553   :  { %1991 = vtanh.f32 %v1247_v10 }
 0x55a   :  { %v1986_v14 = vpop.eup %1985 }
 0x55b   :  { %v1988_v16 = vpop.eup %1987  ;;  %v1240_v17 = vadd.f32 1.0, %v1986_v14 }
 0x55c   :  { %v1244_v18 = vadd.f32 1.0, %v1988_v16  ;;  %v1990_v0 = vpop.eup %1989 }
 0x55d   :  { %v1241_v19 = vmul.f32 0.5, %v1240_v17  ;;  %v1992_v25 = vpop.eup %1991 }
 0x55e   :  { %v1245_v20 = vmul.f32 0.5, %v1244_v18  ;;  %v1249_v26 = vadd.f32 1.0, %v1992_v25  ;;  %v2050_v25 = vld [vmem:[#allocation10 + $0xcc] ss:$16 sps:$4 sm:$0xff]  }
 0x55f   :  { %v1252_v21 = vmul.f32 %v1990_v0, %v1241_v19 }
 0x560   :  { %v1251_v27 = vmul.f32 %v1245_v20, %v2643_v8  ;;  %v1250_v7 = vmul.f32 0.5, %v1249_v26  ;;  %v2721_v8 = vld [vmem:[#allocation10 + $0x48] ss:$16 sps:$4 sm:$0xff]   ;;  %v2051_v26 = vld [vmem:[#allocation10 + $0xc0] ss:$16 sps:$4 sm:$0xff]  }
 0x562   :  { %v2689_v24 = vadd.f32 %v1252_v21, %v1251_v27  ;;  %v2048_v27 = vld [vmem:[#allocation10 + $0xa8] ss:$16 sps:$4 sm:$0xff]  }
 0x564   :  { %1993 = vtanh.f32 %v2689_v24 }
 0x56e   :  { %v1994_v32 = vpop.eup %1993 }
 0x56f   :  { %v1255_v33 = vmul.f32 %v1994_v32, %v1250_v7  ;;  %v2052_v7 = vld [vmem:[#allocation10 + $0xc8] ss:$16 sps:$4 sm:$0xff]   ;;  %v2053_v32 = vld [vmem:[#allocation10 + $0xe4] ss:$16 sps:$4 sm:$0xff]  }
 0x571   :  { %v1256_v34 = vpack.c.bf16 %v1255_v33, %v1255_v33  ;;  %v2054_v33 = vld [vmem:[#allocation10 + $0xec] ss:$16 sps:$4 sm:$0xff]  }
 0x573   :  { %1290 = vmatmul.mubr.bf16.vlgmr.msra.gmra.mrb[36].mxu0 %v1256_v34  ;;  %1331 = vmatmul.mubr.bf16.vlgmr.msra.gmra.mrb[36].mxu1 %v1256_v34  ;;  %v2055_v34 = vld [vmem:[#allocation10 + $0xe0] ss:$16 sps:$4 sm:$0xff]  }
 0x574   :  { %1368 = vmatpush1.bf16.msra.mxu0 %v2692_v9  ;;  %1409 = vmatpush1.bf16.msra.mxu1 %v2695_v44 }
 0x575   :  { %1369 = vmatprep.subr.bf16.mxu0 %v2698_v28  ;;  %1410 = vmatprep.subr.bf16.mxu1 %v2701_v11 }
 0x576   :  { %1399 = vmatprep.mubr.bf16.mxu0 %v2854_v30  ;;  %1440 = vmatprep.mubr.bf16.mxu1 %v2854_v30 }
 0x578   :  { %1370 = vmatpush1.bf16.msra.mxu0 %v2706_v62  ;;  %1411 = vmatpush1.bf16.msra.mxu1 %v2709_v29 }
 0x579   :  { %1371 = vmatprep.subr.bf16.mxu0 %v2712_v22  ;;  %1412 = vmatprep.subr.bf16.mxu1 %v2715_v13 }
 0x57c   :  { %1372 = vmatpush1.bf16.msra.mxu0 %v2718_v6  ;;  %1413 = vmatpush1.bf16.msra.mxu1 %v2721_v8 }
 0x57d   :  { %1373 = vmatprep.subr.bf16.mxu0 %v2724_v12  ;;  %1414 = vmatprep.subr.bf16.mxu1 %v2727_v53 }
 0x580   :  { %1374 = vmatpush1.bf16.msra.mxu0 %v2730_v23  ;;  %1415 = vmatpush1.bf16.msra.mxu1 %v2733_v35 }
 0x581   :  { %1375 = vmatprep.subr.bf16.mxu0 %v2736_v31  ;;  %1416 = vmatprep.subr.bf16.mxu1 %v2739_v15 }
 0x584   :  { %1376 = vmatpush1.bf16.msra.mxu0 %v2742_v38  ;;  %1417 = vmatpush1.bf16.msra.mxu1 %v2745_v39 }
 0x585   :  { %1377 = vmatprep.subr.bf16.mxu0 %v2748_v40  ;;  %1418 = vmatprep.subr.bf16.mxu1 %v2751_v41 }
 0x588   :  { %1378 = vmatpush1.bf16.msra.mxu0 %v2360_v58  ;;  %1419 = vmatpush1.bf16.msra.mxu1 %v2362_v59 }
 0x589   :  { %1379 = vmatprep.subr.bf16.mxu0 %v2366_v60  ;;  %1420 = vmatprep.subr.bf16.mxu1 %v2368_v61  ;;  %v2864_v60 = vld [vmem:[#allocation27_spill] sm:$0xff] }
 0x58c   :  { %1380 = vmatpush1.bf16.msra.mxu0 %v2374_v63  ;;  %1421 = vmatpush1.bf16.msra.mxu1 %v2376_v1 }
 0x58d   :  { %1381 = vmatprep.subr.bf16.mxu0 %v2380_v2  ;;  %1422 = vmatprep.subr.bf16.mxu1 %v2382_v3 }
 0x590   :  { %1382 = vmatpush1.bf16.msra.mxu0 %v2386_v4  ;;  %1423 = vmatpush1.bf16.msra.mxu1 %v2388_v5 }
 0x591   :  { %1477 = vmatprep.subr.bf16.mxu0 %v2678_v36  ;;  %1518 = vmatprep.subr.bf16.mxu1 %v2681_v37 }
 0x646   :  { %v1291_v58 = vpop.f32.mrb[36].mxu0  ;;  %v1332_v59 = vpop.f32.mrb[36].mxu1 }
 0x647   :  { %v1344_v61 = vadd.f32 %v1291_v58, %v2864_v60  ;;  %v1346_v63 = vadd.f32 %v1332_v59, %v2865_v42  ;;  %v1293_v43 = vpop.f32.mrb[37].mxu0  ;;  %v1334_v1 = vpop.f32.mrb[37].mxu1 }
 0x648   :  { %v1345_v2 = vadd.f32 %v1293_v43, %v2866_v45  ;;  %v1347_v3 = vadd.f32 %v1334_v1, %v2867_v46  ;;  %v1295_v47 = vpop.f32.mrb[38].mxu0  ;;  %v1336_v4 = vpop.f32.mrb[38].mxu1 }
 0x649   :  { %v1348_v48 = vmul.f32 0.5, %v1344_v61  ;;  %v1296_v5 = vpop.f32.mrb[39].mxu0  ;;  %v1337_v49 = vpop.f32.mrb[39].mxu1 }
 0x64a   :  { %v1352_v36 = vmul.f32 0.5, %v1345_v2  ;;  %v1357_v37 = vmul.f32 0.5, %v1347_v3  ;;  %v1937_v49 = vld [vmem:[#allocation11] sm:$0xff]  }
 0x64b   :  { %1995 = vtanh.f32 %v1348_v48 }
 0x64c   :  { %1997 = vtanh.f32 %v1352_v36  ;;  %v2185_v36 = vmov 0.0  }
 0x64d   :  { %1999 = vtanh.f32 %v1346_v63 }
 0x64e   :  { %2001 = vtanh.f32 %v1357_v37  ;;  %v1938_v37 = vld [vmem:[#allocation11 + $0x8] sm:$0xff]  }
 0x655   :  { %v1996_v50 = vpop.eup %1995 }
 0x656   :  { %v1998_v51 = vpop.eup %1997  ;;  %v1350_v52 = vadd.f32 1.0, %v1996_v50  ;;  %v1939_v50 = vld [vmem:[#allocation11 + $0x10] sm:$0xff]  }
 0x657   :  { %v1354_v54 = vadd.f32 1.0, %v1998_v51  ;;  %v2000_v56 = vpop.eup %1999  ;;  %v1940_v51 = vld [vmem:[#allocation11 + $0x18] sm:$0xff]  }
 0x658   :  { %v1351_v55 = vmul.f32 0.5, %v1350_v52  ;;  %v2002_v17 = vpop.eup %2001  ;;  %v1941_v52 = vld [vmem:[#allocation11 + $0x20] sm:$0xff]  }
 0x659   :  { %v1355_v57 = vmul.f32 0.5, %v1354_v54  ;;  %v1359_v18 = vadd.f32 1.0, %v2002_v17  ;;  %v1942_v54 = vld [vmem:[#allocation11 + $0x28] sm:$0xff]   ;;  %v2873_v17 = vld [vmem:[#allocation36_spill] sm:$0xff] }
 0x65a   :  { %v1362_v10 = vmul.f32 %v2000_v56, %v1351_v55  ;;  %v1943_v55 = vld [vmem:[#allocation11 + $0x30] sm:$0xff]   ;;  %v1944_v56 = vld [vmem:[#allocation11 + $0x38] sm:$0xff]  }
 0x65b   :  { %v1361_v14 = vmul.f32 %v1355_v57, %v2689_v24  ;;  %v1360_v19 = vmul.f32 0.5, %v1359_v18  ;;  %v2049_v24 = vld [vmem:[#allocation10 + $0xc4] ss:$16 sps:$4 sm:$0xff]  }
 0x65d   :  { %v2771_v16 = vadd.f32 %v1362_v10, %v1361_v14  ;;  %v2872_v14 = vld [vmem:[#allocation35_spill] sm:$0xff] }
 0x65f   :  { %2003 = vtanh.f32 %v2771_v16 }
 0x669   :  { %v2004_v0 = vpop.eup %2003 }
 0x66a   :  { %v1365_v20 = vmul.f32 %v2004_v0, %v1360_v19 }
 0x66c   :  { %v1366_v21 = vpack.c.bf16 %v1365_v20, %v1365_v20  ;;  %v2874_v20 = vld [vmem:[#allocation37_spill] sm:$0xff] }
 0x66e   :  { %1400 = vmatmul.mubr.bf16.vlgmr.msra.gmra.mrb[40].mxu0 %v1366_v21  ;;  %1441 = vmatmul.mubr.bf16.vlgmr.msra.gmra.mrb[40].mxu1 %v1366_v21 }
 0x66f   :  { %1478 = vmatpush1.bf16.msra.mxu0 %v2692_v9  ;;  %1519 = vmatpush1.bf16.msra.mxu1 %v2695_v44  ;;  %v2056_v9 = vld [vmem:[#allocation10 + $0xe8] ss:$16 sps:$4 sm:$0xff]  }
 0x670   :  { %1479 = vmatprep.subr.bf16.mxu0 %v2698_v28  ;;  %1520 = vmatprep.subr.bf16.mxu1 %v2701_v11  ;;  %v2868_v11 = vld [vmem:[#allocation31_spill] sm:$0xff] }
 0x671   :  { %1509 = vmatprep.mubr.bf16.mxu0 %v2854_v30  ;;  %1550 = vmatprep.mubr.bf16.mxu1 %v2854_v30  ;;  %v2047_v30 = vld [vmem:[#allocation10 + $0xa0] ss:$16 sps:$4 sm:$0xff]  }
 0x673   :  { %1480 = vmatpush1.bf16.msra.mxu0 %v2706_v62  ;;  %1521 = vmatpush1.bf16.msra.mxu1 %v2709_v29  ;;  %v2869_v29 = vld [vmem:[#allocation32_spill] sm:$0xff] }
 0x674   :  { %1481 = vmatprep.subr.bf16.mxu0 %v2712_v22  ;;  %1522 = vmatprep.subr.bf16.mxu1 %v2715_v13 }
 0x677   :  { %1482 = vmatpush1.bf16.msra.mxu0 %v2718_v6  ;;  %1523 = vmatpush1.bf16.msra.mxu1 %v2721_v8  ;;  %v2870_v8 = vld [vmem:[#allocation33_spill] sm:$0xff] }
 0x678   :  { %1483 = vmatprep.subr.bf16.mxu0 %v2724_v12  ;;  %1524 = vmatprep.subr.bf16.mxu1 %v2727_v53  ;;  %v2871_v53 = vld [vmem:[#allocation34_spill] sm:$0xff] }
 0x67b   :  { %1484 = vmatpush1.bf16.msra.mxu0 %v2730_v23  ;;  %1525 = vmatpush1.bf16.msra.mxu1 %v2733_v35 }
 0x67c   :  { %1485 = vmatprep.subr.bf16.mxu0 %v2736_v31  ;;  %1526 = vmatprep.subr.bf16.mxu1 %v2739_v15 }
 0x67f   :  { %1486 = vmatpush1.bf16.msra.mxu0 %v2742_v38  ;;  %1527 = vmatpush1.bf16.msra.mxu1 %v2745_v39 }
 0x680   :  { %1487 = vmatprep.subr.bf16.mxu0 %v2748_v40  ;;  %1528 = vmatprep.subr.bf16.mxu1 %v2751_v41 }
 0x683   :  { %1488 = vmatpush1.bf16.msra.mxu0 %v2047_v30  ;;  %1529 = vmatpush1.bf16.msra.mxu1 %v2048_v27  ;;  %v2875_v30 = vld [vmem:[#allocation38_spill] sm:$0xff] }
 0x684   :  { %1489 = vmatprep.subr.bf16.mxu0 %v2049_v24  ;;  %1530 = vmatprep.subr.bf16.mxu1 %v2050_v25 }
 0x687   :  { %1490 = vmatpush1.bf16.msra.mxu0 %v2051_v26  ;;  %1531 = vmatpush1.bf16.msra.mxu1 %v2052_v7 }
 0x688   :  { %1491 = vmatprep.subr.bf16.mxu0 %v2053_v32  ;;  %1532 = vmatprep.subr.bf16.mxu1 %v2054_v33 }
 0x68b   :  { %1492 = vmatpush1.bf16.msra.mxu0 %v2055_v34  ;;  %1533 = vmatpush1.bf16.msra.mxu1 %v2056_v9 }
 0x68c   :  { %1804 = vmatprep.subr.bf16.mxu0 %v2185_v36 }
 0x741   :  { %v1401_v44 = vpop.f32.mrb[40].mxu0  ;;  %v1442_v28 = vpop.f32.mrb[40].mxu1 }
 0x742   :  { %v1454_v62 = vadd.f32 %v1401_v44, %v2868_v11  ;;  %v1456_v22 = vadd.f32 %v1442_v28, %v2869_v29  ;;  %v1403_v13 = vpop.f32.mrb[41].mxu0  ;;  %v1444_v6 = vpop.f32.mrb[41].mxu1 }
 0x743   :  { %v1455_v12 = vadd.f32 %v1403_v13, %v2870_v8  ;;  %v1457_v23 = vadd.f32 %v1444_v6, %v2871_v53  ;;  %v1405_v35 = vpop.f32.mrb[42].mxu0  ;;  %v1446_v31 = vpop.f32.mrb[42].mxu1 }
 0x744   :  { %v1458_v15 = vmul.f32 0.5, %v1454_v62  ;;  %v1406_v38 = vpop.f32.mrb[43].mxu0  ;;  %v1447_v39 = vpop.f32.mrb[43].mxu1 }
 0x745   :  { %v1462_v40 = vmul.f32 0.5, %v1455_v12  ;;  %v1467_v41 = vmul.f32 0.5, %v1457_v23  ;;  %v1786_v38 = vld [vmem:[%s2829_s5] ss:$0 sm:$0xff] }
 0x746   :  { %2005 = vtanh.f32 %v1458_v15 }
 0x747   :  { %2007 = vtanh.f32 %v1462_v40 }
 0x748   :  { %2009 = vtanh.f32 %v1456_v22 }
 0x749   :  { %2011 = vtanh.f32 %v1467_v41 }
 0x750   :  { %v2006_v58 = vpop.eup %2005 }
 0x751   :  { %v2008_v59 = vpop.eup %2007  ;;  %v1460_v60 = vadd.f32 1.0, %v2006_v58 }
 0x752   :  { %v1464_v61 = vadd.f32 1.0, %v2008_v59  ;;  %v2010_v63 = vpop.eup %2009 }
 0x753   :  { %v1461_v42 = vmul.f32 0.5, %v1460_v60  ;;  %v2012_v46 = vpop.eup %2011 }
 0x754   :  { %v1465_v43 = vmul.f32 0.5, %v1464_v61  ;;  %v1469_v3 = vadd.f32 1.0, %v2012_v46 }
 0x755   :  { %v1472_v1 = vmul.f32 %v2010_v63, %v1461_v42 }
 0x756   :  { %v1471_v45 = vmul.f32 %v1465_v43, %v2771_v16  ;;  %v1470_v47 = vmul.f32 0.5, %v1469_v3 }
 0x758   :  { %v2801_v2 = vadd.f32 %v1472_v1, %v1471_v45 }
 0x75a   :  { %2013 = vtanh.f32 %v2801_v2 }
 0x764   :  { %v2014_v4 = vpop.eup %2013 }
 0x765   :  { %v1475_v48 = vmul.f32 %v2014_v4, %v1470_v47 }
 0x767   :  { %v1476_v5 = vpack.c.bf16 %v1475_v48, %v1475_v48 }
 0x769   :  { %1510 = vmatmul.mubr.bf16.vlgmr.msra.gmra.mrb[44].mxu0 %v1476_v5  ;;  %1551 = vmatmul.mubr.bf16.vlgmr.msra.gmra.mrb[44].mxu1 %v1476_v5 }
 0x76a   :  { %1805 = vmatpush3.bf16.msra.mxu0 %v1937_v49  ;;  %1820 = vmatprep.mubr.msk.bf16.mxu0 %vm2186_vm0, %v2185_v36 }
 0x76b   :  { %1806 = vmatprep.subr.bf16.mxu0 %v2185_v36 }
 0x76e   :  { %1807 = vmatpush3.bf16.msra.mxu0 %v1938_v37 }
 0x76f   :  { %1808 = vmatprep.subr.bf16.mxu0 %v2185_v36 }
 0x772   :  { %1809 = vmatpush3.bf16.msra.mxu0 %v1939_v50 }
 0x773   :  { %1810 = vmatprep.subr.bf16.mxu0 %v2185_v36 }
 0x776   :  { %1811 = vmatpush3.bf16.msra.mxu0 %v1940_v51 }
 0x777   :  { %1812 = vmatprep.subr.bf16.mxu0 %v2185_v36 }
 0x77a   :  { %1813 = vmatpush3.bf16.msra.mxu0 %v1941_v52 }
 0x77b   :  { %1814 = vmatprep.subr.bf16.mxu0 %v2185_v36 }
 0x77e   :  { %1815 = vmatpush3.bf16.msra.mxu0 %v1942_v54 }
 0x77f   :  { %1816 = vmatprep.subr.bf16.mxu0 %v2185_v36 }
 0x782   :  { %1817 = vmatpush3.bf16.msra.mxu0 %v1943_v55 }
 0x783   :  { %1818 = vmatprep.subr.bf16.mxu0 %v2185_v36 }
 0x786   :  { %1819 = vmatpush3.bf16.msra.mxu0 %v1944_v56 }
 0x83c   :  { %v1511_v57 = vpop.f32.mrb[44].mxu0  ;;  %v1552_v10 = vpop.f32.mrb[44].mxu1 }
 0x83d   :  { %v1564_v16 = vadd.f32 %v1511_v57, %v2872_v14  ;;  %v1566_v18 = vadd.f32 %v1552_v10, %v2873_v17  ;;  %v1513_v19 = vpop.f32.mrb[45].mxu0  ;;  %v1554_v0 = vpop.f32.mrb[45].mxu1 }
 0x83e   :  { %v1565_v21 = vadd.f32 %v1513_v19, %v2874_v20  ;;  %v1567_v27 = vadd.f32 %v1554_v0, %v2875_v30  ;;  %v1515_v24 = vpop.f32.mrb[46].mxu0  ;;  %v1556_v25 = vpop.f32.mrb[46].mxu1 }
 0x83f   :  { %v1568_v26 = vmul.f32 0.5, %v1564_v16  ;;  %v1516_v7 = vpop.f32.mrb[47].mxu0  ;;  %v1557_v32 = vpop.f32.mrb[47].mxu1 }
 0x840   :  { %v1572_v33 = vmul.f32 0.5, %v1565_v21  ;;  %v1577_v34 = vmul.f32 0.5, %v1567_v27 }
 0x841   :  { %2015 = vtanh.f32 %v1568_v26 }
 0x842   :  { %2017 = vtanh.f32 %v1572_v33 }
 0x843   :  { %2019 = vtanh.f32 %v1566_v18 }
 0x844   :  { %2021 = vtanh.f32 %v1577_v34 }
 0x84b   :  { %v2016_v9 = vpop.eup %2015 }
 0x84c   :  { %v2018_v44 = vpop.eup %2017  ;;  %v1570_v28 = vadd.f32 1.0, %v2016_v9 }
 0x84d   :  { %v1574_v11 = vadd.f32 1.0, %v2018_v44  ;;  %v2020_v29 = vpop.eup %2019 }
 0x84e   :  { %v1571_v62 = vmul.f32 0.5, %v1570_v28  ;;  %v2022_v12 = vpop.eup %2021 }
 0x84f   :  { %v1575_v22 = vmul.f32 0.5, %v1574_v11  ;;  %v1579_v53 = vadd.f32 1.0, %v2022_v12 }
 0x850   :  { %v1582_v13 = vmul.f32 %v2020_v29, %v1571_v62 }
 0x851   :  { %v1581_v6 = vmul.f32 %v1575_v22, %v2801_v2  ;;  %v1580_v23 = vmul.f32 0.5, %v1579_v53 }
 0x853   :  { %v1583_v8 = vadd.f32 %v1582_v13, %v1581_v6 }
 0x855   :  { %2023 = vtanh.f32 %v1583_v8 }
 0x85f   :  { %v2024_v35 = vpop.eup %2023 }
 0x860   :  { %v1585_v31 = vmul.f32 %v2024_v35, %v1580_v23 }
 0x862   :  { %v1588_v15 = vpack.c.bf16 %v1585_v31, %v1585_v31 }
 0x864   :  { %1821 = vmatmul.mubr.bf16.vlgmr.msra.gmra.mrb[48].mxu0 %v1588_v15 }
 0x937   :  { %v1694_v39 = vpop.f32.mrb[48].mxu0 }
 0x938   :  { %v1695_v40 = vadd.f32 %v1786_v38, %v1694_v39  ;;  %v1822_v41 = vpop.f32.mrb[49].mxu0 }
 0x939   :  { %v1697_v58 = vpop.f32.mrb[50].mxu0 }
 0x93a   :  { %1700 = vst [vmem:[#allocation13] sm:$0xff] %v1695_v40  ;;  %v1823_v59 = vpop.f32.mrb[51].mxu0 }
 0x93b   :  { %2156 = shalt.err (!%p2153_p8)
}
 0x93c   :  { %s2157_s5 = scalar_lea.hbm %s2830_s6, 128 }
 0x93d   :  { %p2158_p9 = scmp.ne.s32.totalorder %s2830_s6, %s2157_s5  ;;  %p2161_p10 = scmp.lt.u32.totalorder %s2157_s5, %s2830_s6 }
 0x93f   :  { %p2163_p11 = pnand %p2161_p10, %p2158_p9 }
 0x941   :  { %2166 = shalt.err (!%p2163_p11)
}
 0x942   :  { %1710 = dma.vmem_to_hbm [thread:$0]  %s1708_s24, 128, %s2830_s6, [#allocation7]  }
 0x943   :  { %2173 = dma.done.wait [#allocation7], 128  }
 0x944   :  { %2174 = vsyncadd [#allocation7], 4294967168 }
 0x945   :  { %1714 = vsyncpa [#allocation6], 1 }
 0x946   :  { %1715 = vsyncpa [#allocation9], 1 }
 0x947   :  { %1716 = vsyncpa [#allocation12], 1 }
 0x948   :  { %1717 = vsyncpa [#allocation7], 1 }

</bundles_post_ra>
